<compile_context>
chip_gen: v7x
topology: tpu7x:2x2x1
jax: 0.10.0
libtpu: 0.0.40
codegen_flags: <defaults>
</compile_context>

<pallas_src>
import functools

import jax
import jax.numpy as jnp
from jax import lax
from jax.experimental import pallas as pl
from jax.experimental.pallas import tpu as pltpu


# --------------------------------------------------------------------------
# Fused HDVAE forward kernel
# --------------------------------------------------------------------------
def _hdvae_kernel(
    q_ref, eps_ref,
    aw1_ref, ab1_ref, aw2_ref, ab2_ref,          # adj_net
    hw1_ref, hb1_ref, hw1s_ref,                  # hnet      (forward flow)
    dw1_ref, db1_ref, dw1s_ref,                  # hnet_dec  (inverse flow)
    ew1_ref, eb1_ref, ew2_ref, eb2_ref,          # z_encoder
    zw1_ref, zb1_ref, zw2_ref, zb2_ref,          # z_decoder
    out_ref,
    *, d, latent, dt_fwd, n_steps, out_width):
    f32 = jnp.float32

    def mlp2(x, w1, b1, w2, b2):
        h = jnp.tanh(jnp.dot(x, w1, preferred_element_type=f32) + b1)
        return jnp.dot(h, w2, preferred_element_type=f32) + b2

    def hd_flow(x, w1, b1, w1s, dt):
        # field(x) = dH @ J, with the symplectic J and the output row w2 both
        # pre-folded into w1s (host side).  b1 broadcast hoisted out of the
        # unrolled loop (JAX does not CSE broadcast_in_dim).
        b1b = jnp.broadcast_to(b1, (x.shape[0], b1.shape[1]))

        def field(xx):
            a = jnp.tanh(jnp.dot(xx, w1, preferred_element_type=f32) + b1b)
            return jnp.dot(1.0 - a * a, w1s, preferred_element_type=f32)  # (B, 2d)

        def rk4(_, xx):
            k1 = field(xx)
            k2 = field(xx + (0.5 * dt) * k1)
            k3 = field(xx + (0.5 * dt) * k2)
            k4 = field(xx + dt * k3)
            return xx + (dt / 6.0) * (k1 + 2.0 * k2 + 2.0 * k3 + k4)

        return lax.fori_loop(0, n_steps, rk4, x, unroll=True)

    q = q_ref[...]

    # p = adj_net(q); qp = cat(q, p)
    p = mlp2(q, aw1_ref[...], ab1_ref[...], aw2_ref[...], ab2_ref[...])
    qp = jnp.concatenate([q, p], axis=1)

    # qpt = odeint(HDNet(hnet), qp, [0, T])[-1]   (fixed-step RK4)
    qpt = hd_flow(qp, hw1_ref[...], hb1_ref[...], hw1s_ref[...], dt_fwd)

    # mu, logvar = z_encoder(qpt);  zhat = mu + eps * exp(0.5 * logvar)
    mu_logvar = mlp2(qpt, ew1_ref[...], eb1_ref[...], ew2_ref[...], eb2_ref[...])
    mu = mu_logvar[:, :latent]
    logvar = mu_logvar[:, latent:]
    zhat = mu + eps_ref[...] * jnp.exp(0.5 * logvar)

    # qpt_hat = z_decoder(zhat)
    qpt_hat = mlp2(zhat, zw1_ref[...], zb1_ref[...], zw2_ref[...], zb2_ref[...])

    # qp_hat = odeint(HDInverseNet(hnet_decoder), qpt_hat, [0, T])[-1]
    # (sign of the inverse field folded into -dt)
    qp_hat = hd_flow(qpt_hat, dw1_ref[...], db1_ref[...], dw1s_ref[...], -dt_fwd)

    # Pack all outputs into one lane-dense slab and store once.
    # mu_logvar is stored contiguously (mu | logvar) -- no re-concat of slices.
    used = 8 * d + 2 * latent
    pieces = [qp, qp_hat, qpt, qpt_hat, mu_logvar]
    pad = out_width - used
    if pad > 0:
        pieces.append(jnp.zeros((q.shape[0], pad), f32))
    out_ref[...] = jnp.concatenate(pieces, axis=1)


# --------------------------------------------------------------------------
# Host wrapper
# --------------------------------------------------------------------------
def hdvae_forward(q, params, noise_key, *, T=1.0, n_steps=8):
    batch, d = q.shape
    latent = params["z_decoder"][0].shape[0]
    dd2 = 2 * d

    # Sample eps on host (deterministic given noise_key).
    eps = jax.random.normal(noise_key, (batch, latent), jnp.float32)

    # Batch block: multiple of 8 sublanes, capped at 128 rows per grid step.
    bm = min(128, ((batch + 7) // 8) * 8)
    B = ((batch + bm - 1) // bm) * bm
    bpad = B - batch
    if bpad:
        q_in = jnp.concatenate([q, jnp.zeros((bpad, d), jnp.float32)], axis=0)
        eps_in = jnp.concatenate(
            [eps, jnp.zeros((bpad, latent), jnp.float32)], axis=0)
    else:
        q_in, eps_in = q, eps

    used = 8 * d + 2 * latent
    out_width = max(128, ((used + 127) // 128) * 128)

    aw1, ab1, aw2, ab2 = params["adj_net"]
    hw1, hb1, hw2, _ = params["hnet"]           # hamiltonian b2 drops out
    dw1, db1, dw2, _ = params["hnet_decoder"]
    ew1, eb1, ew2, eb2 = params["z_encoder"]
    zw1, zb1, zw2, zb2 = params["z_decoder"]

    # Pre-fold (host side, once):
    #   * the symplectic permutation/sign (cat(dp, -dq)) into W1^T, and
    #   * the Hamiltonian output row w2 into that same matrix,
    # so the 32x-repeated in-kernel field has exactly two matmuls, one tanh
    # and one VPU multiply -- no transposes, slices, concats or broadcasts.
    def ham_prep(w1, w2):
        w1tm = jnp.concatenate([w1[d:, :], -w1[:d, :]], axis=0).T   # (H, 2d)
        return w2 * w1tm                                            # (H, 2d)

    hw1s = ham_prep(hw1, hw2)
    dw1s = ham_prep(dw1, dw2)

    kern = functools.partial(
        _hdvae_kernel, d=d, latent=latent,
        dt_fwd=float(T) / int(n_steps), n_steps=int(n_steps),
        out_width=out_width)

    def _full2d(shape):
        return pl.BlockSpec(shape, lambda i: (0, 0))   # whole weight resident

    in_specs = [
        pl.BlockSpec((bm, d), lambda i: (i, 0)),        # q
        pl.BlockSpec((bm, latent), lambda i: (i, 0)),   # eps
        _full2d(aw1.shape), _full2d(ab1.shape), _full2d(aw2.shape), _full2d(ab2.shape),
        _full2d(hw1.shape), _full2d(hb1.shape), _full2d(hw1s.shape),
        _full2d(dw1.shape), _full2d(db1.shape), _full2d(dw1s.shape),
        _full2d(ew1.shape), _full2d(eb1.shape), _full2d(ew2.shape), _full2d(eb2.shape),
        _full2d(zw1.shape), _full2d(zb1.shape), _full2d(zw2.shape), _full2d(zb2.shape),
    ]

    out = pl.pallas_call(
        kern,
        out_shape=jax.ShapeDtypeStruct((B, out_width), jnp.float32),
        grid=(B // bm,),
        in_specs=in_specs,
        out_specs=pl.BlockSpec((bm, out_width), lambda i: (i, 0)),
        compiler_params=pltpu.CompilerParams(
            dimension_semantics=("parallel",)),
    )(q_in, eps_in,
      aw1, ab1, aw2, ab2,
      hw1, hb1, hw1s,
      dw1, db1, dw1s,
      ew1, eb1, ew2, eb2,
      zw1, zb1, zw2, zb2)

    qp = out[:batch, 0:dd2]
    qp_hat = out[:batch, dd2:2 * dd2]
    qpt = out[:batch, 2 * dd2:3 * dd2]
    qpt_hat = out[:batch, 3 * dd2:4 * dd2]
    mu = out[:batch, 4 * dd2:4 * dd2 + latent]
    logvar = out[:batch, 4 * dd2 + latent:4 * dd2 + 2 * latent]
    return qp, qp_hat, qpt, qpt_hat, mu, logvar


# --------------------------------------------------------------------------
# Pure-JAX reference (original, un-folded formulation) for validation
# --------------------------------------------------------------------------
def _ref_mlp(x, params):
    w1, b1, w2, b2 = params
    return jnp.tanh(x @ w1 + b1) @ w2 + b2


def _ref_flow(x, params, sign, T, n_steps):
    w1, b1, w2, _ = params
    d = x.shape[1] // 2

    def field(xx):
        a = jnp.tanh(xx @ w1 + b1)
        dh = ((1.0 - a * a) * w2.T) @ w1.T
        dq, dp = dh[:, :d], dh[:, d:]
        return sign * jnp.concatenate([dp, -dq], axis=1)

    dt = T / n_steps
    for _ in range(n_steps):
        k1 = field(x)
        k2 = field(x + 0.5 * dt * k1)
        k3 = field(x + 0.5 * dt * k2)
        k4 = field(x + dt * k3)
        x = x + (dt / 6.0) * (k1 + 2.0 * k2 + 2.0 * k3 + k4)
    return x


def hdvae_forward_ref(q, params, noise_key, *, T=1.0, n_steps=8):
    p = _ref_mlp(q, params["adj_net"])
    qp = jnp.concatenate([q, p], axis=1)
    qpt = _ref_flow(qp, params["hnet"], +1.0, T, n_steps)
    ml = _ref_mlp(qpt, params["z_encoder"])
    latent = ml.shape[1] // 2
    mu, logvar = ml[:, :latent], ml[:, latent:]
    eps = jax.random.normal(noise_key, mu.shape, jnp.float32)
    zhat = mu + eps * jnp.exp(0.5 * logvar)
    qpt_hat = _ref_mlp(zhat, params["z_decoder"])
    qp_hat = _ref_flow(qpt_hat, params["hnet_decoder"], -1.0, T, n_steps)
    return qp, qp_hat, qpt, qpt_hat, mu, logvar


# --------------------------------------------------------------------------
# Parameter construction (deterministic, in-script)
# --------------------------------------------------------------------------
def make_mlp_params(key, in_dim, hidden, out_dim):
    k1, k2 = jax.random.split(key)
    scale1 = 1.0 / jnp.sqrt(jnp.float32(in_dim))
    scale2 = 1.0 / jnp.sqrt(jnp.float32(hidden))
    w1 = jax.random.normal(k1, (in_dim, hidden), jnp.float32) * scale1
    b1 = jnp.zeros((1, hidden), jnp.float32)
    w2 = jax.random.normal(k2, (hidden, out_dim), jnp.float32) * scale2
    b2 = jnp.zeros((1, out_dim), jnp.float32)
    return (w1, b1, w2, b2)


def make_hdvae_params(key, d, hidden, latent):
    ks = jax.random.split(key, 5)
    return {
        "adj_net": make_mlp_params(ks[0], d, hidden, d),
        "hnet": make_mlp_params(ks[1], 2 * d, hidden, 1),
        "hnet_decoder": make_mlp_params(ks[2], 2 * d, hidden, 1),
        "z_encoder": make_mlp_params(ks[3], 2 * d, hidden, 2 * latent),
        "z_decoder": make_mlp_params(ks[4], latent, hidden, 2 * d),
    }


if __name__ == "__main__":
    d = 8        # positions dim (q);  phase-space dim = 2d = 16
    hidden = 32  # hidden width of every synthetic sub-MLP
    latent = 8   # latent dim of the VAE
    batch = 4
    T = 1.0

    root = jax.random.PRNGKey(0)
    k_params, k_input, k_noise = jax.random.split(root, 3)

    params = make_hdvae_params(k_params, d, hidden, latent)
    q = jax.random.normal(k_input, (batch, d), jnp.float32)

    outs = hdvae_forward(q, params, k_noise, T=T, n_steps=8)
    outs = jax.block_until_ready(outs)

    qp, qp_hat, qpt, qpt_hat, mu, logvar = outs
    assert qp.shape == (batch, 2 * d)
    assert qp_hat.shape == (batch, 2 * d)
    assert qpt.shape == (batch, 2 * d)
    assert qpt_hat.shape == (batch, 2 * d)
    assert mu.shape == (batch, latent)
    assert logvar.shape == (batch, latent)
    assert all(jnp.all(jnp.isfinite(o)) for o in outs)

    # Validate the fused / symplectic-and-w2-folded kernel against the
    # un-folded pure-JAX reference.
    refs = hdvae_forward_ref(q, params, k_noise, T=T, n_steps=8)
    for got, ref in zip(outs, refs):
        assert jnp.allclose(got, ref, rtol=2e-3, atol=2e-3)

    print("KERNEL_OK")
</pallas_src>

<mosaic_0001>
module attributes {stable_mosaic.version = 11 : i64} {
  func.func @_hdvae_kernel(%arg0: i32, %arg1: memref<8x8xf32, #tpu.memory_space<vmem>>, %arg2: memref<8x8xf32, #tpu.memory_space<vmem>>, %arg3: memref<8x32xf32, #tpu.memory_space<vmem>>, %arg4: memref<1x32xf32, #tpu.memory_space<vmem>>, %arg5: memref<32x8xf32, #tpu.memory_space<vmem>>, %arg6: memref<1x8xf32, #tpu.memory_space<vmem>>, %arg7: memref<16x32xf32, #tpu.memory_space<vmem>>, %arg8: memref<1x32xf32, #tpu.memory_space<vmem>>, %arg9: memref<32x16xf32, #tpu.memory_space<vmem>>, %arg10: memref<16x32xf32, #tpu.memory_space<vmem>>, %arg11: memref<1x32xf32, #tpu.memory_space<vmem>>, %arg12: memref<32x16xf32, #tpu.memory_space<vmem>>, %arg13: memref<16x32xf32, #tpu.memory_space<vmem>>, %arg14: memref<1x32xf32, #tpu.memory_space<vmem>>, %arg15: memref<32x16xf32, #tpu.memory_space<vmem>>, %arg16: memref<1x16xf32, #tpu.memory_space<vmem>>, %arg17: memref<8x32xf32, #tpu.memory_space<vmem>>, %arg18: memref<1x32xf32, #tpu.memory_space<vmem>>, %arg19: memref<32x16xf32, #tpu.memory_space<vmem>>, %arg20: memref<1x16xf32, #tpu.memory_space<vmem>>, %arg21: memref<8x128xf32, #tpu.memory_space<vmem>>) attributes {dimension_semantics = [#tpu.dimension_semantics<parallel>], iteration_bounds = array<i64: 1>, scalar_prefetch = 0 : i64, scratch_operands = 0 : i64, tpu.core_type = #tpu.core_type<tc>, window_params = [{transform_indices = @transform_0, window_bounds = array<i64: 8, 8>}, {transform_indices = @transform_1, window_bounds = array<i64: 8, 8>}, {pipeline_mode = #tpu.pipeline_mode<synchronous>, transform_indices = @transform_2, window_bounds = array<i64: 8, 32>}, {pipeline_mode = #tpu.pipeline_mode<synchronous>, transform_indices = @transform_3, window_bounds = array<i64: 1, 32>}, {pipeline_mode = #tpu.pipeline_mode<synchronous>, transform_indices = @transform_4, window_bounds = array<i64: 32, 8>}, {pipeline_mode = #tpu.pipeline_mode<synchronous>, transform_indices = @transform_5, window_bounds = array<i64: 1, 8>}, {pipeline_mode = #tpu.pipeline_mode<synchronous>, transform_indices = @transform_6, window_bounds = array<i64: 16, 32>}, {pipeline_mode = #tpu.pipeline_mode<synchronous>, transform_indices = @transform_7, window_bounds = array<i64: 1, 32>}, {pipeline_mode = #tpu.pipeline_mode<synchronous>, transform_indices = @transform_8, window_bounds = array<i64: 32, 16>}, {pipeline_mode = #tpu.pipeline_mode<synchronous>, transform_indices = @transform_9, window_bounds = array<i64: 16, 32>}, {pipeline_mode = #tpu.pipeline_mode<synchronous>, transform_indices = @transform_10, window_bounds = array<i64: 1, 32>}, {pipeline_mode = #tpu.pipeline_mode<synchronous>, transform_indices = @transform_11, window_bounds = array<i64: 32, 16>}, {pipeline_mode = #tpu.pipeline_mode<synchronous>, transform_indices = @transform_12, window_bounds = array<i64: 16, 32>}, {pipeline_mode = #tpu.pipeline_mode<synchronous>, transform_indices = @transform_13, window_bounds = array<i64: 1, 32>}, {pipeline_mode = #tpu.pipeline_mode<synchronous>, transform_indices = @transform_14, window_bounds = array<i64: 32, 16>}, {pipeline_mode = #tpu.pipeline_mode<synchronous>, transform_indices = @transform_15, window_bounds = array<i64: 1, 16>}, {pipeline_mode = #tpu.pipeline_mode<synchronous>, transform_indices = @transform_16, window_bounds = array<i64: 8, 32>}, {pipeline_mode = #tpu.pipeline_mode<synchronous>, transform_indices = @transform_17, window_bounds = array<i64: 1, 32>}, {pipeline_mode = #tpu.pipeline_mode<synchronous>, transform_indices = @transform_18, window_bounds = array<i64: 32, 16>}, {pipeline_mode = #tpu.pipeline_mode<synchronous>, transform_indices = @transform_19, window_bounds = array<i64: 1, 16>}, {transform_indices = @transform_20, window_bounds = array<i64: 8, 128>}]} {
    %c0 = arith.constant 0 : index
    %c0_0 = arith.constant 0 : index
    %0 = vector.load %arg1[%c0, %c0_0] : memref<8x8xf32, #tpu.memory_space<vmem>>, vector<8x8xf32>
    %c0_1 = arith.constant 0 : index
    %c0_2 = arith.constant 0 : index
    %1 = vector.load %arg3[%c0_1, %c0_2] : memref<8x32xf32, #tpu.memory_space<vmem>>, vector<8x32xf32>
    %c0_3 = arith.constant 0 : index
    %c0_4 = arith.constant 0 : index
    %2 = vector.load %arg4[%c0_3, %c0_4] : memref<1x32xf32, #tpu.memory_space<vmem>>, vector<1x32xf32>
    %c0_5 = arith.constant 0 : index
    %c0_6 = arith.constant 0 : index
    %3 = vector.load %arg5[%c0_5, %c0_6] : memref<32x8xf32, #tpu.memory_space<vmem>>, vector<32x8xf32>
    %c0_7 = arith.constant 0 : index
    %c0_8 = arith.constant 0 : index
    %4 = vector.load %arg6[%c0_7, %c0_8] : memref<1x8xf32, #tpu.memory_space<vmem>>, vector<1x8xf32>
    %cst = arith.constant dense<0.000000e+00> : vector<8x32xf32>
    %5 = tpu.matmul %0, %1, %cst {dimension_numbers = #tpu.dot_dimension_numbers<[1], [0], [0], [1], [0, 0, 1, 1], [], []>} : vector<8x8xf32>, vector<8x32xf32>, vector<8x32xf32> -> vector<8x32xf32>
    %6 = vector.broadcast %2 : vector<1x32xf32> to vector<8x32xf32>
    %7 = arith.addf %5, %6 : vector<8x32xf32>
    %8 = math.tanh %7 : vector<8x32xf32>
    %cst_9 = arith.constant dense<0.000000e+00> : vector<8x8xf32>
    %9 = tpu.matmul %8, %3, %cst_9 {dimension_numbers = #tpu.dot_dimension_numbers<[1], [0], [0], [1], [0, 0, 1, 1], [], []>} : vector<8x32xf32>, vector<32x8xf32>, vector<8x8xf32> -> vector<8x8xf32>
    %10 = vector.broadcast %4 : vector<1x8xf32> to vector<8x8xf32>
    %11 = arith.addf %9, %10 : vector<8x8xf32>
    %12 = tpu.concatenate %0, %11 in 1 : vector<8x8xf32>, vector<8x8xf32> -> vector<8x16xf32>
    %c0_10 = arith.constant 0 : index
    %c0_11 = arith.constant 0 : index
    %13 = vector.load %arg7[%c0_10, %c0_11] : memref<16x32xf32, #tpu.memory_space<vmem>>, vector<16x32xf32>
    %c0_12 = arith.constant 0 : index
    %c0_13 = arith.constant 0 : index
    %14 = vector.load %arg8[%c0_12, %c0_13] : memref<1x32xf32, #tpu.memory_space<vmem>>, vector<1x32xf32>
    %c0_14 = arith.constant 0 : index
    %c0_15 = arith.constant 0 : index
    %15 = vector.load %arg9[%c0_14, %c0_15] : memref<32x16xf32, #tpu.memory_space<vmem>>, vector<32x16xf32>
    %16 = vector.shape_cast %14 : vector<1x32xf32> to vector<1x32xf32>
    %17 = vector.broadcast %16 : vector<1x32xf32> to vector<8x32xf32>
    %c0_i32 = arith.constant 0 : i32
    %cst_16 = arith.constant dense<0.000000e+00> : vector<8x32xf32>
    %18 = tpu.matmul %12, %13, %cst_16 {dimension_numbers = #tpu.dot_dimension_numbers<[1], [0], [0], [1], [0, 0, 1, 1], [], []>} : vector<8x16xf32>, vector<16x32xf32>, vector<8x32xf32> -> vector<8x32xf32>
    %19 = arith.addf %18, %17 : vector<8x32xf32>
    %20 = math.tanh %19 : vector<8x32xf32>
    %21 = arith.mulf %20, %20 : vector<8x32xf32>
    %cst_17 = arith.constant 1.000000e+00 : f32
    %22 = vector.broadcast %cst_17 : f32 to vector<8x32xf32>
    %23 = arith.subf %22, %21 : vector<8x32xf32>
    %cst_18 = arith.constant dense<0.000000e+00> : vector<8x16xf32>
    %24 = tpu.matmul %23, %15, %cst_18 {dimension_numbers = #tpu.dot_dimension_numbers<[1], [0], [0], [1], [0, 0, 1, 1], [], []>} : vector<8x32xf32>, vector<32x16xf32>, vector<8x16xf32> -> vector<8x16xf32>
    %cst_19 = arith.constant 6.250000e-02 : f32
    %25 = vector.broadcast %cst_19 : f32 to vector<8x16xf32>
    %26 = arith.mulf %25, %24 : vector<8x16xf32>
    %27 = arith.addf %12, %26 : vector<8x16xf32>
    %cst_20 = arith.constant dense<0.000000e+00> : vector<8x32xf32>
    %28 = tpu.matmul %27, %13, %cst_20 {dimension_numbers = #tpu.dot_dimension_numbers<[1], [0], [0], [1], [0, 0, 1, 1], [], []>} : vector<8x16xf32>, vector<16x32xf32>, vector<8x32xf32> -> vector<8x32xf32>
    %29 = arith.addf %28, %17 : vector<8x32xf32>
    %30 = math.tanh %29 : vector<8x32xf32>
    %31 = arith.mulf %30, %30 : vector<8x32xf32>
    %cst_21 = arith.constant 1.000000e+00 : f32
    %32 = vector.broadcast %cst_21 : f32 to vector<8x32xf32>
    %33 = arith.subf %32, %31 : vector<8x32xf32>
    %cst_22 = arith.constant dense<0.000000e+00> : vector<8x16xf32>
    %34 = tpu.matmul %33, %15, %cst_22 {dimension_numbers = #tpu.dot_dimension_numbers<[1], [0], [0], [1], [0, 0, 1, 1], [], []>} : vector<8x32xf32>, vector<32x16xf32>, vector<8x16xf32> -> vector<8x16xf32>
    %cst_23 = arith.constant 6.250000e-02 : f32
    %35 = vector.broadcast %cst_23 : f32 to vector<8x16xf32>
    %36 = arith.mulf %35, %34 : vector<8x16xf32>
    %37 = arith.addf %12, %36 : vector<8x16xf32>
    %cst_24 = arith.constant dense<0.000000e+00> : vector<8x32xf32>
    %38 = tpu.matmul %37, %13, %cst_24 {dimension_numbers = #tpu.dot_dimension_numbers<[1], [0], [0], [1], [0, 0, 1, 1], [], []>} : vector<8x16xf32>, vector<16x32xf32>, vector<8x32xf32> -> vector<8x32xf32>
    %39 = arith.addf %38, %17 : vector<8x32xf32>
    %40 = math.tanh %39 : vector<8x32xf32>
    %41 = arith.mulf %40, %40 : vector<8x32xf32>
    %cst_25 = arith.constant 1.000000e+00 : f32
    %42 = vector.broadcast %cst_25 : f32 to vector<8x32xf32>
    %43 = arith.subf %42, %41 : vector<8x32xf32>
    %cst_26 = arith.constant dense<0.000000e+00> : vector<8x16xf32>
    %44 = tpu.matmul %43, %15, %cst_26 {dimension_numbers = #tpu.dot_dimension_numbers<[1], [0], [0], [1], [0, 0, 1, 1], [], []>} : vector<8x32xf32>, vector<32x16xf32>, vector<8x16xf32> -> vector<8x16xf32>
    %cst_27 = arith.constant 1.250000e-01 : f32
    %45 = vector.broadcast %cst_27 : f32 to vector<8x16xf32>
    %46 = arith.mulf %45, %44 : vector<8x16xf32>
    %47 = arith.addf %12, %46 : vector<8x16xf32>
    %cst_28 = arith.constant dense<0.000000e+00> : vector<8x32xf32>
    %48 = tpu.matmul %47, %13, %cst_28 {dimension_numbers = #tpu.dot_dimension_numbers<[1], [0], [0], [1], [0, 0, 1, 1], [], []>} : vector<8x16xf32>, vector<16x32xf32>, vector<8x32xf32> -> vector<8x32xf32>
    %49 = arith.addf %48, %17 : vector<8x32xf32>
    %50 = math.tanh %49 : vector<8x32xf32>
    %51 = arith.mulf %50, %50 : vector<8x32xf32>
    %cst_29 = arith.constant 1.000000e+00 : f32
    %52 = vector.broadcast %cst_29 : f32 to vector<8x32xf32>
    %53 = arith.subf %52, %51 : vector<8x32xf32>
    %cst_30 = arith.constant dense<0.000000e+00> : vector<8x16xf32>
    %54 = tpu.matmul %53, %15, %cst_30 {dimension_numbers = #tpu.dot_dimension_numbers<[1], [0], [0], [1], [0, 0, 1, 1], [], []>} : vector<8x32xf32>, vector<32x16xf32>, vector<8x16xf32> -> vector<8x16xf32>
    %cst_31 = arith.constant 2.000000e+00 : f32
    %55 = vector.broadcast %cst_31 : f32 to vector<8x16xf32>
    %56 = arith.mulf %55, %34 : vector<8x16xf32>
    %57 = arith.addf %24, %56 : vector<8x16xf32>
    %cst_32 = arith.constant 2.000000e+00 : f32
    %58 = vector.broadcast %cst_32 : f32 to vector<8x16xf32>
    %59 = arith.mulf %58, %44 : vector<8x16xf32>
    %60 = arith.addf %57, %59 : vector<8x16xf32>
    %61 = arith.addf %60, %54 : vector<8x16xf32>
    %cst_33 = arith.constant 0.020833334 : f32
    %62 = vector.broadcast %cst_33 : f32 to vector<8x16xf32>
    %63 = arith.mulf %62, %61 : vector<8x16xf32>
    %64 = arith.addf %12, %63 : vector<8x16xf32>
    %c1_i32 = arith.constant 1 : i32
    %cst_34 = arith.constant dense<0.000000e+00> : vector<8x32xf32>
    %65 = tpu.matmul %64, %13, %cst_34 {dimension_numbers = #tpu.dot_dimension_numbers<[1], [0], [0], [1], [0, 0, 1, 1], [], []>} : vector<8x16xf32>, vector<16x32xf32>, vector<8x32xf32> -> vector<8x32xf32>
    %66 = arith.addf %65, %17 : vector<8x32xf32>
    %67 = math.tanh %66 : vector<8x32xf32>
    %68 = arith.mulf %67, %67 : vector<8x32xf32>
    %cst_35 = arith.constant 1.000000e+00 : f32
    %69 = vector.broadcast %cst_35 : f32 to vector<8x32xf32>
    %70 = arith.subf %69, %68 : vector<8x32xf32>
    %cst_36 = arith.constant dense<0.000000e+00> : vector<8x16xf32>
    %71 = tpu.matmul %70, %15, %cst_36 {dimension_numbers = #tpu.dot_dimension_numbers<[1], [0], [0], [1], [0, 0, 1, 1], [], []>} : vector<8x32xf32>, vector<32x16xf32>, vector<8x16xf32> -> vector<8x16xf32>
    %cst_37 = arith.constant 6.250000e-02 : f32
    %72 = vector.broadcast %cst_37 : f32 to vector<8x16xf32>
    %73 = arith.mulf %72, %71 : vector<8x16xf32>
    %74 = arith.addf %64, %73 : vector<8x16xf32>
    %cst_38 = arith.constant dense<0.000000e+00> : vector<8x32xf32>
    %75 = tpu.matmul %74, %13, %cst_38 {dimension_numbers = #tpu.dot_dimension_numbers<[1], [0], [0], [1], [0, 0, 1, 1], [], []>} : vector<8x16xf32>, vector<16x32xf32>, vector<8x32xf32> -> vector<8x32xf32>
    %76 = arith.addf %75, %17 : vector<8x32xf32>
    %77 = math.tanh %76 : vector<8x32xf32>
    %78 = arith.mulf %77, %77 : vector<8x32xf32>
    %cst_39 = arith.constant 1.000000e+00 : f32
    %79 = vector.broadcast %cst_39 : f32 to vector<8x32xf32>
    %80 = arith.subf %79, %78 : vector<8x32xf32>
    %cst_40 = arith.constant dense<0.000000e+00> : vector<8x16xf32>
    %81 = tpu.matmul %80, %15, %cst_40 {dimension_numbers = #tpu.dot_dimension_numbers<[1], [0], [0], [1], [0, 0, 1, 1], [], []>} : vector<8x32xf32>, vector<32x16xf32>, vector<8x16xf32> -> vector<8x16xf32>
    %cst_41 = arith.constant 6.250000e-02 : f32
    %82 = vector.broadcast %cst_41 : f32 to vector<8x16xf32>
    %83 = arith.mulf %82, %81 : vector<8x16xf32>
    %84 = arith.addf %64, %83 : vector<8x16xf32>
    %cst_42 = arith.constant dense<0.000000e+00> : vector<8x32xf32>
    %85 = tpu.matmul %84, %13, %cst_42 {dimension_numbers = #tpu.dot_dimension_numbers<[1], [0], [0], [1], [0, 0, 1, 1], [], []>} : vector<8x16xf32>, vector<16x32xf32>, vector<8x32xf32> -> vector<8x32xf32>
    %86 = arith.addf %85, %17 : vector<8x32xf32>
    %87 = math.tanh %86 : vector<8x32xf32>
    %88 = arith.mulf %87, %87 : vector<8x32xf32>
    %cst_43 = arith.constant 1.000000e+00 : f32
    %89 = vector.broadcast %cst_43 : f32 to vector<8x32xf32>
    %90 = arith.subf %89, %88 : vector<8x32xf32>
    %cst_44 = arith.constant dense<0.000000e+00> : vector<8x16xf32>
    %91 = tpu.matmul %90, %15, %cst_44 {dimension_numbers = #tpu.dot_dimension_numbers<[1], [0], [0], [1], [0, 0, 1, 1], [], []>} : vector<8x32xf32>, vector<32x16xf32>, vector<8x16xf32> -> vector<8x16xf32>
    %cst_45 = arith.constant 1.250000e-01 : f32
    %92 = vector.broadcast %cst_45 : f32 to vector<8x16xf32>
    %93 = arith.mulf %92, %91 : vector<8x16xf32>
    %94 = arith.addf %64, %93 : vector<8x16xf32>
    %cst_46 = arith.constant dense<0.000000e+00> : vector<8x32xf32>
    %95 = tpu.matmul %94, %13, %cst_46 {dimension_numbers = #tpu.dot_dimension_numbers<[1], [0], [0], [1], [0, 0, 1, 1], [], []>} : vector<8x16xf32>, vector<16x32xf32>, vector<8x32xf32> -> vector<8x32xf32>
    %96 = arith.addf %95, %17 : vector<8x32xf32>
    %97 = math.tanh %96 : vector<8x32xf32>
    %98 = arith.mulf %97, %97 : vector<8x32xf32>
    %cst_47 = arith.constant 1.000000e+00 : f32
    %99 = vector.broadcast %cst_47 : f32 to vector<8x32xf32>
    %100 = arith.subf %99, %98 : vector<8x32xf32>
    %cst_48 = arith.constant dense<0.000000e+00> : vector<8x16xf32>
    %101 = tpu.matmul %100, %15, %cst_48 {dimension_numbers = #tpu.dot_dimension_numbers<[1], [0], [0], [1], [0, 0, 1, 1], [], []>} : vector<8x32xf32>, vector<32x16xf32>, vector<8x16xf32> -> vector<8x16xf32>
    %cst_49 = arith.constant 2.000000e+00 : f32
    %102 = vector.broadcast %cst_49 : f32 to vector<8x16xf32>
    %103 = arith.mulf %102, %81 : vector<8x16xf32>
    %104 = arith.addf %71, %103 : vector<8x16xf32>
    %cst_50 = arith.constant 2.000000e+00 : f32
    %105 = vector.broadcast %cst_50 : f32 to vector<8x16xf32>
    %106 = arith.mulf %105, %91 : vector<8x16xf32>
    %107 = arith.addf %104, %106 : vector<8x16xf32>
    %108 = arith.addf %107, %101 : vector<8x16xf32>
    %cst_51 = arith.constant 0.020833334 : f32
    %109 = vector.broadcast %cst_51 : f32 to vector<8x16xf32>
    %110 = arith.mulf %109, %108 : vector<8x16xf32>
    %111 = arith.addf %64, %110 : vector<8x16xf32>
    %c2_i32 = arith.constant 2 : i32
    %cst_52 = arith.constant dense<0.000000e+00> : vector<8x32xf32>
    %112 = tpu.matmul %111, %13, %cst_52 {dimension_numbers = #tpu.dot_dimension_numbers<[1], [0], [0], [1], [0, 0, 1, 1], [], []>} : vector<8x16xf32>, vector<16x32xf32>, vector<8x32xf32> -> vector<8x32xf32>
    %113 = arith.addf %112, %17 : vector<8x32xf32>
    %114 = math.tanh %113 : vector<8x32xf32>
    %115 = arith.mulf %114, %114 : vector<8x32xf32>
    %cst_53 = arith.constant 1.000000e+00 : f32
    %116 = vector.broadcast %cst_53 : f32 to vector<8x32xf32>
    %117 = arith.subf %116, %115 : vector<8x32xf32>
    %cst_54 = arith.constant dense<0.000000e+00> : vector<8x16xf32>
    %118 = tpu.matmul %117, %15, %cst_54 {dimension_numbers = #tpu.dot_dimension_numbers<[1], [0], [0], [1], [0, 0, 1, 1], [], []>} : vector<8x32xf32>, vector<32x16xf32>, vector<8x16xf32> -> vector<8x16xf32>
    %cst_55 = arith.constant 6.250000e-02 : f32
    %119 = vector.broadcast %cst_55 : f32 to vector<8x16xf32>
    %120 = arith.mulf %119, %118 : vector<8x16xf32>
    %121 = arith.addf %111, %120 : vector<8x16xf32>
    %cst_56 = arith.constant dense<0.000000e+00> : vector<8x32xf32>
    %122 = tpu.matmul %121, %13, %cst_56 {dimension_numbers = #tpu.dot_dimension_numbers<[1], [0], [0], [1], [0, 0, 1, 1], [], []>} : vector<8x16xf32>, vector<16x32xf32>, vector<8x32xf32> -> vector<8x32xf32>
    %123 = arith.addf %122, %17 : vector<8x32xf32>
    %124 = math.tanh %123 : vector<8x32xf32>
    %125 = arith.mulf %124, %124 : vector<8x32xf32>
    %cst_57 = arith.constant 1.000000e+00 : f32
    %126 = vector.broadcast %cst_57 : f32 to vector<8x32xf32>
    %127 = arith.subf %126, %125 : vector<8x32xf32>
    %cst_58 = arith.constant dense<0.000000e+00> : vector<8x16xf32>
    %128 = tpu.matmul %127, %15, %cst_58 {dimension_numbers = #tpu.dot_dimension_numbers<[1], [0], [0], [1], [0, 0, 1, 1], [], []>} : vector<8x32xf32>, vector<32x16xf32>, vector<8x16xf32> -> vector<8x16xf32>
    %cst_59 = arith.constant 6.250000e-02 : f32
    %129 = vector.broadcast %cst_59 : f32 to vector<8x16xf32>
    %130 = arith.mulf %129, %128 : vector<8x16xf32>
    %131 = arith.addf %111, %130 : vector<8x16xf32>
    %cst_60 = arith.constant dense<0.000000e+00> : vector<8x32xf32>
    %132 = tpu.matmul %131, %13, %cst_60 {dimension_numbers = #tpu.dot_dimension_numbers<[1], [0], [0], [1], [0, 0, 1, 1], [], []>} : vector<8x16xf32>, vector<16x32xf32>, vector<8x32xf32> -> vector<8x32xf32>
    %133 = arith.addf %132, %17 : vector<8x32xf32>
    %134 = math.tanh %133 : vector<8x32xf32>
    %135 = arith.mulf %134, %134 : vector<8x32xf32>
    %cst_61 = arith.constant 1.000000e+00 : f32
    %136 = vector.broadcast %cst_61 : f32 to vector<8x32xf32>
    %137 = arith.subf %136, %135 : vector<8x32xf32>
    %cst_62 = arith.constant dense<0.000000e+00> : vector<8x16xf32>
    %138 = tpu.matmul %137, %15, %cst_62 {dimension_numbers = #tpu.dot_dimension_numbers<[1], [0], [0], [1], [0, 0, 1, 1], [], []>} : vector<8x32xf32>, vector<32x16xf32>, vector<8x16xf32> -> vector<8x16xf32>
    %cst_63 = arith.constant 1.250000e-01 : f32
    %139 = vector.broadcast %cst_63 : f32 to vector<8x16xf32>
    %140 = arith.mulf %139, %138 : vector<8x16xf32>
    %141 = arith.addf %111, %140 : vector<8x16xf32>
    %cst_64 = arith.constant dense<0.000000e+00> : vector<8x32xf32>
    %142 = tpu.matmul %141, %13, %cst_64 {dimension_numbers = #tpu.dot_dimension_numbers<[1], [0], [0], [1], [0, 0, 1, 1], [], []>} : vector<8x16xf32>, vector<16x32xf32>, vector<8x32xf32> -> vector<8x32xf32>
    %143 = arith.addf %142, %17 : vector<8x32xf32>
    %144 = math.tanh %143 : vector<8x32xf32>
    %145 = arith.mulf %144, %144 : vector<8x32xf32>
    %cst_65 = arith.constant 1.000000e+00 : f32
    %146 = vector.broadcast %cst_65 : f32 to vector<8x32xf32>
    %147 = arith.subf %146, %145 : vector<8x32xf32>
    %cst_66 = arith.constant dense<0.000000e+00> : vector<8x16xf32>
    %148 = tpu.matmul %147, %15, %cst_66 {dimension_numbers = #tpu.dot_dimension_numbers<[1], [0], [0], [1], [0, 0, 1, 1], [], []>} : vector<8x32xf32>, vector<32x16xf32>, vector<8x16xf32> -> vector<8x16xf32>
    %cst_67 = arith.constant 2.000000e+00 : f32
    %149 = vector.broadcast %cst_67 : f32 to vector<8x16xf32>
    %150 = arith.mulf %149, %128 : vector<8x16xf32>
    %151 = arith.addf %118, %150 : vector<8x16xf32>
    %cst_68 = arith.constant 2.000000e+00 : f32
    %152 = vector.broadcast %cst_68 : f32 to vector<8x16xf32>
    %153 = arith.mulf %152, %138 : vector<8x16xf32>
    %154 = arith.addf %151, %153 : vector<8x16xf32>
    %155 = arith.addf %154, %148 : vector<8x16xf32>
    %cst_69 = arith.constant 0.020833334 : f32
    %156 = vector.broadcast %cst_69 : f32 to vector<8x16xf32>
    %157 = arith.mulf %156, %155 : vector<8x16xf32>
    %158 = arith.addf %111, %157 : vector<8x16xf32>
    %c3_i32 = arith.constant 3 : i32
    %cst_70 = arith.constant dense<0.000000e+00> : vector<8x32xf32>
    %159 = tpu.matmul %158, %13, %cst_70 {dimension_numbers = #tpu.dot_dimension_numbers<[1], [0], [0], [1], [0, 0, 1, 1], [], []>} : vector<8x16xf32>, vector<16x32xf32>, vector<8x32xf32> -> vector<8x32xf32>
    %160 = arith.addf %159, %17 : vector<8x32xf32>
    %161 = math.tanh %160 : vector<8x32xf32>
    %162 = arith.mulf %161, %161 : vector<8x32xf32>
    %cst_71 = arith.constant 1.000000e+00 : f32
    %163 = vector.broadcast %cst_71 : f32 to vector<8x32xf32>
    %164 = arith.subf %163, %162 : vector<8x32xf32>
    %cst_72 = arith.constant dense<0.000000e+00> : vector<8x16xf32>
    %165 = tpu.matmul %164, %15, %cst_72 {dimension_numbers = #tpu.dot_dimension_numbers<[1], [0], [0], [1], [0, 0, 1, 1], [], []>} : vector<8x32xf32>, vector<32x16xf32>, vector<8x16xf32> -> vector<8x16xf32>
    %cst_73 = arith.constant 6.250000e-02 : f32
    %166 = vector.broadcast %cst_73 : f32 to vector<8x16xf32>
    %167 = arith.mulf %166, %165 : vector<8x16xf32>
    %168 = arith.addf %158, %167 : vector<8x16xf32>
    %cst_74 = arith.constant dense<0.000000e+00> : vector<8x32xf32>
    %169 = tpu.matmul %168, %13, %cst_74 {dimension_numbers = #tpu.dot_dimension_numbers<[1], [0], [0], [1], [0, 0, 1, 1], [], []>} : vector<8x16xf32>, vector<16x32xf32>, vector<8x32xf32> -> vector<8x32xf32>
    %170 = arith.addf %169, %17 : vector<8x32xf32>
    %171 = math.tanh %170 : vector<8x32xf32>
    %172 = arith.mulf %171, %171 : vector<8x32xf32>
    %cst_75 = arith.constant 1.000000e+00 : f32
    %173 = vector.broadcast %cst_75 : f32 to vector<8x32xf32>
    %174 = arith.subf %173, %172 : vector<8x32xf32>
    %cst_76 = arith.constant dense<0.000000e+00> : vector<8x16xf32>
    %175 = tpu.matmul %174, %15, %cst_76 {dimension_numbers = #tpu.dot_dimension_numbers<[1], [0], [0], [1], [0, 0, 1, 1], [], []>} : vector<8x32xf32>, vector<32x16xf32>, vector<8x16xf32> -> vector<8x16xf32>
    %cst_77 = arith.constant 6.250000e-02 : f32
    %176 = vector.broadcast %cst_77 : f32 to vector<8x16xf32>
    %177 = arith.mulf %176, %175 : vector<8x16xf32>
    %178 = arith.addf %158, %177 : vector<8x16xf32>
    %cst_78 = arith.constant dense<0.000000e+00> : vector<8x32xf32>
    %179 = tpu.matmul %178, %13, %cst_78 {dimension_numbers = #tpu.dot_dimension_numbers<[1], [0], [0], [1], [0, 0, 1, 1], [], []>} : vector<8x16xf32>, vector<16x32xf32>, vector<8x32xf32> -> vector<8x32xf32>
    %180 = arith.addf %179, %17 : vector<8x32xf32>
    %181 = math.tanh %180 : vector<8x32xf32>
    %182 = arith.mulf %181, %181 : vector<8x32xf32>
    %cst_79 = arith.constant 1.000000e+00 : f32
    %183 = vector.broadcast %cst_79 : f32 to vector<8x32xf32>
    %184 = arith.subf %183, %182 : vector<8x32xf32>
    %cst_80 = arith.constant dense<0.000000e+00> : vector<8x16xf32>
    %185 = tpu.matmul %184, %15, %cst_80 {dimension_numbers = #tpu.dot_dimension_numbers<[1], [0], [0], [1], [0, 0, 1, 1], [], []>} : vector<8x32xf32>, vector<32x16xf32>, vector<8x16xf32> -> vector<8x16xf32>
    %cst_81 = arith.constant 1.250000e-01 : f32
    %186 = vector.broadcast %cst_81 : f32 to vector<8x16xf32>
    %187 = arith.mulf %186, %185 : vector<8x16xf32>
    %188 = arith.addf %158, %187 : vector<8x16xf32>
    %cst_82 = arith.constant dense<0.000000e+00> : vector<8x32xf32>
    %189 = tpu.matmul %188, %13, %cst_82 {dimension_numbers = #tpu.dot_dimension_numbers<[1], [0], [0], [1], [0, 0, 1, 1], [], []>} : vector<8x16xf32>, vector<16x32xf32>, vector<8x32xf32> -> vector<8x32xf32>
    %190 = arith.addf %189, %17 : vector<8x32xf32>
    %191 = math.tanh %190 : vector<8x32xf32>
    %192 = arith.mulf %191, %191 : vector<8x32xf32>
    %cst_83 = arith.constant 1.000000e+00 : f32
    %193 = vector.broadcast %cst_83 : f32 to vector<8x32xf32>
    %194 = arith.subf %193, %192 : vector<8x32xf32>
    %cst_84 = arith.constant dense<0.000000e+00> : vector<8x16xf32>
    %195 = tpu.matmul %194, %15, %cst_84 {dimension_numbers = #tpu.dot_dimension_numbers<[1], [0], [0], [1], [0, 0, 1, 1], [], []>} : vector<8x32xf32>, vector<32x16xf32>, vector<8x16xf32> -> vector<8x16xf32>
    %cst_85 = arith.constant 2.000000e+00 : f32
    %196 = vector.broadcast %cst_85 : f32 to vector<8x16xf32>
    %197 = arith.mulf %196, %175 : vector<8x16xf32>
    %198 = arith.addf %165, %197 : vector<8x16xf32>
    %cst_86 = arith.constant 2.000000e+00 : f32
    %199 = vector.broadcast %cst_86 : f32 to vector<8x16xf32>
    %200 = arith.mulf %199, %185 : vector<8x16xf32>
    %201 = arith.addf %198, %200 : vector<8x16xf32>
    %202 = arith.addf %201, %195 : vector<8x16xf32>
    %cst_87 = arith.constant 0.020833334 : f32
    %203 = vector.broadcast %cst_87 : f32 to vector<8x16xf32>
    %204 = arith.mulf %203, %202 : vector<8x16xf32>
    %205 = arith.addf %158, %204 : vector<8x16xf32>
    %c4_i32 = arith.constant 4 : i32
    %cst_88 = arith.constant dense<0.000000e+00> : vector<8x32xf32>
    %206 = tpu.matmul %205, %13, %cst_88 {dimension_numbers = #tpu.dot_dimension_numbers<[1], [0], [0], [1], [0, 0, 1, 1], [], []>} : vector<8x16xf32>, vector<16x32xf32>, vector<8x32xf32> -> vector<8x32xf32>
    %207 = arith.addf %206, %17 : vector<8x32xf32>
    %208 = math.tanh %207 : vector<8x32xf32>
    %209 = arith.mulf %208, %208 : vector<8x32xf32>
    %cst_89 = arith.constant 1.000000e+00 : f32
    %210 = vector.broadcast %cst_89 : f32 to vector<8x32xf32>
    %211 = arith.subf %210, %209 : vector<8x32xf32>
    %cst_90 = arith.constant dense<0.000000e+00> : vector<8x16xf32>
    %212 = tpu.matmul %211, %15, %cst_90 {dimension_numbers = #tpu.dot_dimension_numbers<[1], [0], [0], [1], [0, 0, 1, 1], [], []>} : vector<8x32xf32>, vector<32x16xf32>, vector<8x16xf32> -> vector<8x16xf32>
    %cst_91 = arith.constant 6.250000e-02 : f32
    %213 = vector.broadcast %cst_91 : f32 to vector<8x16xf32>
    %214 = arith.mulf %213, %212 : vector<8x16xf32>
    %215 = arith.addf %205, %214 : vector<8x16xf32>
    %cst_92 = arith.constant dense<0.000000e+00> : vector<8x32xf32>
    %216 = tpu.matmul %215, %13, %cst_92 {dimension_numbers = #tpu.dot_dimension_numbers<[1], [0], [0], [1], [0, 0, 1, 1], [], []>} : vector<8x16xf32>, vector<16x32xf32>, vector<8x32xf32> -> vector<8x32xf32>
    %217 = arith.addf %216, %17 : vector<8x32xf32>
    %218 = math.tanh %217 : vector<8x32xf32>
    %219 = arith.mulf %218, %218 : vector<8x32xf32>
    %cst_93 = arith.constant 1.000000e+00 : f32
    %220 = vector.broadcast %cst_93 : f32 to vector<8x32xf32>
    %221 = arith.subf %220, %219 : vector<8x32xf32>
    %cst_94 = arith.constant dense<0.000000e+00> : vector<8x16xf32>
    %222 = tpu.matmul %221, %15, %cst_94 {dimension_numbers = #tpu.dot_dimension_numbers<[1], [0], [0], [1], [0, 0, 1, 1], [], []>} : vector<8x32xf32>, vector<32x16xf32>, vector<8x16xf32> -> vector<8x16xf32>
    %cst_95 = arith.constant 6.250000e-02 : f32
    %223 = vector.broadcast %cst_95 : f32 to vector<8x16xf32>
    %224 = arith.mulf %223, %222 : vector<8x16xf32>
    %225 = arith.addf %205, %224 : vector<8x16xf32>
    %cst_96 = arith.constant dense<0.000000e+00> : vector<8x32xf32>
    %226 = tpu.matmul %225, %13, %cst_96 {dimension_numbers = #tpu.dot_dimension_numbers<[1], [0], [0], [1], [0, 0, 1, 1], [], []>} : vector<8x16xf32>, vector<16x32xf32>, vector<8x32xf32> -> vector<8x32xf32>
    %227 = arith.addf %226, %17 : vector<8x32xf32>
    %228 = math.tanh %227 : vector<8x32xf32>
    %229 = arith.mulf %228, %228 : vector<8x32xf32>
    %cst_97 = arith.constant 1.000000e+00 : f32
    %230 = vector.broadcast %cst_97 : f32 to vector<8x32xf32>
    %231 = arith.subf %230, %229 : vector<8x32xf32>
    %cst_98 = arith.constant dense<0.000000e+00> : vector<8x16xf32>
    %232 = tpu.matmul %231, %15, %cst_98 {dimension_numbers = #tpu.dot_dimension_numbers<[1], [0], [0], [1], [0, 0, 1, 1], [], []>} : vector<8x32xf32>, vector<32x16xf32>, vector<8x16xf32> -> vector<8x16xf32>
    %cst_99 = arith.constant 1.250000e-01 : f32
    %233 = vector.broadcast %cst_99 : f32 to vector<8x16xf32>
    %234 = arith.mulf %233, %232 : vector<8x16xf32>
    %235 = arith.addf %205, %234 : vector<8x16xf32>
    %cst_100 = arith.constant dense<0.000000e+00> : vector<8x32xf32>
    %236 = tpu.matmul %235, %13, %cst_100 {dimension_numbers = #tpu.dot_dimension_numbers<[1], [0], [0], [1], [0, 0, 1, 1], [], []>} : vector<8x16xf32>, vector<16x32xf32>, vector<8x32xf32> -> vector<8x32xf32>
    %237 = arith.addf %236, %17 : vector<8x32xf32>
    %238 = math.tanh %237 : vector<8x32xf32>
    %239 = arith.mulf %238, %238 : vector<8x32xf32>
    %cst_101 = arith.constant 1.000000e+00 : f32
    %240 = vector.broadcast %cst_101 : f32 to vector<8x32xf32>
    %241 = arith.subf %240, %239 : vector<8x32xf32>
    %cst_102 = arith.constant dense<0.000000e+00> : vector<8x16xf32>
    %242 = tpu.matmul %241, %15, %cst_102 {dimension_numbers = #tpu.dot_dimension_numbers<[1], [0], [0], [1], [0, 0, 1, 1], [], []>} : vector<8x32xf32>, vector<32x16xf32>, vector<8x16xf32> -> vector<8x16xf32>
    %cst_103 = arith.constant 2.000000e+00 : f32
    %243 = vector.broadcast %cst_103 : f32 to vector<8x16xf32>
    %244 = arith.mulf %243, %222 : vector<8x16xf32>
    %245 = arith.addf %212, %244 : vector<8x16xf32>
    %cst_104 = arith.constant 2.000000e+00 : f32
    %246 = vector.broadcast %cst_104 : f32 to vector<8x16xf32>
    %247 = arith.mulf %246, %232 : vector<8x16xf32>
    %248 = arith.addf %245, %247 : vector<8x16xf32>
    %249 = arith.addf %248, %242 : vector<8x16xf32>
    %cst_105 = arith.constant 0.020833334 : f32
    %250 = vector.broadcast %cst_105 : f32 to vector<8x16xf32>
    %251 = arith.mulf %250, %249 : vector<8x16xf32>
    %252 = arith.addf %205, %251 : vector<8x16xf32>
    %c5_i32 = arith.constant 5 : i32
    %cst_106 = arith.constant dense<0.000000e+00> : vector<8x32xf32>
    %253 = tpu.matmul %252, %13, %cst_106 {dimension_numbers = #tpu.dot_dimension_numbers<[1], [0], [0], [1], [0, 0, 1, 1], [], []>} : vector<8x16xf32>, vector<16x32xf32>, vector<8x32xf32> -> vector<8x32xf32>
    %254 = arith.addf %253, %17 : vector<8x32xf32>
    %255 = math.tanh %254 : vector<8x32xf32>
    %256 = arith.mulf %255, %255 : vector<8x32xf32>
    %cst_107 = arith.constant 1.000000e+00 : f32
    %257 = vector.broadcast %cst_107 : f32 to vector<8x32xf32>
    %258 = arith.subf %257, %256 : vector<8x32xf32>
    %cst_108 = arith.constant dense<0.000000e+00> : vector<8x16xf32>
    %259 = tpu.matmul %258, %15, %cst_108 {dimension_numbers = #tpu.dot_dimension_numbers<[1], [0], [0], [1], [0, 0, 1, 1], [], []>} : vector<8x32xf32>, vector<32x16xf32>, vector<8x16xf32> -> vector<8x16xf32>
    %cst_109 = arith.constant 6.250000e-02 : f32
    %260 = vector.broadcast %cst_109 : f32 to vector<8x16xf32>
    %261 = arith.mulf %260, %259 : vector<8x16xf32>
    %262 = arith.addf %252, %261 : vector<8x16xf32>
    %cst_110 = arith.constant dense<0.000000e+00> : vector<8x32xf32>
    %263 = tpu.matmul %262, %13, %cst_110 {dimension_numbers = #tpu.dot_dimension_numbers<[1], [0], [0], [1], [0, 0, 1, 1], [], []>} : vector<8x16xf32>, vector<16x32xf32>, vector<8x32xf32> -> vector<8x32xf32>
    %264 = arith.addf %263, %17 : vector<8x32xf32>
    %265 = math.tanh %264 : vector<8x32xf32>
    %266 = arith.mulf %265, %265 : vector<8x32xf32>
    %cst_111 = arith.constant 1.000000e+00 : f32
    %267 = vector.broadcast %cst_111 : f32 to vector<8x32xf32>
    %268 = arith.subf %267, %266 : vector<8x32xf32>
    %cst_112 = arith.constant dense<0.000000e+00> : vector<8x16xf32>
    %269 = tpu.matmul %268, %15, %cst_112 {dimension_numbers = #tpu.dot_dimension_numbers<[1], [0], [0], [1], [0, 0, 1, 1], [], []>} : vector<8x32xf32>, vector<32x16xf32>, vector<8x16xf32> -> vector<8x16xf32>
    %cst_113 = arith.constant 6.250000e-02 : f32
    %270 = vector.broadcast %cst_113 : f32 to vector<8x16xf32>
    %271 = arith.mulf %270, %269 : vector<8x16xf32>
    %272 = arith.addf %252, %271 : vector<8x16xf32>
    %cst_114 = arith.constant dense<0.000000e+00> : vector<8x32xf32>
    %273 = tpu.matmul %272, %13, %cst_114 {dimension_numbers = #tpu.dot_dimension_numbers<[1], [0], [0], [1], [0, 0, 1, 1], [], []>} : vector<8x16xf32>, vector<16x32xf32>, vector<8x32xf32> -> vector<8x32xf32>
    %274 = arith.addf %273, %17 : vector<8x32xf32>
    %275 = math.tanh %274 : vector<8x32xf32>
    %276 = arith.mulf %275, %275 : vector<8x32xf32>
    %cst_115 = arith.constant 1.000000e+00 : f32
    %277 = vector.broadcast %cst_115 : f32 to vector<8x32xf32>
    %278 = arith.subf %277, %276 : vector<8x32xf32>
    %cst_116 = arith.constant dense<0.000000e+00> : vector<8x16xf32>
    %279 = tpu.matmul %278, %15, %cst_116 {dimension_numbers = #tpu.dot_dimension_numbers<[1], [0], [0], [1], [0, 0, 1, 1], [], []>} : vector<8x32xf32>, vector<32x16xf32>, vector<8x16xf32> -> vector<8x16xf32>
    %cst_117 = arith.constant 1.250000e-01 : f32
    %280 = vector.broadcast %cst_117 : f32 to vector<8x16xf32>
    %281 = arith.mulf %280, %279 : vector<8x16xf32>
    %282 = arith.addf %252, %281 : vector<8x16xf32>
    %cst_118 = arith.constant dense<0.000000e+00> : vector<8x32xf32>
    %283 = tpu.matmul %282, %13, %cst_118 {dimension_numbers = #tpu.dot_dimension_numbers<[1], [0], [0], [1], [0, 0, 1, 1], [], []>} : vector<8x16xf32>, vector<16x32xf32>, vector<8x32xf32> -> vector<8x32xf32>
    %284 = arith.addf %283, %17 : vector<8x32xf32>
    %285 = math.tanh %284 : vector<8x32xf32>
    %286 = arith.mulf %285, %285 : vector<8x32xf32>
    %cst_119 = arith.constant 1.000000e+00 : f32
    %287 = vector.broadcast %cst_119 : f32 to vector<8x32xf32>
    %288 = arith.subf %287, %286 : vector<8x32xf32>
    %cst_120 = arith.constant dense<0.000000e+00> : vector<8x16xf32>
    %289 = tpu.matmul %288, %15, %cst_120 {dimension_numbers = #tpu.dot_dimension_numbers<[1], [0], [0], [1], [0, 0, 1, 1], [], []>} : vector<8x32xf32>, vector<32x16xf32>, vector<8x16xf32> -> vector<8x16xf32>
    %cst_121 = arith.constant 2.000000e+00 : f32
    %290 = vector.broadcast %cst_121 : f32 to vector<8x16xf32>
    %291 = arith.mulf %290, %269 : vector<8x16xf32>
    %292 = arith.addf %259, %291 : vector<8x16xf32>
    %cst_122 = arith.constant 2.000000e+00 : f32
    %293 = vector.broadcast %cst_122 : f32 to vector<8x16xf32>
    %294 = arith.mulf %293, %279 : vector<8x16xf32>
    %295 = arith.addf %292, %294 : vector<8x16xf32>
    %296 = arith.addf %295, %289 : vector<8x16xf32>
    %cst_123 = arith.constant 0.020833334 : f32
    %297 = vector.broadcast %cst_123 : f32 to vector<8x16xf32>
    %298 = arith.mulf %297, %296 : vector<8x16xf32>
    %299 = arith.addf %252, %298 : vector<8x16xf32>
    %c6_i32 = arith.constant 6 : i32
    %cst_124 = arith.constant dense<0.000000e+00> : vector<8x32xf32>
    %300 = tpu.matmul %299, %13, %cst_124 {dimension_numbers = #tpu.dot_dimension_numbers<[1], [0], [0], [1], [0, 0, 1, 1], [], []>} : vector<8x16xf32>, vector<16x32xf32>, vector<8x32xf32> -> vector<8x32xf32>
    %301 = arith.addf %300, %17 : vector<8x32xf32>
    %302 = math.tanh %301 : vector<8x32xf32>
    %303 = arith.mulf %302, %302 : vector<8x32xf32>
    %cst_125 = arith.constant 1.000000e+00 : f32
    %304 = vector.broadcast %cst_125 : f32 to vector<8x32xf32>
    %305 = arith.subf %304, %303 : vector<8x32xf32>
    %cst_126 = arith.constant dense<0.000000e+00> : vector<8x16xf32>
    %306 = tpu.matmul %305, %15, %cst_126 {dimension_numbers = #tpu.dot_dimension_numbers<[1], [0], [0], [1], [0, 0, 1, 1], [], []>} : vector<8x32xf32>, vector<32x16xf32>, vector<8x16xf32> -> vector<8x16xf32>
    %cst_127 = arith.constant 6.250000e-02 : f32
    %307 = vector.broadcast %cst_127 : f32 to vector<8x16xf32>
    %308 = arith.mulf %307, %306 : vector<8x16xf32>
    %309 = arith.addf %299, %308 : vector<8x16xf32>
    %cst_128 = arith.constant dense<0.000000e+00> : vector<8x32xf32>
    %310 = tpu.matmul %309, %13, %cst_128 {dimension_numbers = #tpu.dot_dimension_numbers<[1], [0], [0], [1], [0, 0, 1, 1], [], []>} : vector<8x16xf32>, vector<16x32xf32>, vector<8x32xf32> -> vector<8x32xf32>
    %311 = arith.addf %310, %17 : vector<8x32xf32>
    %312 = math.tanh %311 : vector<8x32xf32>
    %313 = arith.mulf %312, %312 : vector<8x32xf32>
    %cst_129 = arith.constant 1.000000e+00 : f32
    %314 = vector.broadcast %cst_129 : f32 to vector<8x32xf32>
    %315 = arith.subf %314, %313 : vector<8x32xf32>
    %cst_130 = arith.constant dense<0.000000e+00> : vector<8x16xf32>
    %316 = tpu.matmul %315, %15, %cst_130 {dimension_numbers = #tpu.dot_dimension_numbers<[1], [0], [0], [1], [0, 0, 1, 1], [], []>} : vector<8x32xf32>, vector<32x16xf32>, vector<8x16xf32> -> vector<8x16xf32>
    %cst_131 = arith.constant 6.250000e-02 : f32
    %317 = vector.broadcast %cst_131 : f32 to vector<8x16xf32>
    %318 = arith.mulf %317, %316 : vector<8x16xf32>
    %319 = arith.addf %299, %318 : vector<8x16xf32>
    %cst_132 = arith.constant dense<0.000000e+00> : vector<8x32xf32>
    %320 = tpu.matmul %319, %13, %cst_132 {dimension_numbers = #tpu.dot_dimension_numbers<[1], [0], [0], [1], [0, 0, 1, 1], [], []>} : vector<8x16xf32>, vector<16x32xf32>, vector<8x32xf32> -> vector<8x32xf32>
    %321 = arith.addf %320, %17 : vector<8x32xf32>
    %322 = math.tanh %321 : vector<8x32xf32>
    %323 = arith.mulf %322, %322 : vector<8x32xf32>
    %cst_133 = arith.constant 1.000000e+00 : f32
    %324 = vector.broadcast %cst_133 : f32 to vector<8x32xf32>
    %325 = arith.subf %324, %323 : vector<8x32xf32>
    %cst_134 = arith.constant dense<0.000000e+00> : vector<8x16xf32>
    %326 = tpu.matmul %325, %15, %cst_134 {dimension_numbers = #tpu.dot_dimension_numbers<[1], [0], [0], [1], [0, 0, 1, 1], [], []>} : vector<8x32xf32>, vector<32x16xf32>, vector<8x16xf32> -> vector<8x16xf32>
    %cst_135 = arith.constant 1.250000e-01 : f32
    %327 = vector.broadcast %cst_135 : f32 to vector<8x16xf32>
    %328 = arith.mulf %327, %326 : vector<8x16xf32>
    %329 = arith.addf %299, %328 : vector<8x16xf32>
    %cst_136 = arith.constant dense<0.000000e+00> : vector<8x32xf32>
    %330 = tpu.matmul %329, %13, %cst_136 {dimension_numbers = #tpu.dot_dimension_numbers<[1], [0], [0], [1], [0, 0, 1, 1], [], []>} : vector<8x16xf32>, vector<16x32xf32>, vector<8x32xf32> -> vector<8x32xf32>
    %331 = arith.addf %330, %17 : vector<8x32xf32>
    %332 = math.tanh %331 : vector<8x32xf32>
    %333 = arith.mulf %332, %332 : vector<8x32xf32>
    %cst_137 = arith.constant 1.000000e+00 : f32
    %334 = vector.broadcast %cst_137 : f32 to vector<8x32xf32>
    %335 = arith.subf %334, %333 : vector<8x32xf32>
    %cst_138 = arith.constant dense<0.000000e+00> : vector<8x16xf32>
    %336 = tpu.matmul %335, %15, %cst_138 {dimension_numbers = #tpu.dot_dimension_numbers<[1], [0], [0], [1], [0, 0, 1, 1], [], []>} : vector<8x32xf32>, vector<32x16xf32>, vector<8x16xf32> -> vector<8x16xf32>
    %cst_139 = arith.constant 2.000000e+00 : f32
    %337 = vector.broadcast %cst_139 : f32 to vector<8x16xf32>
    %338 = arith.mulf %337, %316 : vector<8x16xf32>
    %339 = arith.addf %306, %338 : vector<8x16xf32>
    %cst_140 = arith.constant 2.000000e+00 : f32
    %340 = vector.broadcast %cst_140 : f32 to vector<8x16xf32>
    %341 = arith.mulf %340, %326 : vector<8x16xf32>
    %342 = arith.addf %339, %341 : vector<8x16xf32>
    %343 = arith.addf %342, %336 : vector<8x16xf32>
    %cst_141 = arith.constant 0.020833334 : f32
    %344 = vector.broadcast %cst_141 : f32 to vector<8x16xf32>
    %345 = arith.mulf %344, %343 : vector<8x16xf32>
    %346 = arith.addf %299, %345 : vector<8x16xf32>
    %c7_i32 = arith.constant 7 : i32
    %cst_142 = arith.constant dense<0.000000e+00> : vector<8x32xf32>
    %347 = tpu.matmul %346, %13, %cst_142 {dimension_numbers = #tpu.dot_dimension_numbers<[1], [0], [0], [1], [0, 0, 1, 1], [], []>} : vector<8x16xf32>, vector<16x32xf32>, vector<8x32xf32> -> vector<8x32xf32>
    %348 = arith.addf %347, %17 : vector<8x32xf32>
    %349 = math.tanh %348 : vector<8x32xf32>
    %350 = arith.mulf %349, %349 : vector<8x32xf32>
    %cst_143 = arith.constant 1.000000e+00 : f32
    %351 = vector.broadcast %cst_143 : f32 to vector<8x32xf32>
    %352 = arith.subf %351, %350 : vector<8x32xf32>
    %cst_144 = arith.constant dense<0.000000e+00> : vector<8x16xf32>
    %353 = tpu.matmul %352, %15, %cst_144 {dimension_numbers = #tpu.dot_dimension_numbers<[1], [0], [0], [1], [0, 0, 1, 1], [], []>} : vector<8x32xf32>, vector<32x16xf32>, vector<8x16xf32> -> vector<8x16xf32>
    %cst_145 = arith.constant 6.250000e-02 : f32
    %354 = vector.broadcast %cst_145 : f32 to vector<8x16xf32>
    %355 = arith.mulf %354, %353 : vector<8x16xf32>
    %356 = arith.addf %346, %355 : vector<8x16xf32>
    %cst_146 = arith.constant dense<0.000000e+00> : vector<8x32xf32>
    %357 = tpu.matmul %356, %13, %cst_146 {dimension_numbers = #tpu.dot_dimension_numbers<[1], [0], [0], [1], [0, 0, 1, 1], [], []>} : vector<8x16xf32>, vector<16x32xf32>, vector<8x32xf32> -> vector<8x32xf32>
    %358 = arith.addf %357, %17 : vector<8x32xf32>
    %359 = math.tanh %358 : vector<8x32xf32>
    %360 = arith.mulf %359, %359 : vector<8x32xf32>
    %cst_147 = arith.constant 1.000000e+00 : f32
    %361 = vector.broadcast %cst_147 : f32 to vector<8x32xf32>
    %362 = arith.subf %361, %360 : vector<8x32xf32>
    %cst_148 = arith.constant dense<0.000000e+00> : vector<8x16xf32>
    %363 = tpu.matmul %362, %15, %cst_148 {dimension_numbers = #tpu.dot_dimension_numbers<[1], [0], [0], [1], [0, 0, 1, 1], [], []>} : vector<8x32xf32>, vector<32x16xf32>, vector<8x16xf32> -> vector<8x16xf32>
    %cst_149 = arith.constant 6.250000e-02 : f32
    %364 = vector.broadcast %cst_149 : f32 to vector<8x16xf32>
    %365 = arith.mulf %364, %363 : vector<8x16xf32>
    %366 = arith.addf %346, %365 : vector<8x16xf32>
    %cst_150 = arith.constant dense<0.000000e+00> : vector<8x32xf32>
    %367 = tpu.matmul %366, %13, %cst_150 {dimension_numbers = #tpu.dot_dimension_numbers<[1], [0], [0], [1], [0, 0, 1, 1], [], []>} : vector<8x16xf32>, vector<16x32xf32>, vector<8x32xf32> -> vector<8x32xf32>
    %368 = arith.addf %367, %17 : vector<8x32xf32>
    %369 = math.tanh %368 : vector<8x32xf32>
    %370 = arith.mulf %369, %369 : vector<8x32xf32>
    %cst_151 = arith.constant 1.000000e+00 : f32
    %371 = vector.broadcast %cst_151 : f32 to vector<8x32xf32>
    %372 = arith.subf %371, %370 : vector<8x32xf32>
    %cst_152 = arith.constant dense<0.000000e+00> : vector<8x16xf32>
    %373 = tpu.matmul %372, %15, %cst_152 {dimension_numbers = #tpu.dot_dimension_numbers<[1], [0], [0], [1], [0, 0, 1, 1], [], []>} : vector<8x32xf32>, vector<32x16xf32>, vector<8x16xf32> -> vector<8x16xf32>
    %cst_153 = arith.constant 1.250000e-01 : f32
    %374 = vector.broadcast %cst_153 : f32 to vector<8x16xf32>
    %375 = arith.mulf %374, %373 : vector<8x16xf32>
    %376 = arith.addf %346, %375 : vector<8x16xf32>
    %cst_154 = arith.constant dense<0.000000e+00> : vector<8x32xf32>
    %377 = tpu.matmul %376, %13, %cst_154 {dimension_numbers = #tpu.dot_dimension_numbers<[1], [0], [0], [1], [0, 0, 1, 1], [], []>} : vector<8x16xf32>, vector<16x32xf32>, vector<8x32xf32> -> vector<8x32xf32>
    %378 = arith.addf %377, %17 : vector<8x32xf32>
    %379 = math.tanh %378 : vector<8x32xf32>
    %380 = arith.mulf %379, %379 : vector<8x32xf32>
    %cst_155 = arith.constant 1.000000e+00 : f32
    %381 = vector.broadcast %cst_155 : f32 to vector<8x32xf32>
    %382 = arith.subf %381, %380 : vector<8x32xf32>
    %cst_156 = arith.constant dense<0.000000e+00> : vector<8x16xf32>
    %383 = tpu.matmul %382, %15, %cst_156 {dimension_numbers = #tpu.dot_dimension_numbers<[1], [0], [0], [1], [0, 0, 1, 1], [], []>} : vector<8x32xf32>, vector<32x16xf32>, vector<8x16xf32> -> vector<8x16xf32>
    %cst_157 = arith.constant 2.000000e+00 : f32
    %384 = vector.broadcast %cst_157 : f32 to vector<8x16xf32>
    %385 = arith.mulf %384, %363 : vector<8x16xf32>
    %386 = arith.addf %353, %385 : vector<8x16xf32>
    %cst_158 = arith.constant 2.000000e+00 : f32
    %387 = vector.broadcast %cst_158 : f32 to vector<8x16xf32>
    %388 = arith.mulf %387, %373 : vector<8x16xf32>
    %389 = arith.addf %386, %388 : vector<8x16xf32>
    %390 = arith.addf %389, %383 : vector<8x16xf32>
    %cst_159 = arith.constant 0.020833334 : f32
    %391 = vector.broadcast %cst_159 : f32 to vector<8x16xf32>
    %392 = arith.mulf %391, %390 : vector<8x16xf32>
    %393 = arith.addf %346, %392 : vector<8x16xf32>
    %c0_160 = arith.constant 0 : index
    %c0_161 = arith.constant 0 : index
    %394 = vector.load %arg13[%c0_160, %c0_161] : memref<16x32xf32, #tpu.memory_space<vmem>>, vector<16x32xf32>
    %c0_162 = arith.constant 0 : index
    %c0_163 = arith.constant 0 : index
    %395 = vector.load %arg14[%c0_162, %c0_163] : memref<1x32xf32, #tpu.memory_space<vmem>>, vector<1x32xf32>
    %c0_164 = arith.constant 0 : index
    %c0_165 = arith.constant 0 : index
    %396 = vector.load %arg15[%c0_164, %c0_165] : memref<32x16xf32, #tpu.memory_space<vmem>>, vector<32x16xf32>
    %c0_166 = arith.constant 0 : index
    %c0_167 = arith.constant 0 : index
    %397 = vector.load %arg16[%c0_166, %c0_167] : memref<1x16xf32, #tpu.memory_space<vmem>>, vector<1x16xf32>
    %cst_168 = arith.constant dense<0.000000e+00> : vector<8x32xf32>
    %398 = tpu.matmul %393, %394, %cst_168 {dimension_numbers = #tpu.dot_dimension_numbers<[1], [0], [0], [1], [0, 0, 1, 1], [], []>} : vector<8x16xf32>, vector<16x32xf32>, vector<8x32xf32> -> vector<8x32xf32>
    %399 = vector.broadcast %395 : vector<1x32xf32> to vector<8x32xf32>
    %400 = arith.addf %398, %399 : vector<8x32xf32>
    %401 = math.tanh %400 : vector<8x32xf32>
    %cst_169 = arith.constant dense<0.000000e+00> : vector<8x16xf32>
    %402 = tpu.matmul %401, %396, %cst_169 {dimension_numbers = #tpu.dot_dimension_numbers<[1], [0], [0], [1], [0, 0, 1, 1], [], []>} : vector<8x32xf32>, vector<32x16xf32>, vector<8x16xf32> -> vector<8x16xf32>
    %403 = vector.broadcast %397 : vector<1x16xf32> to vector<8x16xf32>
    %404 = arith.addf %402, %403 : vector<8x16xf32>
    %405 = vector.extract_strided_slice %404 {offsets = [0, 0], sizes = [8, 8], strides = [1, 1]} : vector<8x16xf32> to vector<8x8xf32>
    %406 = vector.extract_strided_slice %404 {offsets = [0, 8], sizes = [8, 8], strides = [1, 1]} : vector<8x16xf32> to vector<8x8xf32>
    %c0_170 = arith.constant 0 : index
    %c0_171 = arith.constant 0 : index
    %407 = vector.load %arg2[%c0_170, %c0_171] : memref<8x8xf32, #tpu.memory_space<vmem>>, vector<8x8xf32>
    %cst_172 = arith.constant 5.000000e-01 : f32
    %408 = vector.broadcast %cst_172 : f32 to vector<8x8xf32>
    %409 = arith.mulf %408, %406 : vector<8x8xf32>
    %410 = math.exp %409 : vector<8x8xf32>
    %411 = arith.mulf %407, %410 : vector<8x8xf32>
    %412 = arith.addf %405, %411 : vector<8x8xf32>
    %c0_173 = arith.constant 0 : index
    %c0_174 = arith.constant 0 : index
    %413 = vector.load %arg17[%c0_173, %c0_174] : memref<8x32xf32, #tpu.memory_space<vmem>>, vector<8x32xf32>
    %c0_175 = arith.constant 0 : index
    %c0_176 = arith.constant 0 : index
    %414 = vector.load %arg18[%c0_175, %c0_176] : memref<1x32xf32, #tpu.memory_space<vmem>>, vector<1x32xf32>
    %c0_177 = arith.constant 0 : index
    %c0_178 = arith.constant 0 : index
    %415 = vector.load %arg19[%c0_177, %c0_178] : memref<32x16xf32, #tpu.memory_space<vmem>>, vector<32x16xf32>
    %c0_179 = arith.constant 0 : index
    %c0_180 = arith.constant 0 : index
    %416 = vector.load %arg20[%c0_179, %c0_180] : memref<1x16xf32, #tpu.memory_space<vmem>>, vector<1x16xf32>
    %cst_181 = arith.constant dense<0.000000e+00> : vector<8x32xf32>
    %417 = tpu.matmul %412, %413, %cst_181 {dimension_numbers = #tpu.dot_dimension_numbers<[1], [0], [0], [1], [0, 0, 1, 1], [], []>} : vector<8x8xf32>, vector<8x32xf32>, vector<8x32xf32> -> vector<8x32xf32>
    %418 = vector.broadcast %414 : vector<1x32xf32> to vector<8x32xf32>
    %419 = arith.addf %417, %418 : vector<8x32xf32>
    %420 = math.tanh %419 : vector<8x32xf32>
    %cst_182 = arith.constant dense<0.000000e+00> : vector<8x16xf32>
    %421 = tpu.matmul %420, %415, %cst_182 {dimension_numbers = #tpu.dot_dimension_numbers<[1], [0], [0], [1], [0, 0, 1, 1], [], []>} : vector<8x32xf32>, vector<32x16xf32>, vector<8x16xf32> -> vector<8x16xf32>
    %422 = vector.broadcast %416 : vector<1x16xf32> to vector<8x16xf32>
    %423 = arith.addf %421, %422 : vector<8x16xf32>
    %c0_183 = arith.constant 0 : index
    %c0_184 = arith.constant 0 : index
    %424 = vector.load %arg10[%c0_183, %c0_184] : memref<16x32xf32, #tpu.memory_space<vmem>>, vector<16x32xf32>
    %c0_185 = arith.constant 0 : index
    %c0_186 = arith.constant 0 : index
    %425 = vector.load %arg11[%c0_185, %c0_186] : memref<1x32xf32, #tpu.memory_space<vmem>>, vector<1x32xf32>
    %c0_187 = arith.constant 0 : index
    %c0_188 = arith.constant 0 : index
    %426 = vector.load %arg12[%c0_187, %c0_188] : memref<32x16xf32, #tpu.memory_space<vmem>>, vector<32x16xf32>
    %427 = vector.shape_cast %425 : vector<1x32xf32> to vector<1x32xf32>
    %428 = vector.broadcast %427 : vector<1x32xf32> to vector<8x32xf32>
    %c0_i32_189 = arith.constant 0 : i32
    %cst_190 = arith.constant dense<0.000000e+00> : vector<8x32xf32>
    %429 = tpu.matmul %423, %424, %cst_190 {dimension_numbers = #tpu.dot_dimension_numbers<[1], [0], [0], [1], [0, 0, 1, 1], [], []>} : vector<8x16xf32>, vector<16x32xf32>, vector<8x32xf32> -> vector<8x32xf32>
    %430 = arith.addf %429, %428 : vector<8x32xf32>
    %431 = math.tanh %430 : vector<8x32xf32>
    %432 = arith.mulf %431, %431 : vector<8x32xf32>
    %cst_191 = arith.constant 1.000000e+00 : f32
    %433 = vector.broadcast %cst_191 : f32 to vector<8x32xf32>
    %434 = arith.subf %433, %432 : vector<8x32xf32>
    %cst_192 = arith.constant dense<0.000000e+00> : vector<8x16xf32>
    %435 = tpu.matmul %434, %426, %cst_192 {dimension_numbers = #tpu.dot_dimension_numbers<[1], [0], [0], [1], [0, 0, 1, 1], [], []>} : vector<8x32xf32>, vector<32x16xf32>, vector<8x16xf32> -> vector<8x16xf32>
    %cst_193 = arith.constant -6.250000e-02 : f32
    %436 = vector.broadcast %cst_193 : f32 to vector<8x16xf32>
    %437 = arith.mulf %436, %435 : vector<8x16xf32>
    %438 = arith.addf %423, %437 : vector<8x16xf32>
    %cst_194 = arith.constant dense<0.000000e+00> : vector<8x32xf32>
    %439 = tpu.matmul %438, %424, %cst_194 {dimension_numbers = #tpu.dot_dimension_numbers<[1], [0], [0], [1], [0, 0, 1, 1], [], []>} : vector<8x16xf32>, vector<16x32xf32>, vector<8x32xf32> -> vector<8x32xf32>
    %440 = arith.addf %439, %428 : vector<8x32xf32>
    %441 = math.tanh %440 : vector<8x32xf32>
    %442 = arith.mulf %441, %441 : vector<8x32xf32>
    %cst_195 = arith.constant 1.000000e+00 : f32
    %443 = vector.broadcast %cst_195 : f32 to vector<8x32xf32>
    %444 = arith.subf %443, %442 : vector<8x32xf32>
    %cst_196 = arith.constant dense<0.000000e+00> : vector<8x16xf32>
    %445 = tpu.matmul %444, %426, %cst_196 {dimension_numbers = #tpu.dot_dimension_numbers<[1], [0], [0], [1], [0, 0, 1, 1], [], []>} : vector<8x32xf32>, vector<32x16xf32>, vector<8x16xf32> -> vector<8x16xf32>
    %cst_197 = arith.constant -6.250000e-02 : f32
    %446 = vector.broadcast %cst_197 : f32 to vector<8x16xf32>
    %447 = arith.mulf %446, %445 : vector<8x16xf32>
    %448 = arith.addf %423, %447 : vector<8x16xf32>
    %cst_198 = arith.constant dense<0.000000e+00> : vector<8x32xf32>
    %449 = tpu.matmul %448, %424, %cst_198 {dimension_numbers = #tpu.dot_dimension_numbers<[1], [0], [0], [1], [0, 0, 1, 1], [], []>} : vector<8x16xf32>, vector<16x32xf32>, vector<8x32xf32> -> vector<8x32xf32>
    %450 = arith.addf %449, %428 : vector<8x32xf32>
    %451 = math.tanh %450 : vector<8x32xf32>
    %452 = arith.mulf %451, %451 : vector<8x32xf32>
    %cst_199 = arith.constant 1.000000e+00 : f32
    %453 = vector.broadcast %cst_199 : f32 to vector<8x32xf32>
    %454 = arith.subf %453, %452 : vector<8x32xf32>
    %cst_200 = arith.constant dense<0.000000e+00> : vector<8x16xf32>
    %455 = tpu.matmul %454, %426, %cst_200 {dimension_numbers = #tpu.dot_dimension_numbers<[1], [0], [0], [1], [0, 0, 1, 1], [], []>} : vector<8x32xf32>, vector<32x16xf32>, vector<8x16xf32> -> vector<8x16xf32>
    %cst_201 = arith.constant -1.250000e-01 : f32
    %456 = vector.broadcast %cst_201 : f32 to vector<8x16xf32>
    %457 = arith.mulf %456, %455 : vector<8x16xf32>
    %458 = arith.addf %423, %457 : vector<8x16xf32>
    %cst_202 = arith.constant dense<0.000000e+00> : vector<8x32xf32>
    %459 = tpu.matmul %458, %424, %cst_202 {dimension_numbers = #tpu.dot_dimension_numbers<[1], [0], [0], [1], [0, 0, 1, 1], [], []>} : vector<8x16xf32>, vector<16x32xf32>, vector<8x32xf32> -> vector<8x32xf32>
    %460 = arith.addf %459, %428 : vector<8x32xf32>
    %461 = math.tanh %460 : vector<8x32xf32>
    %462 = arith.mulf %461, %461 : vector<8x32xf32>
    %cst_203 = arith.constant 1.000000e+00 : f32
    %463 = vector.broadcast %cst_203 : f32 to vector<8x32xf32>
    %464 = arith.subf %463, %462 : vector<8x32xf32>
    %cst_204 = arith.constant dense<0.000000e+00> : vector<8x16xf32>
    %465 = tpu.matmul %464, %426, %cst_204 {dimension_numbers = #tpu.dot_dimension_numbers<[1], [0], [0], [1], [0, 0, 1, 1], [], []>} : vector<8x32xf32>, vector<32x16xf32>, vector<8x16xf32> -> vector<8x16xf32>
    %cst_205 = arith.constant 2.000000e+00 : f32
    %466 = vector.broadcast %cst_205 : f32 to vector<8x16xf32>
    %467 = arith.mulf %466, %445 : vector<8x16xf32>
    %468 = arith.addf %435, %467 : vector<8x16xf32>
    %cst_206 = arith.constant 2.000000e+00 : f32
    %469 = vector.broadcast %cst_206 : f32 to vector<8x16xf32>
    %470 = arith.mulf %469, %455 : vector<8x16xf32>
    %471 = arith.addf %468, %470 : vector<8x16xf32>
    %472 = arith.addf %471, %465 : vector<8x16xf32>
    %cst_207 = arith.constant -0.020833334 : f32
    %473 = vector.broadcast %cst_207 : f32 to vector<8x16xf32>
    %474 = arith.mulf %473, %472 : vector<8x16xf32>
    %475 = arith.addf %423, %474 : vector<8x16xf32>
    %c1_i32_208 = arith.constant 1 : i32
    %cst_209 = arith.constant dense<0.000000e+00> : vector<8x32xf32>
    %476 = tpu.matmul %475, %424, %cst_209 {dimension_numbers = #tpu.dot_dimension_numbers<[1], [0], [0], [1], [0, 0, 1, 1], [], []>} : vector<8x16xf32>, vector<16x32xf32>, vector<8x32xf32> -> vector<8x32xf32>
    %477 = arith.addf %476, %428 : vector<8x32xf32>
    %478 = math.tanh %477 : vector<8x32xf32>
    %479 = arith.mulf %478, %478 : vector<8x32xf32>
    %cst_210 = arith.constant 1.000000e+00 : f32
    %480 = vector.broadcast %cst_210 : f32 to vector<8x32xf32>
    %481 = arith.subf %480, %479 : vector<8x32xf32>
    %cst_211 = arith.constant dense<0.000000e+00> : vector<8x16xf32>
    %482 = tpu.matmul %481, %426, %cst_211 {dimension_numbers = #tpu.dot_dimension_numbers<[1], [0], [0], [1], [0, 0, 1, 1], [], []>} : vector<8x32xf32>, vector<32x16xf32>, vector<8x16xf32> -> vector<8x16xf32>
    %cst_212 = arith.constant -6.250000e-02 : f32
    %483 = vector.broadcast %cst_212 : f32 to vector<8x16xf32>
    %484 = arith.mulf %483, %482 : vector<8x16xf32>
    %485 = arith.addf %475, %484 : vector<8x16xf32>
    %cst_213 = arith.constant dense<0.000000e+00> : vector<8x32xf32>
    %486 = tpu.matmul %485, %424, %cst_213 {dimension_numbers = #tpu.dot_dimension_numbers<[1], [0], [0], [1], [0, 0, 1, 1], [], []>} : vector<8x16xf32>, vector<16x32xf32>, vector<8x32xf32> -> vector<8x32xf32>
    %487 = arith.addf %486, %428 : vector<8x32xf32>
    %488 = math.tanh %487 : vector<8x32xf32>
    %489 = arith.mulf %488, %488 : vector<8x32xf32>
    %cst_214 = arith.constant 1.000000e+00 : f32
    %490 = vector.broadcast %cst_214 : f32 to vector<8x32xf32>
    %491 = arith.subf %490, %489 : vector<8x32xf32>
    %cst_215 = arith.constant dense<0.000000e+00> : vector<8x16xf32>
    %492 = tpu.matmul %491, %426, %cst_215 {dimension_numbers = #tpu.dot_dimension_numbers<[1], [0], [0], [1], [0, 0, 1, 1], [], []>} : vector<8x32xf32>, vector<32x16xf32>, vector<8x16xf32> -> vector<8x16xf32>
    %cst_216 = arith.constant -6.250000e-02 : f32
    %493 = vector.broadcast %cst_216 : f32 to vector<8x16xf32>
    %494 = arith.mulf %493, %492 : vector<8x16xf32>
    %495 = arith.addf %475, %494 : vector<8x16xf32>
    %cst_217 = arith.constant dense<0.000000e+00> : vector<8x32xf32>
    %496 = tpu.matmul %495, %424, %cst_217 {dimension_numbers = #tpu.dot_dimension_numbers<[1], [0], [0], [1], [0, 0, 1, 1], [], []>} : vector<8x16xf32>, vector<16x32xf32>, vector<8x32xf32> -> vector<8x32xf32>
    %497 = arith.addf %496, %428 : vector<8x32xf32>
    %498 = math.tanh %497 : vector<8x32xf32>
    %499 = arith.mulf %498, %498 : vector<8x32xf32>
    %cst_218 = arith.constant 1.000000e+00 : f32
    %500 = vector.broadcast %cst_218 : f32 to vector<8x32xf32>
    %501 = arith.subf %500, %499 : vector<8x32xf32>
    %cst_219 = arith.constant dense<0.000000e+00> : vector<8x16xf32>
    %502 = tpu.matmul %501, %426, %cst_219 {dimension_numbers = #tpu.dot_dimension_numbers<[1], [0], [0], [1], [0, 0, 1, 1], [], []>} : vector<8x32xf32>, vector<32x16xf32>, vector<8x16xf32> -> vector<8x16xf32>
    %cst_220 = arith.constant -1.250000e-01 : f32
    %503 = vector.broadcast %cst_220 : f32 to vector<8x16xf32>
    %504 = arith.mulf %503, %502 : vector<8x16xf32>
    %505 = arith.addf %475, %504 : vector<8x16xf32>
    %cst_221 = arith.constant dense<0.000000e+00> : vector<8x32xf32>
    %506 = tpu.matmul %505, %424, %cst_221 {dimension_numbers = #tpu.dot_dimension_numbers<[1], [0], [0], [1], [0, 0, 1, 1], [], []>} : vector<8x16xf32>, vector<16x32xf32>, vector<8x32xf32> -> vector<8x32xf32>
    %507 = arith.addf %506, %428 : vector<8x32xf32>
    %508 = math.tanh %507 : vector<8x32xf32>
    %509 = arith.mulf %508, %508 : vector<8x32xf32>
    %cst_222 = arith.constant 1.000000e+00 : f32
    %510 = vector.broadcast %cst_222 : f32 to vector<8x32xf32>
    %511 = arith.subf %510, %509 : vector<8x32xf32>
    %cst_223 = arith.constant dense<0.000000e+00> : vector<8x16xf32>
    %512 = tpu.matmul %511, %426, %cst_223 {dimension_numbers = #tpu.dot_dimension_numbers<[1], [0], [0], [1], [0, 0, 1, 1], [], []>} : vector<8x32xf32>, vector<32x16xf32>, vector<8x16xf32> -> vector<8x16xf32>
    %cst_224 = arith.constant 2.000000e+00 : f32
    %513 = vector.broadcast %cst_224 : f32 to vector<8x16xf32>
    %514 = arith.mulf %513, %492 : vector<8x16xf32>
    %515 = arith.addf %482, %514 : vector<8x16xf32>
    %cst_225 = arith.constant 2.000000e+00 : f32
    %516 = vector.broadcast %cst_225 : f32 to vector<8x16xf32>
    %517 = arith.mulf %516, %502 : vector<8x16xf32>
    %518 = arith.addf %515, %517 : vector<8x16xf32>
    %519 = arith.addf %518, %512 : vector<8x16xf32>
    %cst_226 = arith.constant -0.020833334 : f32
    %520 = vector.broadcast %cst_226 : f32 to vector<8x16xf32>
    %521 = arith.mulf %520, %519 : vector<8x16xf32>
    %522 = arith.addf %475, %521 : vector<8x16xf32>
    %c2_i32_227 = arith.constant 2 : i32
    %cst_228 = arith.constant dense<0.000000e+00> : vector<8x32xf32>
    %523 = tpu.matmul %522, %424, %cst_228 {dimension_numbers = #tpu.dot_dimension_numbers<[1], [0], [0], [1], [0, 0, 1, 1], [], []>} : vector<8x16xf32>, vector<16x32xf32>, vector<8x32xf32> -> vector<8x32xf32>
    %524 = arith.addf %523, %428 : vector<8x32xf32>
    %525 = math.tanh %524 : vector<8x32xf32>
    %526 = arith.mulf %525, %525 : vector<8x32xf32>
    %cst_229 = arith.constant 1.000000e+00 : f32
    %527 = vector.broadcast %cst_229 : f32 to vector<8x32xf32>
    %528 = arith.subf %527, %526 : vector<8x32xf32>
    %cst_230 = arith.constant dense<0.000000e+00> : vector<8x16xf32>
    %529 = tpu.matmul %528, %426, %cst_230 {dimension_numbers = #tpu.dot_dimension_numbers<[1], [0], [0], [1], [0, 0, 1, 1], [], []>} : vector<8x32xf32>, vector<32x16xf32>, vector<8x16xf32> -> vector<8x16xf32>
    %cst_231 = arith.constant -6.250000e-02 : f32
    %530 = vector.broadcast %cst_231 : f32 to vector<8x16xf32>
    %531 = arith.mulf %530, %529 : vector<8x16xf32>
    %532 = arith.addf %522, %531 : vector<8x16xf32>
    %cst_232 = arith.constant dense<0.000000e+00> : vector<8x32xf32>
    %533 = tpu.matmul %532, %424, %cst_232 {dimension_numbers = #tpu.dot_dimension_numbers<[1], [0], [0], [1], [0, 0, 1, 1], [], []>} : vector<8x16xf32>, vector<16x32xf32>, vector<8x32xf32> -> vector<8x32xf32>
    %534 = arith.addf %533, %428 : vector<8x32xf32>
    %535 = math.tanh %534 : vector<8x32xf32>
    %536 = arith.mulf %535, %535 : vector<8x32xf32>
    %cst_233 = arith.constant 1.000000e+00 : f32
    %537 = vector.broadcast %cst_233 : f32 to vector<8x32xf32>
    %538 = arith.subf %537, %536 : vector<8x32xf32>
    %cst_234 = arith.constant dense<0.000000e+00> : vector<8x16xf32>
    %539 = tpu.matmul %538, %426, %cst_234 {dimension_numbers = #tpu.dot_dimension_numbers<[1], [0], [0], [1], [0, 0, 1, 1], [], []>} : vector<8x32xf32>, vector<32x16xf32>, vector<8x16xf32> -> vector<8x16xf32>
    %cst_235 = arith.constant -6.250000e-02 : f32
    %540 = vector.broadcast %cst_235 : f32 to vector<8x16xf32>
    %541 = arith.mulf %540, %539 : vector<8x16xf32>
    %542 = arith.addf %522, %541 : vector<8x16xf32>
    %cst_236 = arith.constant dense<0.000000e+00> : vector<8x32xf32>
    %543 = tpu.matmul %542, %424, %cst_236 {dimension_numbers = #tpu.dot_dimension_numbers<[1], [0], [0], [1], [0, 0, 1, 1], [], []>} : vector<8x16xf32>, vector<16x32xf32>, vector<8x32xf32> -> vector<8x32xf32>
    %544 = arith.addf %543, %428 : vector<8x32xf32>
    %545 = math.tanh %544 : vector<8x32xf32>
    %546 = arith.mulf %545, %545 : vector<8x32xf32>
    %cst_237 = arith.constant 1.000000e+00 : f32
    %547 = vector.broadcast %cst_237 : f32 to vector<8x32xf32>
    %548 = arith.subf %547, %546 : vector<8x32xf32>
    %cst_238 = arith.constant dense<0.000000e+00> : vector<8x16xf32>
    %549 = tpu.matmul %548, %426, %cst_238 {dimension_numbers = #tpu.dot_dimension_numbers<[1], [0], [0], [1], [0, 0, 1, 1], [], []>} : vector<8x32xf32>, vector<32x16xf32>, vector<8x16xf32> -> vector<8x16xf32>
    %cst_239 = arith.constant -1.250000e-01 : f32
    %550 = vector.broadcast %cst_239 : f32 to vector<8x16xf32>
    %551 = arith.mulf %550, %549 : vector<8x16xf32>
    %552 = arith.addf %522, %551 : vector<8x16xf32>
    %cst_240 = arith.constant dense<0.000000e+00> : vector<8x32xf32>
    %553 = tpu.matmul %552, %424, %cst_240 {dimension_numbers = #tpu.dot_dimension_numbers<[1], [0], [0], [1], [0, 0, 1, 1], [], []>} : vector<8x16xf32>, vector<16x32xf32>, vector<8x32xf32> -> vector<8x32xf32>
    %554 = arith.addf %553, %428 : vector<8x32xf32>
    %555 = math.tanh %554 : vector<8x32xf32>
    %556 = arith.mulf %555, %555 : vector<8x32xf32>
    %cst_241 = arith.constant 1.000000e+00 : f32
    %557 = vector.broadcast %cst_241 : f32 to vector<8x32xf32>
    %558 = arith.subf %557, %556 : vector<8x32xf32>
    %cst_242 = arith.constant dense<0.000000e+00> : vector<8x16xf32>
    %559 = tpu.matmul %558, %426, %cst_242 {dimension_numbers = #tpu.dot_dimension_numbers<[1], [0], [0], [1], [0, 0, 1, 1], [], []>} : vector<8x32xf32>, vector<32x16xf32>, vector<8x16xf32> -> vector<8x16xf32>
    %cst_243 = arith.constant 2.000000e+00 : f32
    %560 = vector.broadcast %cst_243 : f32 to vector<8x16xf32>
    %561 = arith.mulf %560, %539 : vector<8x16xf32>
    %562 = arith.addf %529, %561 : vector<8x16xf32>
    %cst_244 = arith.constant 2.000000e+00 : f32
    %563 = vector.broadcast %cst_244 : f32 to vector<8x16xf32>
    %564 = arith.mulf %563, %549 : vector<8x16xf32>
    %565 = arith.addf %562, %564 : vector<8x16xf32>
    %566 = arith.addf %565, %559 : vector<8x16xf32>
    %cst_245 = arith.constant -0.020833334 : f32
    %567 = vector.broadcast %cst_245 : f32 to vector<8x16xf32>
    %568 = arith.mulf %567, %566 : vector<8x16xf32>
    %569 = arith.addf %522, %568 : vector<8x16xf32>
    %c3_i32_246 = arith.constant 3 : i32
    %cst_247 = arith.constant dense<0.000000e+00> : vector<8x32xf32>
    %570 = tpu.matmul %569, %424, %cst_247 {dimension_numbers = #tpu.dot_dimension_numbers<[1], [0], [0], [1], [0, 0, 1, 1], [], []>} : vector<8x16xf32>, vector<16x32xf32>, vector<8x32xf32> -> vector<8x32xf32>
    %571 = arith.addf %570, %428 : vector<8x32xf32>
    %572 = math.tanh %571 : vector<8x32xf32>
    %573 = arith.mulf %572, %572 : vector<8x32xf32>
    %cst_248 = arith.constant 1.000000e+00 : f32
    %574 = vector.broadcast %cst_248 : f32 to vector<8x32xf32>
    %575 = arith.subf %574, %573 : vector<8x32xf32>
    %cst_249 = arith.constant dense<0.000000e+00> : vector<8x16xf32>
    %576 = tpu.matmul %575, %426, %cst_249 {dimension_numbers = #tpu.dot_dimension_numbers<[1], [0], [0], [1], [0, 0, 1, 1], [], []>} : vector<8x32xf32>, vector<32x16xf32>, vector<8x16xf32> -> vector<8x16xf32>
    %cst_250 = arith.constant -6.250000e-02 : f32
    %577 = vector.broadcast %cst_250 : f32 to vector<8x16xf32>
    %578 = arith.mulf %577, %576 : vector<8x16xf32>
    %579 = arith.addf %569, %578 : vector<8x16xf32>
    %cst_251 = arith.constant dense<0.000000e+00> : vector<8x32xf32>
    %580 = tpu.matmul %579, %424, %cst_251 {dimension_numbers = #tpu.dot_dimension_numbers<[1], [0], [0], [1], [0, 0, 1, 1], [], []>} : vector<8x16xf32>, vector<16x32xf32>, vector<8x32xf32> -> vector<8x32xf32>
    %581 = arith.addf %580, %428 : vector<8x32xf32>
    %582 = math.tanh %581 : vector<8x32xf32>
    %583 = arith.mulf %582, %582 : vector<8x32xf32>
    %cst_252 = arith.constant 1.000000e+00 : f32
    %584 = vector.broadcast %cst_252 : f32 to vector<8x32xf32>
    %585 = arith.subf %584, %583 : vector<8x32xf32>
    %cst_253 = arith.constant dense<0.000000e+00> : vector<8x16xf32>
    %586 = tpu.matmul %585, %426, %cst_253 {dimension_numbers = #tpu.dot_dimension_numbers<[1], [0], [0], [1], [0, 0, 1, 1], [], []>} : vector<8x32xf32>, vector<32x16xf32>, vector<8x16xf32> -> vector<8x16xf32>
    %cst_254 = arith.constant -6.250000e-02 : f32
    %587 = vector.broadcast %cst_254 : f32 to vector<8x16xf32>
    %588 = arith.mulf %587, %586 : vector<8x16xf32>
    %589 = arith.addf %569, %588 : vector<8x16xf32>
    %cst_255 = arith.constant dense<0.000000e+00> : vector<8x32xf32>
    %590 = tpu.matmul %589, %424, %cst_255 {dimension_numbers = #tpu.dot_dimension_numbers<[1], [0], [0], [1], [0, 0, 1, 1], [], []>} : vector<8x16xf32>, vector<16x32xf32>, vector<8x32xf32> -> vector<8x32xf32>
    %591 = arith.addf %590, %428 : vector<8x32xf32>
    %592 = math.tanh %591 : vector<8x32xf32>
    %593 = arith.mulf %592, %592 : vector<8x32xf32>
    %cst_256 = arith.constant 1.000000e+00 : f32
    %594 = vector.broadcast %cst_256 : f32 to vector<8x32xf32>
    %595 = arith.subf %594, %593 : vector<8x32xf32>
    %cst_257 = arith.constant dense<0.000000e+00> : vector<8x16xf32>
    %596 = tpu.matmul %595, %426, %cst_257 {dimension_numbers = #tpu.dot_dimension_numbers<[1], [0], [0], [1], [0, 0, 1, 1], [], []>} : vector<8x32xf32>, vector<32x16xf32>, vector<8x16xf32> -> vector<8x16xf32>
    %cst_258 = arith.constant -1.250000e-01 : f32
    %597 = vector.broadcast %cst_258 : f32 to vector<8x16xf32>
    %598 = arith.mulf %597, %596 : vector<8x16xf32>
    %599 = arith.addf %569, %598 : vector<8x16xf32>
    %cst_259 = arith.constant dense<0.000000e+00> : vector<8x32xf32>
    %600 = tpu.matmul %599, %424, %cst_259 {dimension_numbers = #tpu.dot_dimension_numbers<[1], [0], [0], [1], [0, 0, 1, 1], [], []>} : vector<8x16xf32>, vector<16x32xf32>, vector<8x32xf32> -> vector<8x32xf32>
    %601 = arith.addf %600, %428 : vector<8x32xf32>
    %602 = math.tanh %601 : vector<8x32xf32>
    %603 = arith.mulf %602, %602 : vector<8x32xf32>
    %cst_260 = arith.constant 1.000000e+00 : f32
    %604 = vector.broadcast %cst_260 : f32 to vector<8x32xf32>
    %605 = arith.subf %604, %603 : vector<8x32xf32>
    %cst_261 = arith.constant dense<0.000000e+00> : vector<8x16xf32>
    %606 = tpu.matmul %605, %426, %cst_261 {dimension_numbers = #tpu.dot_dimension_numbers<[1], [0], [0], [1], [0, 0, 1, 1], [], []>} : vector<8x32xf32>, vector<32x16xf32>, vector<8x16xf32> -> vector<8x16xf32>
    %cst_262 = arith.constant 2.000000e+00 : f32
    %607 = vector.broadcast %cst_262 : f32 to vector<8x16xf32>
    %608 = arith.mulf %607, %586 : vector<8x16xf32>
    %609 = arith.addf %576, %608 : vector<8x16xf32>
    %cst_263 = arith.constant 2.000000e+00 : f32
    %610 = vector.broadcast %cst_263 : f32 to vector<8x16xf32>
    %611 = arith.mulf %610, %596 : vector<8x16xf32>
    %612 = arith.addf %609, %611 : vector<8x16xf32>
    %613 = arith.addf %612, %606 : vector<8x16xf32>
    %cst_264 = arith.constant -0.020833334 : f32
    %614 = vector.broadcast %cst_264 : f32 to vector<8x16xf32>
    %615 = arith.mulf %614, %613 : vector<8x16xf32>
    %616 = arith.addf %569, %615 : vector<8x16xf32>
    %c4_i32_265 = arith.constant 4 : i32
    %cst_266 = arith.constant dense<0.000000e+00> : vector<8x32xf32>
    %617 = tpu.matmul %616, %424, %cst_266 {dimension_numbers = #tpu.dot_dimension_numbers<[1], [0], [0], [1], [0, 0, 1, 1], [], []>} : vector<8x16xf32>, vector<16x32xf32>, vector<8x32xf32> -> vector<8x32xf32>
    %618 = arith.addf %617, %428 : vector<8x32xf32>
    %619 = math.tanh %618 : vector<8x32xf32>
    %620 = arith.mulf %619, %619 : vector<8x32xf32>
    %cst_267 = arith.constant 1.000000e+00 : f32
    %621 = vector.broadcast %cst_267 : f32 to vector<8x32xf32>
    %622 = arith.subf %621, %620 : vector<8x32xf32>
    %cst_268 = arith.constant dense<0.000000e+00> : vector<8x16xf32>
    %623 = tpu.matmul %622, %426, %cst_268 {dimension_numbers = #tpu.dot_dimension_numbers<[1], [0], [0], [1], [0, 0, 1, 1], [], []>} : vector<8x32xf32>, vector<32x16xf32>, vector<8x16xf32> -> vector<8x16xf32>
    %cst_269 = arith.constant -6.250000e-02 : f32
    %624 = vector.broadcast %cst_269 : f32 to vector<8x16xf32>
    %625 = arith.mulf %624, %623 : vector<8x16xf32>
    %626 = arith.addf %616, %625 : vector<8x16xf32>
    %cst_270 = arith.constant dense<0.000000e+00> : vector<8x32xf32>
    %627 = tpu.matmul %626, %424, %cst_270 {dimension_numbers = #tpu.dot_dimension_numbers<[1], [0], [0], [1], [0, 0, 1, 1], [], []>} : vector<8x16xf32>, vector<16x32xf32>, vector<8x32xf32> -> vector<8x32xf32>
    %628 = arith.addf %627, %428 : vector<8x32xf32>
    %629 = math.tanh %628 : vector<8x32xf32>
    %630 = arith.mulf %629, %629 : vector<8x32xf32>
    %cst_271 = arith.constant 1.000000e+00 : f32
    %631 = vector.broadcast %cst_271 : f32 to vector<8x32xf32>
    %632 = arith.subf %631, %630 : vector<8x32xf32>
    %cst_272 = arith.constant dense<0.000000e+00> : vector<8x16xf32>
    %633 = tpu.matmul %632, %426, %cst_272 {dimension_numbers = #tpu.dot_dimension_numbers<[1], [0], [0], [1], [0, 0, 1, 1], [], []>} : vector<8x32xf32>, vector<32x16xf32>, vector<8x16xf32> -> vector<8x16xf32>
    %cst_273 = arith.constant -6.250000e-02 : f32
    %634 = vector.broadcast %cst_273 : f32 to vector<8x16xf32>
    %635 = arith.mulf %634, %633 : vector<8x16xf32>
    %636 = arith.addf %616, %635 : vector<8x16xf32>
    %cst_274 = arith.constant dense<0.000000e+00> : vector<8x32xf32>
    %637 = tpu.matmul %636, %424, %cst_274 {dimension_numbers = #tpu.dot_dimension_numbers<[1], [0], [0], [1], [0, 0, 1, 1], [], []>} : vector<8x16xf32>, vector<16x32xf32>, vector<8x32xf32> -> vector<8x32xf32>
    %638 = arith.addf %637, %428 : vector<8x32xf32>
    %639 = math.tanh %638 : vector<8x32xf32>
    %640 = arith.mulf %639, %639 : vector<8x32xf32>
    %cst_275 = arith.constant 1.000000e+00 : f32
    %641 = vector.broadcast %cst_275 : f32 to vector<8x32xf32>
    %642 = arith.subf %641, %640 : vector<8x32xf32>
    %cst_276 = arith.constant dense<0.000000e+00> : vector<8x16xf32>
    %643 = tpu.matmul %642, %426, %cst_276 {dimension_numbers = #tpu.dot_dimension_numbers<[1], [0], [0], [1], [0, 0, 1, 1], [], []>} : vector<8x32xf32>, vector<32x16xf32>, vector<8x16xf32> -> vector<8x16xf32>
    %cst_277 = arith.constant -1.250000e-01 : f32
    %644 = vector.broadcast %cst_277 : f32 to vector<8x16xf32>
    %645 = arith.mulf %644, %643 : vector<8x16xf32>
    %646 = arith.addf %616, %645 : vector<8x16xf32>
    %cst_278 = arith.constant dense<0.000000e+00> : vector<8x32xf32>
    %647 = tpu.matmul %646, %424, %cst_278 {dimension_numbers = #tpu.dot_dimension_numbers<[1], [0], [0], [1], [0, 0, 1, 1], [], []>} : vector<8x16xf32>, vector<16x32xf32>, vector<8x32xf32> -> vector<8x32xf32>
    %648 = arith.addf %647, %428 : vector<8x32xf32>
    %649 = math.tanh %648 : vector<8x32xf32>
    %650 = arith.mulf %649, %649 : vector<8x32xf32>
    %cst_279 = arith.constant 1.000000e+00 : f32
    %651 = vector.broadcast %cst_279 : f32 to vector<8x32xf32>
    %652 = arith.subf %651, %650 : vector<8x32xf32>
    %cst_280 = arith.constant dense<0.000000e+00> : vector<8x16xf32>
    %653 = tpu.matmul %652, %426, %cst_280 {dimension_numbers = #tpu.dot_dimension_numbers<[1], [0], [0], [1], [0, 0, 1, 1], [], []>} : vector<8x32xf32>, vector<32x16xf32>, vector<8x16xf32> -> vector<8x16xf32>
    %cst_281 = arith.constant 2.000000e+00 : f32
    %654 = vector.broadcast %cst_281 : f32 to vector<8x16xf32>
    %655 = arith.mulf %654, %633 : vector<8x16xf32>
    %656 = arith.addf %623, %655 : vector<8x16xf32>
    %cst_282 = arith.constant 2.000000e+00 : f32
    %657 = vector.broadcast %cst_282 : f32 to vector<8x16xf32>
    %658 = arith.mulf %657, %643 : vector<8x16xf32>
    %659 = arith.addf %656, %658 : vector<8x16xf32>
    %660 = arith.addf %659, %653 : vector<8x16xf32>
    %cst_283 = arith.constant -0.020833334 : f32
    %661 = vector.broadcast %cst_283 : f32 to vector<8x16xf32>
    %662 = arith.mulf %661, %660 : vector<8x16xf32>
    %663 = arith.addf %616, %662 : vector<8x16xf32>
    %c5_i32_284 = arith.constant 5 : i32
    %cst_285 = arith.constant dense<0.000000e+00> : vector<8x32xf32>
    %664 = tpu.matmul %663, %424, %cst_285 {dimension_numbers = #tpu.dot_dimension_numbers<[1], [0], [0], [1], [0, 0, 1, 1], [], []>} : vector<8x16xf32>, vector<16x32xf32>, vector<8x32xf32> -> vector<8x32xf32>
    %665 = arith.addf %664, %428 : vector<8x32xf32>
    %666 = math.tanh %665 : vector<8x32xf32>
    %667 = arith.mulf %666, %666 : vector<8x32xf32>
    %cst_286 = arith.constant 1.000000e+00 : f32
    %668 = vector.broadcast %cst_286 : f32 to vector<8x32xf32>
    %669 = arith.subf %668, %667 : vector<8x32xf32>
    %cst_287 = arith.constant dense<0.000000e+00> : vector<8x16xf32>
    %670 = tpu.matmul %669, %426, %cst_287 {dimension_numbers = #tpu.dot_dimension_numbers<[1], [0], [0], [1], [0, 0, 1, 1], [], []>} : vector<8x32xf32>, vector<32x16xf32>, vector<8x16xf32> -> vector<8x16xf32>
    %cst_288 = arith.constant -6.250000e-02 : f32
    %671 = vector.broadcast %cst_288 : f32 to vector<8x16xf32>
    %672 = arith.mulf %671, %670 : vector<8x16xf32>
    %673 = arith.addf %663, %672 : vector<8x16xf32>
    %cst_289 = arith.constant dense<0.000000e+00> : vector<8x32xf32>
    %674 = tpu.matmul %673, %424, %cst_289 {dimension_numbers = #tpu.dot_dimension_numbers<[1], [0], [0], [1], [0, 0, 1, 1], [], []>} : vector<8x16xf32>, vector<16x32xf32>, vector<8x32xf32> -> vector<8x32xf32>
    %675 = arith.addf %674, %428 : vector<8x32xf32>
    %676 = math.tanh %675 : vector<8x32xf32>
    %677 = arith.mulf %676, %676 : vector<8x32xf32>
    %cst_290 = arith.constant 1.000000e+00 : f32
    %678 = vector.broadcast %cst_290 : f32 to vector<8x32xf32>
    %679 = arith.subf %678, %677 : vector<8x32xf32>
    %cst_291 = arith.constant dense<0.000000e+00> : vector<8x16xf32>
    %680 = tpu.matmul %679, %426, %cst_291 {dimension_numbers = #tpu.dot_dimension_numbers<[1], [0], [0], [1], [0, 0, 1, 1], [], []>} : vector<8x32xf32>, vector<32x16xf32>, vector<8x16xf32> -> vector<8x16xf32>
    %cst_292 = arith.constant -6.250000e-02 : f32
    %681 = vector.broadcast %cst_292 : f32 to vector<8x16xf32>
    %682 = arith.mulf %681, %680 : vector<8x16xf32>
    %683 = arith.addf %663, %682 : vector<8x16xf32>
    %cst_293 = arith.constant dense<0.000000e+00> : vector<8x32xf32>
    %684 = tpu.matmul %683, %424, %cst_293 {dimension_numbers = #tpu.dot_dimension_numbers<[1], [0], [0], [1], [0, 0, 1, 1], [], []>} : vector<8x16xf32>, vector<16x32xf32>, vector<8x32xf32> -> vector<8x32xf32>
    %685 = arith.addf %684, %428 : vector<8x32xf32>
    %686 = math.tanh %685 : vector<8x32xf32>
    %687 = arith.mulf %686, %686 : vector<8x32xf32>
    %cst_294 = arith.constant 1.000000e+00 : f32
    %688 = vector.broadcast %cst_294 : f32 to vector<8x32xf32>
    %689 = arith.subf %688, %687 : vector<8x32xf32>
    %cst_295 = arith.constant dense<0.000000e+00> : vector<8x16xf32>
    %690 = tpu.matmul %689, %426, %cst_295 {dimension_numbers = #tpu.dot_dimension_numbers<[1], [0], [0], [1], [0, 0, 1, 1], [], []>} : vector<8x32xf32>, vector<32x16xf32>, vector<8x16xf32> -> vector<8x16xf32>
    %cst_296 = arith.constant -1.250000e-01 : f32
    %691 = vector.broadcast %cst_296 : f32 to vector<8x16xf32>
    %692 = arith.mulf %691, %690 : vector<8x16xf32>
    %693 = arith.addf %663, %692 : vector<8x16xf32>
    %cst_297 = arith.constant dense<0.000000e+00> : vector<8x32xf32>
    %694 = tpu.matmul %693, %424, %cst_297 {dimension_numbers = #tpu.dot_dimension_numbers<[1], [0], [0], [1], [0, 0, 1, 1], [], []>} : vector<8x16xf32>, vector<16x32xf32>, vector<8x32xf32> -> vector<8x32xf32>
    %695 = arith.addf %694, %428 : vector<8x32xf32>
    %696 = math.tanh %695 : vector<8x32xf32>
    %697 = arith.mulf %696, %696 : vector<8x32xf32>
    %cst_298 = arith.constant 1.000000e+00 : f32
    %698 = vector.broadcast %cst_298 : f32 to vector<8x32xf32>
    %699 = arith.subf %698, %697 : vector<8x32xf32>
    %cst_299 = arith.constant dense<0.000000e+00> : vector<8x16xf32>
    %700 = tpu.matmul %699, %426, %cst_299 {dimension_numbers = #tpu.dot_dimension_numbers<[1], [0], [0], [1], [0, 0, 1, 1], [], []>} : vector<8x32xf32>, vector<32x16xf32>, vector<8x16xf32> -> vector<8x16xf32>
    %cst_300 = arith.constant 2.000000e+00 : f32
    %701 = vector.broadcast %cst_300 : f32 to vector<8x16xf32>
    %702 = arith.mulf %701, %680 : vector<8x16xf32>
    %703 = arith.addf %670, %702 : vector<8x16xf32>
    %cst_301 = arith.constant 2.000000e+00 : f32
    %704 = vector.broadcast %cst_301 : f32 to vector<8x16xf32>
    %705 = arith.mulf %704, %690 : vector<8x16xf32>
    %706 = arith.addf %703, %705 : vector<8x16xf32>
    %707 = arith.addf %706, %700 : vector<8x16xf32>
    %cst_302 = arith.constant -0.020833334 : f32
    %708 = vector.broadcast %cst_302 : f32 to vector<8x16xf32>
    %709 = arith.mulf %708, %707 : vector<8x16xf32>
    %710 = arith.addf %663, %709 : vector<8x16xf32>
    %c6_i32_303 = arith.constant 6 : i32
    %cst_304 = arith.constant dense<0.000000e+00> : vector<8x32xf32>
    %711 = tpu.matmul %710, %424, %cst_304 {dimension_numbers = #tpu.dot_dimension_numbers<[1], [0], [0], [1], [0, 0, 1, 1], [], []>} : vector<8x16xf32>, vector<16x32xf32>, vector<8x32xf32> -> vector<8x32xf32>
    %712 = arith.addf %711, %428 : vector<8x32xf32>
    %713 = math.tanh %712 : vector<8x32xf32>
    %714 = arith.mulf %713, %713 : vector<8x32xf32>
    %cst_305 = arith.constant 1.000000e+00 : f32
    %715 = vector.broadcast %cst_305 : f32 to vector<8x32xf32>
    %716 = arith.subf %715, %714 : vector<8x32xf32>
    %cst_306 = arith.constant dense<0.000000e+00> : vector<8x16xf32>
    %717 = tpu.matmul %716, %426, %cst_306 {dimension_numbers = #tpu.dot_dimension_numbers<[1], [0], [0], [1], [0, 0, 1, 1], [], []>} : vector<8x32xf32>, vector<32x16xf32>, vector<8x16xf32> -> vector<8x16xf32>
    %cst_307 = arith.constant -6.250000e-02 : f32
    %718 = vector.broadcast %cst_307 : f32 to vector<8x16xf32>
    %719 = arith.mulf %718, %717 : vector<8x16xf32>
    %720 = arith.addf %710, %719 : vector<8x16xf32>
    %cst_308 = arith.constant dense<0.000000e+00> : vector<8x32xf32>
    %721 = tpu.matmul %720, %424, %cst_308 {dimension_numbers = #tpu.dot_dimension_numbers<[1], [0], [0], [1], [0, 0, 1, 1], [], []>} : vector<8x16xf32>, vector<16x32xf32>, vector<8x32xf32> -> vector<8x32xf32>
    %722 = arith.addf %721, %428 : vector<8x32xf32>
    %723 = math.tanh %722 : vector<8x32xf32>
    %724 = arith.mulf %723, %723 : vector<8x32xf32>
    %cst_309 = arith.constant 1.000000e+00 : f32
    %725 = vector.broadcast %cst_309 : f32 to vector<8x32xf32>
    %726 = arith.subf %725, %724 : vector<8x32xf32>
    %cst_310 = arith.constant dense<0.000000e+00> : vector<8x16xf32>
    %727 = tpu.matmul %726, %426, %cst_310 {dimension_numbers = #tpu.dot_dimension_numbers<[1], [0], [0], [1], [0, 0, 1, 1], [], []>} : vector<8x32xf32>, vector<32x16xf32>, vector<8x16xf32> -> vector<8x16xf32>
    %cst_311 = arith.constant -6.250000e-02 : f32
    %728 = vector.broadcast %cst_311 : f32 to vector<8x16xf32>
    %729 = arith.mulf %728, %727 : vector<8x16xf32>
    %730 = arith.addf %710, %729 : vector<8x16xf32>
    %cst_312 = arith.constant dense<0.000000e+00> : vector<8x32xf32>
    %731 = tpu.matmul %730, %424, %cst_312 {dimension_numbers = #tpu.dot_dimension_numbers<[1], [0], [0], [1], [0, 0, 1, 1], [], []>} : vector<8x16xf32>, vector<16x32xf32>, vector<8x32xf32> -> vector<8x32xf32>
    %732 = arith.addf %731, %428 : vector<8x32xf32>
    %733 = math.tanh %732 : vector<8x32xf32>
    %734 = arith.mulf %733, %733 : vector<8x32xf32>
    %cst_313 = arith.constant 1.000000e+00 : f32
    %735 = vector.broadcast %cst_313 : f32 to vector<8x32xf32>
    %736 = arith.subf %735, %734 : vector<8x32xf32>
    %cst_314 = arith.constant dense<0.000000e+00> : vector<8x16xf32>
    %737 = tpu.matmul %736, %426, %cst_314 {dimension_numbers = #tpu.dot_dimension_numbers<[1], [0], [0], [1], [0, 0, 1, 1], [], []>} : vector<8x32xf32>, vector<32x16xf32>, vector<8x16xf32> -> vector<8x16xf32>
    %cst_315 = arith.constant -1.250000e-01 : f32
    %738 = vector.broadcast %cst_315 : f32 to vector<8x16xf32>
    %739 = arith.mulf %738, %737 : vector<8x16xf32>
    %740 = arith.addf %710, %739 : vector<8x16xf32>
    %cst_316 = arith.constant dense<0.000000e+00> : vector<8x32xf32>
    %741 = tpu.matmul %740, %424, %cst_316 {dimension_numbers = #tpu.dot_dimension_numbers<[1], [0], [0], [1], [0, 0, 1, 1], [], []>} : vector<8x16xf32>, vector<16x32xf32>, vector<8x32xf32> -> vector<8x32xf32>
    %742 = arith.addf %741, %428 : vector<8x32xf32>
    %743 = math.tanh %742 : vector<8x32xf32>
    %744 = arith.mulf %743, %743 : vector<8x32xf32>
    %cst_317 = arith.constant 1.000000e+00 : f32
    %745 = vector.broadcast %cst_317 : f32 to vector<8x32xf32>
    %746 = arith.subf %745, %744 : vector<8x32xf32>
    %cst_318 = arith.constant dense<0.000000e+00> : vector<8x16xf32>
    %747 = tpu.matmul %746, %426, %cst_318 {dimension_numbers = #tpu.dot_dimension_numbers<[1], [0], [0], [1], [0, 0, 1, 1], [], []>} : vector<8x32xf32>, vector<32x16xf32>, vector<8x16xf32> -> vector<8x16xf32>
    %cst_319 = arith.constant 2.000000e+00 : f32
    %748 = vector.broadcast %cst_319 : f32 to vector<8x16xf32>
    %749 = arith.mulf %748, %727 : vector<8x16xf32>
    %750 = arith.addf %717, %749 : vector<8x16xf32>
    %cst_320 = arith.constant 2.000000e+00 : f32
    %751 = vector.broadcast %cst_320 : f32 to vector<8x16xf32>
    %752 = arith.mulf %751, %737 : vector<8x16xf32>
    %753 = arith.addf %750, %752 : vector<8x16xf32>
    %754 = arith.addf %753, %747 : vector<8x16xf32>
    %cst_321 = arith.constant -0.020833334 : f32
    %755 = vector.broadcast %cst_321 : f32 to vector<8x16xf32>
    %756 = arith.mulf %755, %754 : vector<8x16xf32>
    %757 = arith.addf %710, %756 : vector<8x16xf32>
    %c7_i32_322 = arith.constant 7 : i32
    %cst_323 = arith.constant dense<0.000000e+00> : vector<8x32xf32>
    %758 = tpu.matmul %757, %424, %cst_323 {dimension_numbers = #tpu.dot_dimension_numbers<[1], [0], [0], [1], [0, 0, 1, 1], [], []>} : vector<8x16xf32>, vector<16x32xf32>, vector<8x32xf32> -> vector<8x32xf32>
    %759 = arith.addf %758, %428 : vector<8x32xf32>
    %760 = math.tanh %759 : vector<8x32xf32>
    %761 = arith.mulf %760, %760 : vector<8x32xf32>
    %cst_324 = arith.constant 1.000000e+00 : f32
    %762 = vector.broadcast %cst_324 : f32 to vector<8x32xf32>
    %763 = arith.subf %762, %761 : vector<8x32xf32>
    %cst_325 = arith.constant dense<0.000000e+00> : vector<8x16xf32>
    %764 = tpu.matmul %763, %426, %cst_325 {dimension_numbers = #tpu.dot_dimension_numbers<[1], [0], [0], [1], [0, 0, 1, 1], [], []>} : vector<8x32xf32>, vector<32x16xf32>, vector<8x16xf32> -> vector<8x16xf32>
    %cst_326 = arith.constant -6.250000e-02 : f32
    %765 = vector.broadcast %cst_326 : f32 to vector<8x16xf32>
    %766 = arith.mulf %765, %764 : vector<8x16xf32>
    %767 = arith.addf %757, %766 : vector<8x16xf32>
    %cst_327 = arith.constant dense<0.000000e+00> : vector<8x32xf32>
    %768 = tpu.matmul %767, %424, %cst_327 {dimension_numbers = #tpu.dot_dimension_numbers<[1], [0], [0], [1], [0, 0, 1, 1], [], []>} : vector<8x16xf32>, vector<16x32xf32>, vector<8x32xf32> -> vector<8x32xf32>
    %769 = arith.addf %768, %428 : vector<8x32xf32>
    %770 = math.tanh %769 : vector<8x32xf32>
    %771 = arith.mulf %770, %770 : vector<8x32xf32>
    %cst_328 = arith.constant 1.000000e+00 : f32
    %772 = vector.broadcast %cst_328 : f32 to vector<8x32xf32>
    %773 = arith.subf %772, %771 : vector<8x32xf32>
    %cst_329 = arith.constant dense<0.000000e+00> : vector<8x16xf32>
    %774 = tpu.matmul %773, %426, %cst_329 {dimension_numbers = #tpu.dot_dimension_numbers<[1], [0], [0], [1], [0, 0, 1, 1], [], []>} : vector<8x32xf32>, vector<32x16xf32>, vector<8x16xf32> -> vector<8x16xf32>
    %cst_330 = arith.constant -6.250000e-02 : f32
    %775 = vector.broadcast %cst_330 : f32 to vector<8x16xf32>
    %776 = arith.mulf %775, %774 : vector<8x16xf32>
    %777 = arith.addf %757, %776 : vector<8x16xf32>
    %cst_331 = arith.constant dense<0.000000e+00> : vector<8x32xf32>
    %778 = tpu.matmul %777, %424, %cst_331 {dimension_numbers = #tpu.dot_dimension_numbers<[1], [0], [0], [1], [0, 0, 1, 1], [], []>} : vector<8x16xf32>, vector<16x32xf32>, vector<8x32xf32> -> vector<8x32xf32>
    %779 = arith.addf %778, %428 : vector<8x32xf32>
    %780 = math.tanh %779 : vector<8x32xf32>
    %781 = arith.mulf %780, %780 : vector<8x32xf32>
    %cst_332 = arith.constant 1.000000e+00 : f32
    %782 = vector.broadcast %cst_332 : f32 to vector<8x32xf32>
    %783 = arith.subf %782, %781 : vector<8x32xf32>
    %cst_333 = arith.constant dense<0.000000e+00> : vector<8x16xf32>
    %784 = tpu.matmul %783, %426, %cst_333 {dimension_numbers = #tpu.dot_dimension_numbers<[1], [0], [0], [1], [0, 0, 1, 1], [], []>} : vector<8x32xf32>, vector<32x16xf32>, vector<8x16xf32> -> vector<8x16xf32>
    %cst_334 = arith.constant -1.250000e-01 : f32
    %785 = vector.broadcast %cst_334 : f32 to vector<8x16xf32>
    %786 = arith.mulf %785, %784 : vector<8x16xf32>
    %787 = arith.addf %757, %786 : vector<8x16xf32>
    %cst_335 = arith.constant dense<0.000000e+00> : vector<8x32xf32>
    %788 = tpu.matmul %787, %424, %cst_335 {dimension_numbers = #tpu.dot_dimension_numbers<[1], [0], [0], [1], [0, 0, 1, 1], [], []>} : vector<8x16xf32>, vector<16x32xf32>, vector<8x32xf32> -> vector<8x32xf32>
    %789 = arith.addf %788, %428 : vector<8x32xf32>
    %790 = math.tanh %789 : vector<8x32xf32>
    %791 = arith.mulf %790, %790 : vector<8x32xf32>
    %cst_336 = arith.constant 1.000000e+00 : f32
    %792 = vector.broadcast %cst_336 : f32 to vector<8x32xf32>
    %793 = arith.subf %792, %791 : vector<8x32xf32>
    %cst_337 = arith.constant dense<0.000000e+00> : vector<8x16xf32>
    %794 = tpu.matmul %793, %426, %cst_337 {dimension_numbers = #tpu.dot_dimension_numbers<[1], [0], [0], [1], [0, 0, 1, 1], [], []>} : vector<8x32xf32>, vector<32x16xf32>, vector<8x16xf32> -> vector<8x16xf32>
    %cst_338 = arith.constant 2.000000e+00 : f32
    %795 = vector.broadcast %cst_338 : f32 to vector<8x16xf32>
    %796 = arith.mulf %795, %774 : vector<8x16xf32>
    %797 = arith.addf %764, %796 : vector<8x16xf32>
    %cst_339 = arith.constant 2.000000e+00 : f32
    %798 = vector.broadcast %cst_339 : f32 to vector<8x16xf32>
    %799 = arith.mulf %798, %784 : vector<8x16xf32>
    %800 = arith.addf %797, %799 : vector<8x16xf32>
    %801 = arith.addf %800, %794 : vector<8x16xf32>
    %cst_340 = arith.constant -0.020833334 : f32
    %802 = vector.broadcast %cst_340 : f32 to vector<8x16xf32>
    %803 = arith.mulf %802, %801 : vector<8x16xf32>
    %804 = arith.addf %757, %803 : vector<8x16xf32>
    %cst_341 = arith.constant 0.000000e+00 : f32
    %805 = vector.broadcast %cst_341 : f32 to vector<8x48xf32>
    %806 = tpu.concatenate %12, %804, %393, %423, %404, %805 in 1 : vector<8x16xf32>, vector<8x16xf32>, vector<8x16xf32>, vector<8x16xf32>, vector<8x16xf32>, vector<8x48xf32> -> vector<8x128xf32>
    %c0_342 = arith.constant 0 : index
    %c0_343 = arith.constant 0 : index
    %807 = vector.load %arg21[%c0_342, %c0_343] : memref<8x128xf32, #tpu.memory_space<vmem>>, vector<8x128xf32>
    tpu.vector_store %arg21[%c0_342, %c0_343], %806 {strides = array<i32>} : memref<8x128xf32, #tpu.memory_space<vmem>>, vector<8x128xf32>,
    return
  }
  func.func @transform_0(%arg0: i32) -> (i32, i32) {
    %c0_i32 = arith.constant 0 : i32
    %c0_i32_0 = arith.constant 0 : i32
    return %arg0, %c0_i32 : i32, i32
  }
  func.func @transform_1(%arg0: i32) -> (i32, i32) {
    %c0_i32 = arith.constant 0 : i32
    %c0_i32_0 = arith.constant 0 : i32
    return %arg0, %c0_i32 : i32, i32
  }
  func.func @transform_2(%arg0: i32) -> (i32, i32) {
    %c0_i32 = arith.constant 0 : i32
    %c0_i32_0 = arith.constant 0 : i32
    %c0_i32_1 = arith.constant 0 : i32
    return %c0_i32, %c0_i32_0 : i32, i32
  }
  func.func @transform_3(%arg0: i32) -> (i32, i32) {
    %c0_i32 = arith.constant 0 : i32
    %c0_i32_0 = arith.constant 0 : i32
    %c0_i32_1 = arith.constant 0 : i32
    return %c0_i32, %c0_i32_0 : i32, i32
  }
  func.func @transform_4(%arg0: i32) -> (i32, i32) {
    %c0_i32 = arith.constant 0 : i32
    %c0_i32_0 = arith.constant 0 : i32
    %c0_i32_1 = arith.constant 0 : i32
    return %c0_i32, %c0_i32_0 : i32, i32
  }
  func.func @transform_5(%arg0: i32) -> (i32, i32) {
    %c0_i32 = arith.constant 0 : i32
    %c0_i32_0 = arith.constant 0 : i32
    %c0_i32_1 = arith.constant 0 : i32
    return %c0_i32, %c0_i32_0 : i32, i32
  }
  func.func @transform_6(%arg0: i32) -> (i32, i32) {
    %c0_i32 = arith.constant 0 : i32
    %c0_i32_0 = arith.constant 0 : i32
    %c0_i32_1 = arith.constant 0 : i32
    return %c0_i32, %c0_i32_0 : i32, i32
  }
  func.func @transform_7(%arg0: i32) -> (i32, i32) {
    %c0_i32 = arith.constant 0 : i32
    %c0_i32_0 = arith.constant 0 : i32
    %c0_i32_1 = arith.constant 0 : i32
    return %c0_i32, %c0_i32_0 : i32, i32
  }
  func.func @transform_8(%arg0: i32) -> (i32, i32) {
    %c0_i32 = arith.constant 0 : i32
    %c0_i32_0 = arith.constant 0 : i32
    %c0_i32_1 = arith.constant 0 : i32
    return %c0_i32, %c0_i32_0 : i32, i32
  }
  func.func @transform_9(%arg0: i32) -> (i32, i32) {
    %c0_i32 = arith.constant 0 : i32
    %c0_i32_0 = arith.constant 0 : i32
    %c0_i32_1 = arith.constant 0 : i32
    return %c0_i32, %c0_i32_0 : i32, i32
  }
  func.func @transform_10(%arg0: i32) -> (i32, i32) {
    %c0_i32 = arith.constant 0 : i32
    %c0_i32_0 = arith.constant 0 : i32
    %c0_i32_1 = arith.constant 0 : i32
    return %c0_i32, %c0_i32_0 : i32, i32
  }
  func.func @transform_11(%arg0: i32) -> (i32, i32) {
    %c0_i32 = arith.constant 0 : i32
    %c0_i32_0 = arith.constant 0 : i32
    %c0_i32_1 = arith.constant 0 : i32
    return %c0_i32, %c0_i32_0 : i32, i32
  }
  func.func @transform_12(%arg0: i32) -> (i32, i32) {
    %c0_i32 = arith.constant 0 : i32
    %c0_i32_0 = arith.constant 0 : i32
    %c0_i32_1 = arith.constant 0 : i32
    return %c0_i32, %c0_i32_0 : i32, i32
  }
  func.func @transform_13(%arg0: i32) -> (i32, i32) {
    %c0_i32 = arith.constant 0 : i32
    %c0_i32_0 = arith.constant 0 : i32
    %c0_i32_1 = arith.constant 0 : i32
    return %c0_i32, %c0_i32_0 : i32, i32
  }
  func.func @transform_14(%arg0: i32) -> (i32, i32) {
    %c0_i32 = arith.constant 0 : i32
    %c0_i32_0 = arith.constant 0 : i32
    %c0_i32_1 = arith.constant 0 : i32
    return %c0_i32, %c0_i32_0 : i32, i32
  }
  func.func @transform_15(%arg0: i32) -> (i32, i32) {
    %c0_i32 = arith.constant 0 : i32
    %c0_i32_0 = arith.constant 0 : i32
    %c0_i32_1 = arith.constant 0 : i32
    return %c0_i32, %c0_i32_0 : i32, i32
  }
  func.func @transform_16(%arg0: i32) -> (i32, i32) {
    %c0_i32 = arith.constant 0 : i32
    %c0_i32_0 = arith.constant 0 : i32
    %c0_i32_1 = arith.constant 0 : i32
    return %c0_i32, %c0_i32_0 : i32, i32
  }
  func.func @transform_17(%arg0: i32) -> (i32, i32) {
    %c0_i32 = arith.constant 0 : i32
    %c0_i32_0 = arith.constant 0 : i32
    %c0_i32_1 = arith.constant 0 : i32
    return %c0_i32, %c0_i32_0 : i32, i32
  }
  func.func @transform_18(%arg0: i32) -> (i32, i32) {
    %c0_i32 = arith.constant 0 : i32
    %c0_i32_0 = arith.constant 0 : i32
    %c0_i32_1 = arith.constant 0 : i32
    return %c0_i32, %c0_i32_0 : i32, i32
  }
  func.func @transform_19(%arg0: i32) -> (i32, i32) {
    %c0_i32 = arith.constant 0 : i32
    %c0_i32_0 = arith.constant 0 : i32
    %c0_i32_1 = arith.constant 0 : i32
    return %c0_i32, %c0_i32_0 : i32, i32
  }
  func.func @transform_20(%arg0: i32) -> (i32, i32) {
    %c0_i32 = arith.constant 0 : i32
    %c0_i32_0 = arith.constant 0 : i32
    return %arg0, %c0_i32 : i32, i32
  }
}

</mosaic_0001>

<bundles_post_ra>
// kernel: tpu_custom_call.1
= control target key start
LH: loop header
LB: loop body
LE: loop exit
PB: predicated region body
PF: predicated region fallthrough
CT: control target
= control target key end

     0   :  { %s14286_s0 = inlined_call_operand.vmem [shape: f32[8,8], index: 0, kind: input, shape index: {}]   ;;  %s14287_s1 = inlined_call_operand.vmem [shape: f32[8,8], index: 1, kind: input, shape index: {}]   ;;  %s14288_s2 = inlined_call_operand.vmem [shape: f32[8,32], index: 2, kind: input, shape index: {}]   ;;  %s14289_s3 = inlined_call_operand.vmem [shape: f32[1,32], index: 3, kind: input, shape index: {}]   ;;  %s14290_s4 = inlined_call_operand.vmem [shape: f32[32,8], index: 4, kind: input, shape index: {}]   ;;  %s14291_s5 = inlined_call_operand.vmem [shape: f32[1,8], index: 5, kind: input, shape index: {}]   ;;  %s14292_s6 = inlined_call_operand.vmem [shape: f32[16,32], index: 6, kind: input, shape index: {}]   ;;  %s14293_s7 = inlined_call_operand.vmem [shape: f32[1,32], index: 7, kind: input, shape index: {}]   ;;  %s14294_s8 = inlined_call_operand.vmem [shape: f32[32,16], index: 8, kind: input, shape index: {}]   ;;  %s14295_s9 = inlined_call_operand.vmem [shape: f32[16,32], index: 9, kind: input, shape index: {}]   ;;  %s14296_s10 = inlined_call_operand.vmem [shape: f32[1,32], index: 10, kind: input, shape index: {}]   ;;  %s14297_s11 = inlined_call_operand.vmem [shape: f32[32,16], index: 11, kind: input, shape index: {}]   ;;  %s14298_s12 = inlined_call_operand.vmem [shape: f32[16,32], index: 12, kind: input, shape index: {}]   ;;  %s14299_s13 = inlined_call_operand.vmem [shape: f32[1,32], index: 13, kind: input, shape index: {}]   ;;  %s14300_s14 = inlined_call_operand.vmem [shape: f32[32,16], index: 14, kind: input, shape index: {}]   ;;  %s14301_s15 = inlined_call_operand.vmem [shape: f32[1,16], index: 15, kind: input, shape index: {}]   ;;  %s14302_s16 = inlined_call_operand.vmem [shape: f32[8,32], index: 16, kind: input, shape index: {}]   ;;  %s14303_s17 = inlined_call_operand.vmem [shape: f32[1,32], index: 17, kind: input, shape index: {}]   ;;  %s14304_s18 = inlined_call_operand.vmem [shape: f32[32,16], index: 18, kind: input, shape index: {}]   ;;  %s14305_s19 = inlined_call_operand.vmem [shape: f32[1,16], index: 19, kind: input, shape index: {}]   ;;  %s14306_s20 = inlined_call_operand.hbm [shape: f32[8,128], index: 20, kind: output, shape index: {}]  }
   0x1   :  { %14309 = sst [smem:[#allocation5_spill]] %s14286_s0 }
   0x2   :  { %14310 = sst [smem:[#allocation6_spill]] %s14287_s1 }
   0x3   :  { %14311 = sst [smem:[#allocation7_spill]] %s14288_s2 }
   0x4   :  { %14312 = sst [smem:[#allocation8_spill]] %s14289_s3 }
   0x5   :  { %14313 = sst [smem:[#allocation9_spill]] %s14290_s4 }
   0x6   :  { %14314 = sst [smem:[#allocation10_spill]] %s14296_s10 }
   0x7   :  { %s14315_s23 = sld [smem:[#allocation7_spill]]  ;;  %s14316_s10 = sld [smem:[#allocation5_spill]]  ;;  %vm80_vm0 = vcmask 64512   ;;  %v13038_v2 = vmov 0.0   ;;  %vm13039_vm1 = vmmov 0  }
   0x8   :  { %11067 = vmatprep.subr.mxu0 %v13038_v2  ;;  %11069 = vmatprep.mubr.msk.f32.mxu0 %vm13039_vm1, %v13038_v2 }
   0xd   :  { %v67_v0 = vld [vmem:[%s14315_s23] sm:$0xff] }
   0xe   :  { %v66_v1 = vld [vmem:[%s14316_s10] sm:$0xff] }
   0xf   :  { %25 = vsyncpa [#allocation3], 0  ;;  %11068 = vmatpush3.msra.mxu0 %v67_v0  ;;  %11080 = vmatprep.mubr.msk.f32.mxu1 %vm13039_vm1, %v13038_v2  ;;  %s14317_s3 = sld [smem:[#allocation9_spill]]  ;;  %v13040_v6 = vmov 0.0|0.0   ;;  %s14318_s1 = sld [smem:[#allocation8_spill]]  ;;  %vm161_vm2 = vcmask 261120  }
  0x10   :  { %11070 = vmatmul.mubr.msk.f32.vlgmr.msra.gmra.mrb[0].mxu0 %vm80_vm0, %v66_v1  ;;  %12269 = vmatprep.subr.bf16.mxu1 %v13040_v6  ;;  %v240_v15 = vld [vmem:[%s14292_s6] sm:$0xff]  ;;  %v241_v16 = vld [vmem:[%s14292_s6 + $0x8] sm:$0xff]  ;;  %vm253_vm3 = vcmask 130048   ;;  %v245_v27 = vld [vmem:[%s14294_s8 + $0x10] sm:$0xff]  ;;  %s13042_s2 = smov 32   ;;  %s13043_s0 = smov 120  }
  0x11   :  { %11087 = vmatprep.mubr.msk.f32.mxu0 %vm13039_vm1, %v13038_v2  ;;  %12275 = vmatprep.subr.bf16.mxu0 %v13040_v6  ;;  %v13195_v17 = vpack.c.bf16 %v241_v16, %v240_v15  ;;  %v10393_v18 = vld [vmem:[%s14291_s5] ss:$0 sm:$0xff]  ;;  %v244_v25 = vld [vmem:[%s14294_s8 + $0x8] sm:$0xff]  ;;  %v246_v28 = vld [vmem:[%s14294_s8 + $0x18] sm:$0xff]  ;;  %vm10370_vm4 = vcmask 392192   ;;  %vm10372_vm5 = vcmask 523264  }
  0x12   :  { %v243_v24 = vld [vmem:[%s14294_s8] sm:$0xff]  ;;  %v13227_v29 = vpack.c.bf16 %v246_v28, %v245_v27  ;;  %s14319_s8 = sld [smem:[#allocation6_spill]]  ;;  %vm10374_vm6 = vcmask 654336  }
  0x13   :  { %12277 = vmatpush3.bf16.msra.mxu0 %v13195_v17  ;;  %v13215_v26 = vpack.c.bf16 %v244_v25, %v243_v24  ;;  %v13236_v30 = vld [vmem:[%s14293_s7] ss:$0 sm:$0xff] }
  0x14   :  { %12278 = vmatprep.subr.bf16.mxu0 %v13040_v6 }
  0x15   :  { %v69_v3 = vld [vmem:[%s14317_s3] sm:$0xff]  ;;  %v70_v4 = vld [vmem:[%s14317_s3 + $0x8] sm:$0xff]  ;;  %v71_v5 = vld [vmem:[%s14317_s3 + $0x10] sm:$0xff] }
  0x16   :  { %v12270_v7 = vpack.c.bf16 %v70_v4, %v69_v3  ;;  %v72_v8 = vld [vmem:[%s14317_s3 + $0x18] sm:$0xff]  ;;  %v10391_v10 = vld [vmem:[%s14318_s1] ss:$0 sm:$0xff]  ;;  %s13041_s3 = smov 8   ;;  %s13046_s1 = smov 64  }
  0x17   :  { %v12273_v9 = vpack.c.bf16 %v72_v8, %v71_v5 }
  0x18   :  { %12271 = vmatpush3.bf16.msra.mxu1 %v12270_v7 }
  0x19   :  { %12272 = vmatprep.subr.bf16.mxu1 %v13040_v6 }
  0x1c   :  { %12274 = vmatpush3.bf16.msra.mxu1 %v12273_v9 }
  0x1d   :  { %12287 = vmatprep.subr.bf16.mxu1 %v13040_v6 }
  0xe3   :  { %v150_v11 = vpop.f32.mrb[0].mxu0 }
  0xe4   :  { %v151_v12 = vadd.f32 %v10391_v10, %v150_v11  ;;  %v11071_v13 = vpop.f32.mrb[1].mxu0 }
  0xe6   :  { %12876 = vtanh.f32 %v151_v12 }
  0xf0   :  { %v12877_v14 = vpop.eup %12876 }
  0xf1   :  { %11081 = vmatmul.mubr.msk.f32.vlgmr.msra.gmra.mrb[0].mxu1 %vm161_vm2, %v12877_v14 }
  0xf2   :  { %11116 = vmatprep.mubr.msk.f32.mxu1 %vm13039_vm1, %v13038_v2  ;;  %12289 = vmatpush3.bf16.msra.mxu1 %v13215_v26 }
  0xf3   :  { %12290 = vmatprep.subr.bf16.mxu1 %v13040_v6 }
  0xf6   :  { %12292 = vmatpush3.bf16.msra.mxu1 %v13227_v29 }
  0xf7   :  { %12302 = vmatprep.subr.bf16.mxu1 %v13040_v6 }
 0x1c4   :  { %v231_v19 = vpop.f32.mrb[0].mxu1 }
 0x1c5   :  { %v232_v20 = vadd.f32 %v10393_v18, %v231_v19  ;;  %v11082_v21 = vpop.f32.mrb[1].mxu1 }
 0x1c7   :  { %236 = vrot.lane.b32.xlu0 %v232_v20, %s13041_s3 }
 0x239   :  { %v237_v22 = vpop.permute.xlu0 %236 }
 0x23a   :  { %v13203_v23 = vsel %vm80_vm0, %v66_v1, %v237_v22 }
 0x23b   :  { %11088 = vmatmul.mubr.msk.f32.vlgmr.msra.gmra.mrb[2].mxu0 %vm253_vm3, %v13203_v23 }
 0x23c   :  { %11098 = vmatprep.mubr.msk.f32.mxu0 %vm13039_vm1, %v13038_v2  ;;  %12280 = vmatpush3.bf16.msra.mxu0 %v13215_v26 }
 0x23d   :  { %12281 = vmatprep.subr.bf16.mxu0 %v13040_v6 }
 0x240   :  { %12283 = vmatpush3.bf16.msra.mxu0 %v13227_v29 }
 0x241   :  { %12284 = vmatprep.subr.bf16.mxu0 %v13040_v6 }
 0x30e   :  { %v323_v31 = vpop.f32.mrb[2].mxu0 }
 0x30f   :  { %v324_v32 = vadd.f32 %v13236_v30, %v323_v31  ;;  %v11089_v33 = vpop.f32.mrb[3].mxu0 }
 0x311   :  { %12878 = vtanh.f32 %v324_v32 }
 0x31b   :  { %v12879_v34 = vpop.eup %12878 }
 0x31c   :  { %v328_v35 = vmul.f32 %v12879_v34, %v12879_v34 }
 0x31e   :  { %v329_v36 = vsub.f32 1.0, %v328_v35 }
 0x320   :  { %11099 = vmatmul.mubr.msk.f32.vlgmr.msra.gmra.mrb[4].mxu0 %vm161_vm2, %v329_v36 }
 0x321   :  { %12286 = vmatpush3.bf16.msra.mxu0 %v13195_v17  ;;  %11105 = vmatprep.mubr.msk.f32.mxu0 %vm13039_vm1, %v13038_v2 }
 0x322   :  { %12293 = vmatprep.subr.bf16.mxu0 %v13040_v6 }
 0x3f3   :  { %v399_v37 = vpop.f32.mrb[4].mxu0 }
 0x3f4   :  { %v403_v38 = vmul.f32 0.0625, %v399_v37  ;;  %v11100_v39 = vpop.f32.mrb[5].mxu0 }
 0x3f6   :  { %v404_v40 = vadd.f32 %v403_v38, %v13203_v23 }
 0x3f8   :  { %11106 = vmatmul.mubr.msk.f32.vlgmr.msra.gmra.mrb[6].mxu0 %vm253_vm3, %v404_v40 }
 0x3f9   :  { %12295 = vmatpush3.bf16.msra.mxu0 %v13195_v17  ;;  %11123 = vmatprep.mubr.msk.f32.mxu0 %vm13039_vm1, %v13038_v2 }
 0x3fa   :  { %12296 = vmatprep.subr.bf16.mxu0 %v13040_v6 }
 0x4cb   :  { %v474_v41 = vpop.f32.mrb[6].mxu0 }
 0x4cc   :  { %v475_v42 = vadd.f32 %v13236_v30, %v474_v41  ;;  %v11107_v43 = vpop.f32.mrb[7].mxu0 }
 0x4ce   :  { %12880 = vtanh.f32 %v475_v42 }
 0x4d8   :  { %v12881_v44 = vpop.eup %12880 }
 0x4d9   :  { %v479_v45 = vmul.f32 %v12881_v44, %v12881_v44 }
 0x4db   :  { %v480_v46 = vsub.f32 1.0, %v479_v45 }
 0x4dd   :  { %11117 = vmatmul.mubr.msk.f32.vlgmr.msra.gmra.mrb[2].mxu1 %vm161_vm2, %v480_v46 }
 0x4de   :  { %12304 = vmatpush3.bf16.msra.mxu1 %v13195_v17  ;;  %11141 = vmatprep.mubr.msk.f32.mxu1 %vm13039_vm1, %v13038_v2 }
 0x4df   :  { %12305 = vmatprep.subr.bf16.mxu1 %v13040_v6 }
 0x5b0   :  { %v550_v47 = vpop.f32.mrb[2].mxu1 }
 0x5b1   :  { %v554_v48 = vmul.f32 0.0625, %v550_v47  ;;  %v856_v49 = vmul.f32 2.0, %v550_v47  ;;  %v11118_v50 = vpop.f32.mrb[3].mxu1 }
 0x5b3   :  { %v555_v51 = vadd.f32 %v554_v48, %v13203_v23  ;;  %v857_v52 = vadd.f32 %v856_v49, %v399_v37 }
 0x5b5   :  { %11124 = vmatmul.mubr.msk.f32.vlgmr.msra.gmra.mrb[8].mxu0 %vm253_vm3, %v555_v51 }
 0x5b6   :  { %12298 = vmatpush3.bf16.msra.mxu0 %v13215_v26  ;;  %11134 = vmatprep.mubr.msk.f32.mxu0 %vm13039_vm1, %v13038_v2 }
 0x5b7   :  { %12299 = vmatprep.subr.bf16.mxu0 %v13040_v6 }
 0x5ba   :  { %12301 = vmatpush3.bf16.msra.mxu0 %v13227_v29 }
 0x5bb   :  { %12311 = vmatprep.subr.bf16.mxu0 %v13040_v6 }
 0x688   :  { %v625_v53 = vpop.f32.mrb[8].mxu0 }
 0x689   :  { %v626_v54 = vadd.f32 %v13236_v30, %v625_v53  ;;  %v11125_v55 = vpop.f32.mrb[9].mxu0 }
 0x68b   :  { %12882 = vtanh.f32 %v626_v54 }
 0x695   :  { %v12883_v56 = vpop.eup %12882 }
 0x696   :  { %v630_v57 = vmul.f32 %v12883_v56, %v12883_v56 }
 0x698   :  { %v631_v58 = vsub.f32 1.0, %v630_v57 }
 0x69a   :  { %11135 = vmatmul.mubr.msk.f32.vlgmr.msra.gmra.mrb[10].mxu0 %vm161_vm2, %v631_v58 }
 0x69b   :  { %12313 = vmatpush3.bf16.msra.mxu0 %v13195_v17  ;;  %11159 = vmatprep.mubr.msk.f32.mxu0 %vm13039_vm1, %v13038_v2 }
 0x69c   :  { %12314 = vmatprep.subr.bf16.mxu0 %v13040_v6 }
 0x76d   :  { %v701_v59 = vpop.f32.mrb[10].mxu0 }
 0x76e   :  { %v705_v60 = vmul.f32 0.125, %v701_v59  ;;  %v858_v61 = vmul.f32 2.0, %v701_v59  ;;  %v11136_v62 = vpop.f32.mrb[11].mxu0 }
 0x770   :  { %v706_v63 = vadd.f32 %v705_v60, %v13203_v23  ;;  %v859_v0 = vadd.f32 %v858_v61, %v857_v52 }
 0x772   :  { %11142 = vmatmul.mubr.msk.f32.vlgmr.msra.gmra.mrb[4].mxu1 %vm253_vm3, %v706_v63 }
 0x773   :  { %12307 = vmatpush3.bf16.msra.mxu1 %v13215_v26  ;;  %11152 = vmatprep.mubr.msk.f32.mxu1 %vm13039_vm1, %v13038_v2 }
 0x774   :  { %12308 = vmatprep.subr.bf16.mxu1 %v13040_v6 }
 0x777   :  { %12310 = vmatpush3.bf16.msra.mxu1 %v13227_v29 }
 0x778   :  { %12320 = vmatprep.subr.bf16.mxu1 %v13040_v6 }
 0x845   :  { %v776_v1 = vpop.f32.mrb[4].mxu1 }
 0x846   :  { %v777_v3 = vadd.f32 %v13236_v30, %v776_v1  ;;  %v11143_v4 = vpop.f32.mrb[5].mxu1 }
 0x848   :  { %12884 = vtanh.f32 %v777_v3 }
 0x852   :  { %v12885_v5 = vpop.eup %12884 }
 0x853   :  { %v781_v7 = vmul.f32 %v12885_v5, %v12885_v5 }
 0x855   :  { %v782_v8 = vsub.f32 1.0, %v781_v7 }
 0x857   :  { %11153 = vmatmul.mubr.msk.f32.vlgmr.msra.gmra.mrb[6].mxu1 %vm161_vm2, %v782_v8 }
 0x858   :  { %12322 = vmatpush3.bf16.msra.mxu1 %v13195_v17  ;;  %11177 = vmatprep.mubr.msk.f32.mxu1 %vm13039_vm1, %v13038_v2 }
 0x859   :  { %12323 = vmatprep.subr.bf16.mxu1 %v13040_v6 }
 0x92a   :  { %v852_v9 = vpop.f32.mrb[6].mxu1 }
 0x92b   :  { %v860_v10 = vadd.f32 %v859_v0, %v852_v9  ;;  %v11154_v11 = vpop.f32.mrb[7].mxu1 }
 0x92d   :  { %v861_v12 = vmul.f32 0.020833334, %v860_v10 }
 0x92f   :  { %v13285_v13 = vadd.f32 %v861_v12, %v13203_v23 }
 0x931   :  { %11160 = vmatmul.mubr.msk.f32.vlgmr.msra.gmra.mrb[12].mxu0 %vm253_vm3, %v13285_v13 }
 0x932   :  { %12316 = vmatpush3.bf16.msra.mxu0 %v13215_v26  ;;  %11170 = vmatprep.mubr.msk.f32.mxu0 %vm13039_vm1, %v13038_v2 }
 0x933   :  { %12317 = vmatprep.subr.bf16.mxu0 %v13040_v6 }
 0x936   :  { %12319 = vmatpush3.bf16.msra.mxu0 %v13227_v29 }
 0x937   :  { %12329 = vmatprep.subr.bf16.mxu0 %v13040_v6 }
 0xa04   :  { %v932_v14 = vpop.f32.mrb[12].mxu0 }
 0xa05   :  { %v933_v15 = vadd.f32 %v13236_v30, %v932_v14  ;;  %v11161_v16 = vpop.f32.mrb[13].mxu0 }
 0xa07   :  { %12886 = vtanh.f32 %v933_v15 }
 0xa11   :  { %v12887_v18 = vpop.eup %12886 }
 0xa12   :  { %v937_v19 = vmul.f32 %v12887_v18, %v12887_v18 }
 0xa14   :  { %v938_v20 = vsub.f32 1.0, %v937_v19 }
 0xa16   :  { %11171 = vmatmul.mubr.msk.f32.vlgmr.msra.gmra.mrb[14].mxu0 %vm161_vm2, %v938_v20 }
 0xa17   :  { %12331 = vmatpush3.bf16.msra.mxu0 %v13195_v17  ;;  %11195 = vmatprep.mubr.msk.f32.mxu0 %vm13039_vm1, %v13038_v2 }
 0xa18   :  { %12332 = vmatprep.subr.bf16.mxu0 %v13040_v6 }
 0xae9   :  { %v1008_v21 = vpop.f32.mrb[14].mxu0 }
 0xaea   :  { %v1012_v22 = vmul.f32 0.0625, %v1008_v21  ;;  %v11172_v24 = vpop.f32.mrb[15].mxu0 }
 0xaec   :  { %v1013_v25 = vadd.f32 %v1012_v22, %v13285_v13 }
 0xaee   :  { %11178 = vmatmul.mubr.msk.f32.vlgmr.msra.gmra.mrb[8].mxu1 %vm253_vm3, %v1013_v25 }
 0xaef   :  { %12325 = vmatpush3.bf16.msra.mxu1 %v13215_v26  ;;  %11188 = vmatprep.mubr.msk.f32.mxu1 %vm13039_vm1, %v13038_v2 }
 0xaf0   :  { %12326 = vmatprep.subr.bf16.mxu1 %v13040_v6 }
 0xaf3   :  { %12328 = vmatpush3.bf16.msra.mxu1 %v13227_v29 }
 0xaf4   :  { %12338 = vmatprep.subr.bf16.mxu1 %v13040_v6 }
 0xbc1   :  { %v1083_v27 = vpop.f32.mrb[8].mxu1 }
 0xbc2   :  { %v1084_v28 = vadd.f32 %v13236_v30, %v1083_v27  ;;  %v11179_v31 = vpop.f32.mrb[9].mxu1 }
 0xbc4   :  { %12888 = vtanh.f32 %v1084_v28 }
 0xbce   :  { %v12889_v32 = vpop.eup %12888 }
 0xbcf   :  { %v1088_v33 = vmul.f32 %v12889_v32, %v12889_v32 }
 0xbd1   :  { %v1089_v34 = vsub.f32 1.0, %v1088_v33 }
 0xbd3   :  { %11189 = vmatmul.mubr.msk.f32.vlgmr.msra.gmra.mrb[10].mxu1 %vm161_vm2, %v1089_v34 }
 0xbd4   :  { %12340 = vmatpush3.bf16.msra.mxu1 %v13195_v17  ;;  %11213 = vmatprep.mubr.msk.f32.mxu1 %vm13039_vm1, %v13038_v2 }
 0xbd5   :  { %12341 = vmatprep.subr.bf16.mxu1 %v13040_v6 }
 0xca6   :  { %v1159_v35 = vpop.f32.mrb[10].mxu1 }
 0xca7   :  { %v1163_v36 = vmul.f32 0.0625, %v1159_v35  ;;  %v1465_v37 = vmul.f32 2.0, %v1159_v35  ;;  %v11190_v38 = vpop.f32.mrb[11].mxu1 }
 0xca9   :  { %v1164_v39 = vadd.f32 %v1163_v36, %v13285_v13  ;;  %v1466_v40 = vadd.f32 %v1465_v37, %v1008_v21 }
 0xcab   :  { %11196 = vmatmul.mubr.msk.f32.vlgmr.msra.gmra.mrb[16].mxu0 %vm253_vm3, %v1164_v39 }
 0xcac   :  { %12334 = vmatpush3.bf16.msra.mxu0 %v13215_v26  ;;  %11206 = vmatprep.mubr.msk.f32.mxu0 %vm13039_vm1, %v13038_v2 }
 0xcad   :  { %12335 = vmatprep.subr.bf16.mxu0 %v13040_v6 }
 0xcb0   :  { %12337 = vmatpush3.bf16.msra.mxu0 %v13227_v29 }
 0xcb1   :  { %12347 = vmatprep.subr.bf16.mxu0 %v13040_v6 }
 0xd7e   :  { %v1234_v41 = vpop.f32.mrb[16].mxu0 }
 0xd7f   :  { %v1235_v42 = vadd.f32 %v13236_v30, %v1234_v41  ;;  %v11197_v43 = vpop.f32.mrb[17].mxu0 }
 0xd81   :  { %12890 = vtanh.f32 %v1235_v42 }
 0xd8b   :  { %v12891_v44 = vpop.eup %12890 }
 0xd8c   :  { %v1239_v45 = vmul.f32 %v12891_v44, %v12891_v44 }
 0xd8e   :  { %v1240_v46 = vsub.f32 1.0, %v1239_v45 }
 0xd90   :  { %11207 = vmatmul.mubr.msk.f32.vlgmr.msra.gmra.mrb[18].mxu0 %vm161_vm2, %v1240_v46 }
 0xd91   :  { %12349 = vmatpush3.bf16.msra.mxu0 %v13195_v17  ;;  %11231 = vmatprep.mubr.msk.f32.mxu0 %vm13039_vm1, %v13038_v2 }
 0xd92   :  { %12350 = vmatprep.subr.bf16.mxu0 %v13040_v6 }
 0xe63   :  { %v1310_v47 = vpop.f32.mrb[18].mxu0 }
 0xe64   :  { %v1314_v48 = vmul.f32 0.125, %v1310_v47  ;;  %v1467_v49 = vmul.f32 2.0, %v1310_v47  ;;  %v11208_v50 = vpop.f32.mrb[19].mxu0 }
 0xe66   :  { %v1315_v51 = vadd.f32 %v1314_v48, %v13285_v13  ;;  %v1468_v52 = vadd.f32 %v1467_v49, %v1466_v40 }
 0xe68   :  { %11214 = vmatmul.mubr.msk.f32.vlgmr.msra.gmra.mrb[12].mxu1 %vm253_vm3, %v1315_v51 }
 0xe69   :  { %12343 = vmatpush3.bf16.msra.mxu1 %v13215_v26  ;;  %11224 = vmatprep.mubr.msk.f32.mxu1 %vm13039_vm1, %v13038_v2 }
 0xe6a   :  { %12344 = vmatprep.subr.bf16.mxu1 %v13040_v6 }
 0xe6d   :  { %12346 = vmatpush3.bf16.msra.mxu1 %v13227_v29 }
 0xe6e   :  { %12356 = vmatprep.subr.bf16.mxu1 %v13040_v6 }
 0xf3b   :  { %v1385_v53 = vpop.f32.mrb[12].mxu1 }
 0xf3c   :  { %v1386_v54 = vadd.f32 %v13236_v30, %v1385_v53  ;;  %v11215_v55 = vpop.f32.mrb[13].mxu1 }
 0xf3e   :  { %12892 = vtanh.f32 %v1386_v54 }
 0xf48   :  { %v12893_v56 = vpop.eup %12892 }
 0xf49   :  { %v1390_v57 = vmul.f32 %v12893_v56, %v12893_v56 }
 0xf4b   :  { %v1391_v58 = vsub.f32 1.0, %v1390_v57 }
 0xf4d   :  { %11225 = vmatmul.mubr.msk.f32.vlgmr.msra.gmra.mrb[14].mxu1 %vm161_vm2, %v1391_v58 }
 0xf4e   :  { %12358 = vmatpush3.bf16.msra.mxu1 %v13195_v17  ;;  %11249 = vmatprep.mubr.msk.f32.mxu1 %vm13039_vm1, %v13038_v2 }
 0xf4f   :  { %12359 = vmatprep.subr.bf16.mxu1 %v13040_v6 }
0x1020   :  { %v1461_v59 = vpop.f32.mrb[14].mxu1 }
0x1021   :  { %v1469_v60 = vadd.f32 %v1468_v52, %v1461_v59  ;;  %v11226_v61 = vpop.f32.mrb[15].mxu1 }
0x1023   :  { %v1470_v62 = vmul.f32 0.020833334, %v1469_v60 }
0x1025   :  { %v13344_v63 = vadd.f32 %v1470_v62, %v13285_v13 }
0x1027   :  { %11232 = vmatmul.mubr.msk.f32.vlgmr.msra.gmra.mrb[20].mxu0 %vm253_vm3, %v13344_v63 }
0x1028   :  { %12352 = vmatpush3.bf16.msra.mxu0 %v13215_v26  ;;  %11242 = vmatprep.mubr.msk.f32.mxu0 %vm13039_vm1, %v13038_v2 }
0x1029   :  { %12353 = vmatprep.subr.bf16.mxu0 %v13040_v6 }
0x102c   :  { %12355 = vmatpush3.bf16.msra.mxu0 %v13227_v29 }
0x102d   :  { %12365 = vmatprep.subr.bf16.mxu0 %v13040_v6 }
0x10fa   :  { %v1541_v0 = vpop.f32.mrb[20].mxu0 }
0x10fb   :  { %v1542_v1 = vadd.f32 %v13236_v30, %v1541_v0  ;;  %v11233_v3 = vpop.f32.mrb[21].mxu0 }
0x10fd   :  { %12894 = vtanh.f32 %v1542_v1 }
0x1107   :  { %v12895_v4 = vpop.eup %12894 }
0x1108   :  { %v1546_v5 = vmul.f32 %v12895_v4, %v12895_v4 }
0x110a   :  { %v1547_v7 = vsub.f32 1.0, %v1546_v5 }
0x110c   :  { %11243 = vmatmul.mubr.msk.f32.vlgmr.msra.gmra.mrb[22].mxu0 %vm161_vm2, %v1547_v7 }
0x110d   :  { %12367 = vmatpush3.bf16.msra.mxu0 %v13195_v17  ;;  %11267 = vmatprep.mubr.msk.f32.mxu0 %vm13039_vm1, %v13038_v2 }
0x110e   :  { %12368 = vmatprep.subr.bf16.mxu0 %v13040_v6 }
0x11df   :  { %v1617_v8 = vpop.f32.mrb[22].mxu0 }
0x11e0   :  { %v1621_v9 = vmul.f32 0.0625, %v1617_v8  ;;  %v11244_v10 = vpop.f32.mrb[23].mxu0 }
0x11e2   :  { %v1622_v11 = vadd.f32 %v1621_v9, %v13344_v63 }
0x11e4   :  { %11250 = vmatmul.mubr.msk.f32.vlgmr.msra.gmra.mrb[16].mxu1 %vm253_vm3, %v1622_v11 }
0x11e5   :  { %12361 = vmatpush3.bf16.msra.mxu1 %v13215_v26  ;;  %11260 = vmatprep.mubr.msk.f32.mxu1 %vm13039_vm1, %v13038_v2 }
0x11e6   :  { %12362 = vmatprep.subr.bf16.mxu1 %v13040_v6 }
0x11e9   :  { %12364 = vmatpush3.bf16.msra.mxu1 %v13227_v29 }
0x11ea   :  { %12374 = vmatprep.subr.bf16.mxu1 %v13040_v6 }
0x12b7   :  { %v1692_v12 = vpop.f32.mrb[16].mxu1 }
0x12b8   :  { %v1693_v13 = vadd.f32 %v13236_v30, %v1692_v12  ;;  %v11251_v14 = vpop.f32.mrb[17].mxu1 }
0x12ba   :  { %12896 = vtanh.f32 %v1693_v13 }
0x12c4   :  { %v12897_v15 = vpop.eup %12896 }
0x12c5   :  { %v1697_v16 = vmul.f32 %v12897_v15, %v12897_v15 }
0x12c7   :  { %v1698_v18 = vsub.f32 1.0, %v1697_v16 }
0x12c9   :  { %11261 = vmatmul.mubr.msk.f32.vlgmr.msra.gmra.mrb[18].mxu1 %vm161_vm2, %v1698_v18 }
0x12ca   :  { %12376 = vmatpush3.bf16.msra.mxu1 %v13195_v17  ;;  %11285 = vmatprep.mubr.msk.f32.mxu1 %vm13039_vm1, %v13038_v2 }
0x12cb   :  { %12377 = vmatprep.subr.bf16.mxu1 %v13040_v6 }
0x139c   :  { %v1768_v19 = vpop.f32.mrb[18].mxu1 }
0x139d   :  { %v1772_v20 = vmul.f32 0.0625, %v1768_v19  ;;  %v2074_v21 = vmul.f32 2.0, %v1768_v19  ;;  %v11262_v22 = vpop.f32.mrb[19].mxu1 }
0x139f   :  { %v1773_v24 = vadd.f32 %v1772_v20, %v13344_v63  ;;  %v2075_v25 = vadd.f32 %v2074_v21, %v1617_v8 }
0x13a1   :  { %11268 = vmatmul.mubr.msk.f32.vlgmr.msra.gmra.mrb[24].mxu0 %vm253_vm3, %v1773_v24 }
0x13a2   :  { %12370 = vmatpush3.bf16.msra.mxu0 %v13215_v26  ;;  %11278 = vmatprep.mubr.msk.f32.mxu0 %vm13039_vm1, %v13038_v2 }
0x13a3   :  { %12371 = vmatprep.subr.bf16.mxu0 %v13040_v6 }
0x13a6   :  { %12373 = vmatpush3.bf16.msra.mxu0 %v13227_v29 }
0x13a7   :  { %12383 = vmatprep.subr.bf16.mxu0 %v13040_v6 }
0x1474   :  { %v1843_v27 = vpop.f32.mrb[24].mxu0 }
0x1475   :  { %v1844_v28 = vadd.f32 %v13236_v30, %v1843_v27  ;;  %v11269_v31 = vpop.f32.mrb[25].mxu0 }
0x1477   :  { %12898 = vtanh.f32 %v1844_v28 }
0x1481   :  { %v12899_v32 = vpop.eup %12898 }
0x1482   :  { %v1848_v33 = vmul.f32 %v12899_v32, %v12899_v32 }
0x1484   :  { %v1849_v34 = vsub.f32 1.0, %v1848_v33 }
0x1486   :  { %11279 = vmatmul.mubr.msk.f32.vlgmr.msra.gmra.mrb[26].mxu0 %vm161_vm2, %v1849_v34 }
0x1487   :  { %12385 = vmatpush3.bf16.msra.mxu0 %v13195_v17  ;;  %11303 = vmatprep.mubr.msk.f32.mxu0 %vm13039_vm1, %v13038_v2 }
0x1488   :  { %12386 = vmatprep.subr.bf16.mxu0 %v13040_v6 }
0x1559   :  { %v1919_v35 = vpop.f32.mrb[26].mxu0 }
0x155a   :  { %v1923_v36 = vmul.f32 0.125, %v1919_v35  ;;  %v2076_v37 = vmul.f32 2.0, %v1919_v35  ;;  %v11280_v38 = vpop.f32.mrb[27].mxu0 }
0x155c   :  { %v1924_v39 = vadd.f32 %v1923_v36, %v13344_v63  ;;  %v2077_v40 = vadd.f32 %v2076_v37, %v2075_v25 }
0x155e   :  { %11286 = vmatmul.mubr.msk.f32.vlgmr.msra.gmra.mrb[20].mxu1 %vm253_vm3, %v1924_v39 }
0x155f   :  { %12379 = vmatpush3.bf16.msra.mxu1 %v13215_v26  ;;  %11296 = vmatprep.mubr.msk.f32.mxu1 %vm13039_vm1, %v13038_v2 }
0x1560   :  { %12380 = vmatprep.subr.bf16.mxu1 %v13040_v6 }
0x1563   :  { %12382 = vmatpush3.bf16.msra.mxu1 %v13227_v29 }
0x1564   :  { %12392 = vmatprep.subr.bf16.mxu1 %v13040_v6 }
0x1631   :  { %v1994_v41 = vpop.f32.mrb[20].mxu1 }
0x1632   :  { %v1995_v42 = vadd.f32 %v13236_v30, %v1994_v41  ;;  %v11287_v43 = vpop.f32.mrb[21].mxu1 }
0x1634   :  { %12900 = vtanh.f32 %v1995_v42 }
0x163e   :  { %v12901_v44 = vpop.eup %12900 }
0x163f   :  { %v1999_v45 = vmul.f32 %v12901_v44, %v12901_v44 }
0x1641   :  { %v2000_v46 = vsub.f32 1.0, %v1999_v45 }
0x1643   :  { %11297 = vmatmul.mubr.msk.f32.vlgmr.msra.gmra.mrb[22].mxu1 %vm161_vm2, %v2000_v46 }
0x1644   :  { %12394 = vmatpush3.bf16.msra.mxu1 %v13195_v17  ;;  %11321 = vmatprep.mubr.msk.f32.mxu1 %vm13039_vm1, %v13038_v2 }
0x1645   :  { %12395 = vmatprep.subr.bf16.mxu1 %v13040_v6 }
0x1716   :  { %v2070_v47 = vpop.f32.mrb[22].mxu1 }
0x1717   :  { %v2078_v48 = vadd.f32 %v2077_v40, %v2070_v47  ;;  %v11298_v49 = vpop.f32.mrb[23].mxu1 }
0x1719   :  { %v2079_v50 = vmul.f32 0.020833334, %v2078_v48 }
0x171b   :  { %v13403_v51 = vadd.f32 %v2079_v50, %v13344_v63 }
0x171d   :  { %11304 = vmatmul.mubr.msk.f32.vlgmr.msra.gmra.mrb[28].mxu0 %vm253_vm3, %v13403_v51 }
0x171e   :  { %12388 = vmatpush3.bf16.msra.mxu0 %v13215_v26  ;;  %11314 = vmatprep.mubr.msk.f32.mxu0 %vm13039_vm1, %v13038_v2 }
0x171f   :  { %12389 = vmatprep.subr.bf16.mxu0 %v13040_v6 }
0x1722   :  { %12391 = vmatpush3.bf16.msra.mxu0 %v13227_v29 }
0x1723   :  { %12401 = vmatprep.subr.bf16.mxu0 %v13040_v6 }
0x17f0   :  { %v2150_v52 = vpop.f32.mrb[28].mxu0 }
0x17f1   :  { %v2151_v53 = vadd.f32 %v13236_v30, %v2150_v52  ;;  %v11305_v54 = vpop.f32.mrb[29].mxu0 }
0x17f3   :  { %12902 = vtanh.f32 %v2151_v53 }
0x17fd   :  { %v12903_v55 = vpop.eup %12902 }
0x17fe   :  { %v2155_v56 = vmul.f32 %v12903_v55, %v12903_v55 }
0x1800   :  { %v2156_v57 = vsub.f32 1.0, %v2155_v56 }
0x1802   :  { %11315 = vmatmul.mubr.msk.f32.vlgmr.msra.gmra.mrb[30].mxu0 %vm161_vm2, %v2156_v57 }
0x1803   :  { %12403 = vmatpush3.bf16.msra.mxu0 %v13195_v17  ;;  %11339 = vmatprep.mubr.msk.f32.mxu0 %vm13039_vm1, %v13038_v2 }
0x1804   :  { %12404 = vmatprep.subr.bf16.mxu0 %v13040_v6 }
0x18d5   :  { %v2226_v58 = vpop.f32.mrb[30].mxu0 }
0x18d6   :  { %v2230_v59 = vmul.f32 0.0625, %v2226_v58  ;;  %v11316_v60 = vpop.f32.mrb[31].mxu0 }
0x18d8   :  { %v2231_v61 = vadd.f32 %v2230_v59, %v13403_v51 }
0x18da   :  { %11322 = vmatmul.mubr.msk.f32.vlgmr.msra.gmra.mrb[24].mxu1 %vm253_vm3, %v2231_v61 }
0x18db   :  { %12397 = vmatpush3.bf16.msra.mxu1 %v13215_v26  ;;  %11332 = vmatprep.mubr.msk.f32.mxu1 %vm13039_vm1, %v13038_v2 }
0x18dc   :  { %12398 = vmatprep.subr.bf16.mxu1 %v13040_v6 }
0x18df   :  { %12400 = vmatpush3.bf16.msra.mxu1 %v13227_v29 }
0x18e0   :  { %12410 = vmatprep.subr.bf16.mxu1 %v13040_v6 }
0x19ad   :  { %v2301_v62 = vpop.f32.mrb[24].mxu1 }
0x19ae   :  { %v2302_v63 = vadd.f32 %v13236_v30, %v2301_v62  ;;  %v11323_v0 = vpop.f32.mrb[25].mxu1 }
0x19b0   :  { %12904 = vtanh.f32 %v2302_v63 }
0x19ba   :  { %v12905_v1 = vpop.eup %12904 }
0x19bb   :  { %v2306_v3 = vmul.f32 %v12905_v1, %v12905_v1 }
0x19bd   :  { %v2307_v4 = vsub.f32 1.0, %v2306_v3 }
0x19bf   :  { %11333 = vmatmul.mubr.msk.f32.vlgmr.msra.gmra.mrb[26].mxu1 %vm161_vm2, %v2307_v4 }
0x19c0   :  { %12412 = vmatpush3.bf16.msra.mxu1 %v13195_v17  ;;  %11357 = vmatprep.mubr.msk.f32.mxu1 %vm13039_vm1, %v13038_v2 }
0x19c1   :  { %12413 = vmatprep.subr.bf16.mxu1 %v13040_v6 }
0x1a92   :  { %v2377_v5 = vpop.f32.mrb[26].mxu1 }
0x1a93   :  { %v2381_v7 = vmul.f32 0.0625, %v2377_v5  ;;  %v2683_v8 = vmul.f32 2.0, %v2377_v5  ;;  %v11334_v9 = vpop.f32.mrb[27].mxu1 }
0x1a95   :  { %v2382_v10 = vadd.f32 %v2381_v7, %v13403_v51  ;;  %v2684_v11 = vadd.f32 %v2683_v8, %v2226_v58 }
0x1a97   :  { %11340 = vmatmul.mubr.msk.f32.vlgmr.msra.gmra.mrb[32].mxu0 %vm253_vm3, %v2382_v10 }
0x1a98   :  { %12406 = vmatpush3.bf16.msra.mxu0 %v13215_v26  ;;  %11350 = vmatprep.mubr.msk.f32.mxu0 %vm13039_vm1, %v13038_v2 }
0x1a99   :  { %12407 = vmatprep.subr.bf16.mxu0 %v13040_v6 }
0x1a9c   :  { %12409 = vmatpush3.bf16.msra.mxu0 %v13227_v29 }
0x1a9d   :  { %12419 = vmatprep.subr.bf16.mxu0 %v13040_v6 }
0x1b6a   :  { %v2452_v12 = vpop.f32.mrb[32].mxu0 }
0x1b6b   :  { %v2453_v13 = vadd.f32 %v13236_v30, %v2452_v12  ;;  %v11341_v14 = vpop.f32.mrb[33].mxu0 }
0x1b6d   :  { %12906 = vtanh.f32 %v2453_v13 }
0x1b77   :  { %v12907_v15 = vpop.eup %12906 }
0x1b78   :  { %v2457_v16 = vmul.f32 %v12907_v15, %v12907_v15 }
0x1b7a   :  { %v2458_v18 = vsub.f32 1.0, %v2457_v16 }
0x1b7c   :  { %11351 = vmatmul.mubr.msk.f32.vlgmr.msra.gmra.mrb[34].mxu0 %vm161_vm2, %v2458_v18 }
0x1b7d   :  { %12421 = vmatpush3.bf16.msra.mxu0 %v13195_v17  ;;  %11375 = vmatprep.mubr.msk.f32.mxu0 %vm13039_vm1, %v13038_v2 }
0x1b7e   :  { %12422 = vmatprep.subr.bf16.mxu0 %v13040_v6 }
0x1c4f   :  { %v2528_v19 = vpop.f32.mrb[34].mxu0 }
0x1c50   :  { %v2532_v20 = vmul.f32 0.125, %v2528_v19  ;;  %v2685_v21 = vmul.f32 2.0, %v2528_v19  ;;  %v11352_v22 = vpop.f32.mrb[35].mxu0 }
0x1c52   :  { %v2533_v24 = vadd.f32 %v2532_v20, %v13403_v51  ;;  %v2686_v25 = vadd.f32 %v2685_v21, %v2684_v11 }
0x1c54   :  { %11358 = vmatmul.mubr.msk.f32.vlgmr.msra.gmra.mrb[28].mxu1 %vm253_vm3, %v2533_v24 }
0x1c55   :  { %12415 = vmatpush3.bf16.msra.mxu1 %v13215_v26  ;;  %11368 = vmatprep.mubr.msk.f32.mxu1 %vm13039_vm1, %v13038_v2 }
0x1c56   :  { %12416 = vmatprep.subr.bf16.mxu1 %v13040_v6 }
0x1c59   :  { %12418 = vmatpush3.bf16.msra.mxu1 %v13227_v29 }
0x1c5a   :  { %12428 = vmatprep.subr.bf16.mxu1 %v13040_v6 }
0x1d27   :  { %v2603_v27 = vpop.f32.mrb[28].mxu1 }
0x1d28   :  { %v2604_v28 = vadd.f32 %v13236_v30, %v2603_v27  ;;  %v11359_v31 = vpop.f32.mrb[29].mxu1 }
0x1d2a   :  { %12908 = vtanh.f32 %v2604_v28 }
0x1d34   :  { %v12909_v32 = vpop.eup %12908 }
0x1d35   :  { %v2608_v33 = vmul.f32 %v12909_v32, %v12909_v32 }
0x1d37   :  { %v2609_v34 = vsub.f32 1.0, %v2608_v33 }
0x1d39   :  { %11369 = vmatmul.mubr.msk.f32.vlgmr.msra.gmra.mrb[30].mxu1 %vm161_vm2, %v2609_v34 }
0x1d3a   :  { %12430 = vmatpush3.bf16.msra.mxu1 %v13195_v17  ;;  %11393 = vmatprep.mubr.msk.f32.mxu1 %vm13039_vm1, %v13038_v2 }
0x1d3b   :  { %12431 = vmatprep.subr.bf16.mxu1 %v13040_v6 }
0x1e0c   :  { %v2679_v35 = vpop.f32.mrb[30].mxu1 }
0x1e0d   :  { %v2687_v36 = vadd.f32 %v2686_v25, %v2679_v35  ;;  %v11370_v37 = vpop.f32.mrb[31].mxu1 }
0x1e0f   :  { %v2688_v38 = vmul.f32 0.020833334, %v2687_v36 }
0x1e11   :  { %v13462_v39 = vadd.f32 %v2688_v38, %v13403_v51 }
0x1e13   :  { %11376 = vmatmul.mubr.msk.f32.vlgmr.msra.gmra.mrb[36].mxu0 %vm253_vm3, %v13462_v39 }
0x1e14   :  { %12424 = vmatpush3.bf16.msra.mxu0 %v13215_v26  ;;  %11386 = vmatprep.mubr.msk.f32.mxu0 %vm13039_vm1, %v13038_v2 }
0x1e15   :  { %12425 = vmatprep.subr.bf16.mxu0 %v13040_v6 }
0x1e18   :  { %12427 = vmatpush3.bf16.msra.mxu0 %v13227_v29 }
0x1e19   :  { %12437 = vmatprep.subr.bf16.mxu0 %v13040_v6 }
0x1ee6   :  { %v2759_v40 = vpop.f32.mrb[36].mxu0 }
0x1ee7   :  { %v2760_v41 = vadd.f32 %v13236_v30, %v2759_v40  ;;  %v11377_v42 = vpop.f32.mrb[37].mxu0 }
0x1ee9   :  { %12910 = vtanh.f32 %v2760_v41 }
0x1ef3   :  { %v12911_v43 = vpop.eup %12910 }
0x1ef4   :  { %v2764_v44 = vmul.f32 %v12911_v43, %v12911_v43 }
0x1ef6   :  { %v2765_v45 = vsub.f32 1.0, %v2764_v44 }
0x1ef8   :  { %11387 = vmatmul.mubr.msk.f32.vlgmr.msra.gmra.mrb[38].mxu0 %vm161_vm2, %v2765_v45 }
0x1ef9   :  { %12439 = vmatpush3.bf16.msra.mxu0 %v13195_v17  ;;  %11411 = vmatprep.mubr.msk.f32.mxu0 %vm13039_vm1, %v13038_v2 }
0x1efa   :  { %12440 = vmatprep.subr.bf16.mxu0 %v13040_v6 }
0x1fcb   :  { %v2835_v46 = vpop.f32.mrb[38].mxu0 }
0x1fcc   :  { %v2839_v47 = vmul.f32 0.0625, %v2835_v46  ;;  %v11388_v48 = vpop.f32.mrb[39].mxu0 }
0x1fce   :  { %v2840_v49 = vadd.f32 %v2839_v47, %v13462_v39 }
0x1fd0   :  { %11394 = vmatmul.mubr.msk.f32.vlgmr.msra.gmra.mrb[32].mxu1 %vm253_vm3, %v2840_v49 }
0x1fd1   :  { %12433 = vmatpush3.bf16.msra.mxu1 %v13215_v26  ;;  %11404 = vmatprep.mubr.msk.f32.mxu1 %vm13039_vm1, %v13038_v2 }
0x1fd2   :  { %12434 = vmatprep.subr.bf16.mxu1 %v13040_v6 }
0x1fd5   :  { %12436 = vmatpush3.bf16.msra.mxu1 %v13227_v29 }
0x1fd6   :  { %12446 = vmatprep.subr.bf16.mxu1 %v13040_v6 }
0x20a3   :  { %v2910_v50 = vpop.f32.mrb[32].mxu1 }
0x20a4   :  { %v2911_v51 = vadd.f32 %v13236_v30, %v2910_v50  ;;  %v11395_v52 = vpop.f32.mrb[33].mxu1 }
0x20a6   :  { %12912 = vtanh.f32 %v2911_v51 }
0x20b0   :  { %v12913_v53 = vpop.eup %12912 }
0x20b1   :  { %v2915_v54 = vmul.f32 %v12913_v53, %v12913_v53 }
0x20b3   :  { %v2916_v55 = vsub.f32 1.0, %v2915_v54 }
0x20b5   :  { %11405 = vmatmul.mubr.msk.f32.vlgmr.msra.gmra.mrb[34].mxu1 %vm161_vm2, %v2916_v55 }
0x20b6   :  { %12448 = vmatpush3.bf16.msra.mxu1 %v13195_v17  ;;  %11429 = vmatprep.mubr.msk.f32.mxu1 %vm13039_vm1, %v13038_v2 }
0x20b7   :  { %12449 = vmatprep.subr.bf16.mxu1 %v13040_v6 }
0x2188   :  { %v2986_v56 = vpop.f32.mrb[34].mxu1 }
0x2189   :  { %v2990_v57 = vmul.f32 0.0625, %v2986_v56  ;;  %v3292_v58 = vmul.f32 2.0, %v2986_v56  ;;  %v11406_v59 = vpop.f32.mrb[35].mxu1 }
0x218b   :  { %v2991_v60 = vadd.f32 %v2990_v57, %v13462_v39  ;;  %v3293_v61 = vadd.f32 %v3292_v58, %v2835_v46 }
0x218d   :  { %11412 = vmatmul.mubr.msk.f32.vlgmr.msra.gmra.mrb[40].mxu0 %vm253_vm3, %v2991_v60 }
0x218e   :  { %12442 = vmatpush3.bf16.msra.mxu0 %v13215_v26  ;;  %11422 = vmatprep.mubr.msk.f32.mxu0 %vm13039_vm1, %v13038_v2 }
0x218f   :  { %12443 = vmatprep.subr.bf16.mxu0 %v13040_v6 }
0x2192   :  { %12445 = vmatpush3.bf16.msra.mxu0 %v13227_v29 }
0x2193   :  { %12455 = vmatprep.subr.bf16.mxu0 %v13040_v6 }
0x2260   :  { %v3061_v62 = vpop.f32.mrb[40].mxu0 }
0x2261   :  { %v3062_v63 = vadd.f32 %v13236_v30, %v3061_v62  ;;  %v11413_v0 = vpop.f32.mrb[41].mxu0  ;;  %v13576_v62 = vld [vmem:[%s14293_s7] ss:$0 sm:$0xff]  ;;  %s13047_s7 = smov [#allocation2]  }
0x2262   :  { %s10383_s22 = sshll.u32 %s13047_s7, 4  ;;  %s10384_s22 = int_to_ptr.vmem [resolvable:$true] %s10383_s22 }
0x2263   :  { %12914 = vtanh.f32 %v3062_v63  ;;  %s13014_s23 = scalar_lea.vmem %s10384_s22, 128  ;;  %p13019_p1 = scmp.lt.s32.totalorder %s10384_s22, %s10384_s22 }
0x2264   :  { %p13015_p0 = scmp.ne.s32.totalorder %s10384_s22, %s13014_s23  ;;  %p13020_p2 = scmp.lt.s32.totalorder %s13014_s23, %s13014_s23 }
0x2266   :  { %p13021_p3 = por %p13020_p2, %p13019_p1 }
0x2268   :  { %p13022_p4 = pnand %p13021_p3, %p13015_p0 }
0x226d   :  { %v12915_v1 = vpop.eup %12914 }
0x226e   :  { %v3066_v3 = vmul.f32 %v12915_v1, %v12915_v1 }
0x2270   :  { %v3067_v4 = vsub.f32 1.0, %v3066_v3 }
0x2272   :  { %11423 = vmatmul.mubr.msk.f32.vlgmr.msra.gmra.mrb[42].mxu0 %vm161_vm2, %v3067_v4 }
0x2273   :  { %12457 = vmatpush3.bf16.msra.mxu0 %v13195_v17  ;;  %11447 = vmatprep.mubr.msk.f32.mxu0 %vm13039_vm1, %v13038_v2 }
0x2274   :  { %12458 = vmatprep.subr.bf16.mxu0 %v13040_v6 }
0x2345   :  { %v3137_v5 = vpop.f32.mrb[42].mxu0 }
0x2346   :  { %v3141_v7 = vmul.f32 0.125, %v3137_v5  ;;  %v3294_v8 = vmul.f32 2.0, %v3137_v5  ;;  %v11424_v9 = vpop.f32.mrb[43].mxu0 }
0x2348   :  { %v3142_v10 = vadd.f32 %v3141_v7, %v13462_v39  ;;  %v3295_v11 = vadd.f32 %v3294_v8, %v3293_v61 }
0x234a   :  { %11430 = vmatmul.mubr.msk.f32.vlgmr.msra.gmra.mrb[36].mxu1 %vm253_vm3, %v3142_v10 }
0x234b   :  { %12451 = vmatpush3.bf16.msra.mxu1 %v13215_v26  ;;  %11440 = vmatprep.mubr.msk.f32.mxu1 %vm13039_vm1, %v13038_v2 }
0x234c   :  { %12452 = vmatprep.subr.bf16.mxu1 %v13040_v6 }
0x234f   :  { %12454 = vmatpush3.bf16.msra.mxu1 %v13227_v29 }
0x2350   :  { %12464 = vmatprep.subr.bf16.mxu1 %v13040_v6 }
0x241d   :  { %v3212_v12 = vpop.f32.mrb[36].mxu1 }
0x241e   :  { %v3213_v13 = vadd.f32 %v13236_v30, %v3212_v12  ;;  %v11431_v14 = vpop.f32.mrb[37].mxu1 }
0x2420   :  { %12916 = vtanh.f32 %v3213_v13 }
0x242a   :  { %v12917_v15 = vpop.eup %12916 }
0x242b   :  { %v3217_v16 = vmul.f32 %v12917_v15, %v12917_v15 }
0x242d   :  { %v3218_v18 = vsub.f32 1.0, %v3217_v16 }
0x242f   :  { %11441 = vmatmul.mubr.msk.f32.vlgmr.msra.gmra.mrb[38].mxu1 %vm161_vm2, %v3218_v18 }
0x2430   :  { %12466 = vmatpush3.bf16.msra.mxu1 %v13195_v17  ;;  %11465 = vmatprep.mubr.msk.f32.mxu1 %vm13039_vm1, %v13038_v2 }
0x2431   :  { %12467 = vmatprep.subr.bf16.mxu1 %v13040_v6 }
0x2502   :  { %v3288_v19 = vpop.f32.mrb[38].mxu1 }
0x2503   :  { %v3296_v20 = vadd.f32 %v3295_v11, %v3288_v19  ;;  %v11442_v21 = vpop.f32.mrb[39].mxu1 }
0x2505   :  { %v3297_v22 = vmul.f32 0.020833334, %v3296_v20 }
0x2507   :  { %v13521_v24 = vadd.f32 %v3297_v22, %v13462_v39 }
0x2509   :  { %11448 = vmatmul.mubr.msk.f32.vlgmr.msra.gmra.mrb[44].mxu0 %vm253_vm3, %v13521_v24 }
0x250a   :  { %12460 = vmatpush3.bf16.msra.mxu0 %v13215_v26  ;;  %11458 = vmatprep.mubr.msk.f32.mxu0 %vm13039_vm1, %v13038_v2 }
0x250b   :  { %12461 = vmatprep.subr.bf16.mxu0 %v13040_v6 }
0x250e   :  { %12463 = vmatpush3.bf16.msra.mxu0 %v13227_v29 }
0x250f   :  { %12473 = vmatprep.subr.bf16.mxu0 %v13040_v6 }
0x25dc   :  { %v3368_v25 = vpop.f32.mrb[44].mxu0 }
0x25dd   :  { %v3369_v27 = vadd.f32 %v13236_v30, %v3368_v25  ;;  %v11449_v28 = vpop.f32.mrb[45].mxu0 }
0x25df   :  { %12918 = vtanh.f32 %v3369_v27 }
0x25e9   :  { %v12919_v31 = vpop.eup %12918 }
0x25ea   :  { %v3373_v32 = vmul.f32 %v12919_v31, %v12919_v31 }
0x25ec   :  { %v3374_v33 = vsub.f32 1.0, %v3373_v32 }
0x25ee   :  { %11459 = vmatmul.mubr.msk.f32.vlgmr.msra.gmra.mrb[46].mxu0 %vm161_vm2, %v3374_v33 }
0x25ef   :  { %12475 = vmatpush3.bf16.msra.mxu0 %v13195_v17  ;;  %11483 = vmatprep.mubr.msk.f32.mxu0 %vm13039_vm1, %v13038_v2 }
0x25f0   :  { %12476 = vmatprep.subr.bf16.mxu0 %v13040_v6 }
0x26c1   :  { %v3444_v34 = vpop.f32.mrb[46].mxu0 }
0x26c2   :  { %v3448_v35 = vmul.f32 0.0625, %v3444_v34  ;;  %v11460_v36 = vpop.f32.mrb[47].mxu0 }
0x26c4   :  { %v3449_v37 = vadd.f32 %v3448_v35, %v13521_v24 }
0x26c6   :  { %11466 = vmatmul.mubr.msk.f32.vlgmr.msra.gmra.mrb[40].mxu1 %vm253_vm3, %v3449_v37 }
0x26c7   :  { %12469 = vmatpush3.bf16.msra.mxu1 %v13215_v26  ;;  %11476 = vmatprep.mubr.msk.f32.mxu1 %vm13039_vm1, %v13038_v2 }
0x26c8   :  { %12470 = vmatprep.subr.bf16.mxu1 %v13040_v6 }
0x26cb   :  { %12472 = vmatpush3.bf16.msra.mxu1 %v13227_v29 }
0x26cc   :  { %12482 = vmatprep.subr.bf16.mxu1 %v13040_v6 }
0x2799   :  { %v3519_v38 = vpop.f32.mrb[40].mxu1 }
0x279a   :  { %v3520_v39 = vadd.f32 %v13236_v30, %v3519_v38  ;;  %v11467_v40 = vpop.f32.mrb[41].mxu1 }
0x279c   :  { %12920 = vtanh.f32 %v3520_v39 }
0x27a6   :  { %v12921_v41 = vpop.eup %12920 }
0x27a7   :  { %v3524_v42 = vmul.f32 %v12921_v41, %v12921_v41 }
0x27a9   :  { %v3525_v43 = vsub.f32 1.0, %v3524_v42 }
0x27ab   :  { %11477 = vmatmul.mubr.msk.f32.vlgmr.msra.gmra.mrb[42].mxu1 %vm161_vm2, %v3525_v43 }
0x27ac   :  { %12484 = vmatpush3.bf16.msra.mxu1 %v13195_v17  ;;  %11501 = vmatprep.mubr.msk.f32.mxu1 %vm13039_vm1, %v13038_v2 }
0x27ad   :  { %12485 = vmatprep.subr.bf16.mxu1 %v13040_v6 }
0x287e   :  { %v3595_v44 = vpop.f32.mrb[42].mxu1 }
0x287f   :  { %v3599_v45 = vmul.f32 0.0625, %v3595_v44  ;;  %v3901_v46 = vmul.f32 2.0, %v3595_v44  ;;  %v11478_v47 = vpop.f32.mrb[43].mxu1 }
0x2881   :  { %v3600_v48 = vadd.f32 %v3599_v45, %v13521_v24  ;;  %v3902_v49 = vadd.f32 %v3901_v46, %v3444_v34 }
0x2883   :  { %11484 = vmatmul.mubr.msk.f32.vlgmr.msra.gmra.mrb[48].mxu0 %vm253_vm3, %v3600_v48 }
0x2884   :  { %12478 = vmatpush3.bf16.msra.mxu0 %v13215_v26  ;;  %11494 = vmatprep.mubr.msk.f32.mxu0 %vm13039_vm1, %v13038_v2 }
0x2885   :  { %12479 = vmatprep.subr.bf16.mxu0 %v13040_v6 }
0x2888   :  { %12481 = vmatpush3.bf16.msra.mxu0 %v13227_v29 }
0x2889   :  { %12491 = vmatprep.subr.bf16.mxu0 %v13040_v6 }
0x2956   :  { %v3670_v50 = vpop.f32.mrb[48].mxu0 }
0x2957   :  { %v3671_v51 = vadd.f32 %v13236_v30, %v3670_v50  ;;  %v11485_v52 = vpop.f32.mrb[49].mxu0 }
0x2959   :  { %12922 = vtanh.f32 %v3671_v51 }
0x2963   :  { %v12923_v53 = vpop.eup %12922 }
0x2964   :  { %v3675_v54 = vmul.f32 %v12923_v53, %v12923_v53 }
0x2966   :  { %v3676_v55 = vsub.f32 1.0, %v3675_v54 }
0x2968   :  { %11495 = vmatmul.mubr.msk.f32.vlgmr.msra.gmra.mrb[50].mxu0 %vm161_vm2, %v3676_v55 }
0x2969   :  { %12493 = vmatpush3.bf16.msra.mxu0 %v13195_v17  ;;  %11519 = vmatprep.mubr.msk.f32.mxu0 %vm13039_vm1, %v13038_v2 }
0x296a   :  { %12494 = vmatprep.subr.bf16.mxu0 %v13040_v6 }
0x2a3b   :  { %v3746_v56 = vpop.f32.mrb[50].mxu0 }
0x2a3c   :  { %v3750_v57 = vmul.f32 0.125, %v3746_v56  ;;  %v3903_v58 = vmul.f32 2.0, %v3746_v56  ;;  %v11496_v59 = vpop.f32.mrb[51].mxu0 }
0x2a3e   :  { %v3751_v30 = vadd.f32 %v3750_v57, %v13521_v24  ;;  %v3904_v60 = vadd.f32 %v3903_v58, %v3902_v49 }
0x2a40   :  { %11502 = vmatmul.mubr.msk.f32.vlgmr.msra.gmra.mrb[44].mxu1 %vm253_vm3, %v3751_v30 }
0x2a41   :  { %12487 = vmatpush3.bf16.msra.mxu1 %v13215_v26  ;;  %11512 = vmatprep.mubr.msk.f32.mxu1 %vm13039_vm1, %v13038_v2 }
0x2a42   :  { %12488 = vmatprep.subr.bf16.mxu1 %v13040_v6 }
0x2a45   :  { %12490 = vmatpush3.bf16.msra.mxu1 %v13227_v29 }
0x2a46   :  { %12500 = vmatprep.subr.bf16.mxu1 %v13040_v6 }
0x2b13   :  { %v3821_v61 = vpop.f32.mrb[44].mxu1 }
0x2b14   :  { %v3822_v63 = vadd.f32 %v13576_v62, %v3821_v61  ;;  %v11503_v0 = vpop.f32.mrb[45].mxu1 }
0x2b16   :  { %12924 = vtanh.f32 %v3822_v63 }
0x2b20   :  { %v12925_v1 = vpop.eup %12924 }
0x2b21   :  { %v3826_v3 = vmul.f32 %v12925_v1, %v12925_v1 }
0x2b23   :  { %v3827_v4 = vsub.f32 1.0, %v3826_v3 }
0x2b25   :  { %11513 = vmatmul.mubr.msk.f32.vlgmr.msra.gmra.mrb[46].mxu1 %vm161_vm2, %v3827_v4 }
0x2b26   :  { %12502 = vmatpush3.bf16.msra.mxu1 %v13195_v17  ;;  %11537 = vmatprep.mubr.msk.f32.mxu1 %vm13039_vm1, %v13038_v2 }
0x2b27   :  { %12503 = vmatprep.subr.bf16.mxu1 %v13040_v6 }
0x2bf8   :  { %v3897_v5 = vpop.f32.mrb[46].mxu1 }
0x2bf9   :  { %v3905_v7 = vadd.f32 %v3904_v60, %v3897_v5  ;;  %v11514_v8 = vpop.f32.mrb[47].mxu1 }
0x2bfb   :  { %v3906_v9 = vmul.f32 0.020833334, %v3905_v7 }
0x2bfd   :  { %v13585_v10 = vadd.f32 %v3906_v9, %v13521_v24 }
0x2bff   :  { %11520 = vmatmul.mubr.msk.f32.vlgmr.msra.gmra.mrb[52].mxu0 %vm253_vm3, %v13585_v10 }
0x2c00   :  { %12496 = vmatpush3.bf16.msra.mxu0 %v13215_v26  ;;  %11530 = vmatprep.mubr.msk.f32.mxu0 %vm13039_vm1, %v13038_v2 }
0x2c01   :  { %12497 = vmatprep.subr.bf16.mxu0 %v13040_v6 }
0x2c04   :  { %12499 = vmatpush3.bf16.msra.mxu0 %v13227_v29 }
0x2c05   :  { %12509 = vmatprep.subr.bf16.mxu0 %v13040_v6 }
0x2cd2   :  { %v3977_v11 = vpop.f32.mrb[52].mxu0 }
0x2cd3   :  { %v3978_v12 = vadd.f32 %v13576_v62, %v3977_v11  ;;  %v11521_v13 = vpop.f32.mrb[53].mxu0 }
0x2cd5   :  { %12926 = vtanh.f32 %v3978_v12 }
0x2cdf   :  { %v12927_v14 = vpop.eup %12926 }
0x2ce0   :  { %v3982_v15 = vmul.f32 %v12927_v14, %v12927_v14 }
0x2ce2   :  { %v3983_v16 = vsub.f32 1.0, %v3982_v15 }
0x2ce4   :  { %11531 = vmatmul.mubr.msk.f32.vlgmr.msra.gmra.mrb[54].mxu0 %vm161_vm2, %v3983_v16 }
0x2ce5   :  { %12511 = vmatpush3.bf16.msra.mxu0 %v13195_v17  ;;  %11555 = vmatprep.mubr.msk.f32.mxu0 %vm13039_vm1, %v13038_v2 }
0x2ce6   :  { %12512 = vmatprep.subr.bf16.mxu0 %v13040_v6 }
0x2db7   :  { %v4053_v18 = vpop.f32.mrb[54].mxu0 }
0x2db8   :  { %v4057_v19 = vmul.f32 0.0625, %v4053_v18  ;;  %v11532_v20 = vpop.f32.mrb[55].mxu0 }
0x2dba   :  { %v4058_v21 = vadd.f32 %v4057_v19, %v13585_v10 }
0x2dbc   :  { %11538 = vmatmul.mubr.msk.f32.vlgmr.msra.gmra.mrb[48].mxu1 %vm253_vm3, %v4058_v21 }
0x2dbd   :  { %12505 = vmatpush3.bf16.msra.mxu1 %v13215_v26  ;;  %11548 = vmatprep.mubr.msk.f32.mxu1 %vm13039_vm1, %v13038_v2 }
0x2dbe   :  { %12506 = vmatprep.subr.bf16.mxu1 %v13040_v6 }
0x2dc1   :  { %12508 = vmatpush3.bf16.msra.mxu1 %v13227_v29 }
0x2dc2   :  { %12518 = vmatprep.subr.bf16.mxu1 %v13040_v6 }
0x2e8f   :  { %v4128_v22 = vpop.f32.mrb[48].mxu1 }
0x2e90   :  { %v4129_v24 = vadd.f32 %v13576_v62, %v4128_v22  ;;  %v11539_v25 = vpop.f32.mrb[49].mxu1 }
0x2e92   :  { %12928 = vtanh.f32 %v4129_v24 }
0x2e9c   :  { %v12929_v27 = vpop.eup %12928 }
0x2e9d   :  { %v4133_v28 = vmul.f32 %v12929_v27, %v12929_v27 }
0x2e9f   :  { %v4134_v31 = vsub.f32 1.0, %v4133_v28 }
0x2ea1   :  { %11549 = vmatmul.mubr.msk.f32.vlgmr.msra.gmra.mrb[50].mxu1 %vm161_vm2, %v4134_v31 }
0x2ea2   :  { %12520 = vmatpush3.bf16.msra.mxu1 %v13195_v17  ;;  %11573 = vmatprep.mubr.msk.f32.mxu1 %vm13039_vm1, %v13038_v2 }
0x2ea3   :  { %12521 = vmatprep.subr.bf16.mxu1 %v13040_v6 }
0x2f74   :  { %v4204_v32 = vpop.f32.mrb[50].mxu1 }
0x2f75   :  { %v4208_v33 = vmul.f32 0.0625, %v4204_v32  ;;  %v4510_v34 = vmul.f32 2.0, %v4204_v32  ;;  %v11550_v35 = vpop.f32.mrb[51].mxu1 }
0x2f77   :  { %v4209_v36 = vadd.f32 %v4208_v33, %v13585_v10  ;;  %v4511_v37 = vadd.f32 %v4510_v34, %v4053_v18 }
0x2f79   :  { %11556 = vmatmul.mubr.msk.f32.vlgmr.msra.gmra.mrb[56].mxu0 %vm253_vm3, %v4209_v36 }
0x2f7a   :  { %12514 = vmatpush3.bf16.msra.mxu0 %v13215_v26  ;;  %11566 = vmatprep.mubr.msk.f32.mxu0 %vm13039_vm1, %v13038_v2 }
0x2f7b   :  { %12515 = vmatprep.subr.bf16.mxu0 %v13040_v6 }
0x2f7e   :  { %12517 = vmatpush3.bf16.msra.mxu0 %v13227_v29 }
0x2f7f   :  { %12527 = vmatprep.subr.bf16.mxu0 %v13040_v6 }
0x304c   :  { %v4279_v38 = vpop.f32.mrb[56].mxu0 }
0x304d   :  { %v4280_v39 = vadd.f32 %v13576_v62, %v4279_v38  ;;  %v11557_v40 = vpop.f32.mrb[57].mxu0 }
0x304f   :  { %12930 = vtanh.f32 %v4280_v39 }
0x3059   :  { %v12931_v41 = vpop.eup %12930 }
0x305a   :  { %v4284_v42 = vmul.f32 %v12931_v41, %v12931_v41 }
0x305c   :  { %v4285_v43 = vsub.f32 1.0, %v4284_v42 }
0x305e   :  { %11567 = vmatmul.mubr.msk.f32.vlgmr.msra.gmra.mrb[58].mxu0 %vm161_vm2, %v4285_v43 }
0x305f   :  { %12529 = vmatpush3.bf16.msra.mxu0 %v13195_v17  ;;  %11591 = vmatprep.mubr.msk.f32.mxu0 %vm13039_vm1, %v13038_v2 }
0x3060   :  { %12530 = vmatprep.subr.bf16.mxu0 %v13040_v6 }
0x3131   :  { %v4355_v44 = vpop.f32.mrb[58].mxu0 }
0x3132   :  { %v4359_v45 = vmul.f32 0.125, %v4355_v44  ;;  %v4512_v46 = vmul.f32 2.0, %v4355_v44  ;;  %v11568_v47 = vpop.f32.mrb[59].mxu0 }
0x3134   :  { %v4360_v48 = vadd.f32 %v4359_v45, %v13585_v10  ;;  %v4513_v49 = vadd.f32 %v4512_v46, %v4511_v37 }
0x3136   :  { %11574 = vmatmul.mubr.msk.f32.vlgmr.msra.gmra.mrb[52].mxu1 %vm253_vm3, %v4360_v48  ;;  %v5129_v48 = vld [vmem:[%s14300_s14] sm:$0xff] }
0x3137   :  { %12523 = vmatpush3.bf16.msra.mxu1 %v13215_v26  ;;  %11584 = vmatprep.mubr.msk.f32.mxu1 %vm13039_vm1, %v13038_v2 }
0x3138   :  { %12524 = vmatprep.subr.bf16.mxu1 %v13040_v6 }
0x313b   :  { %12526 = vmatpush3.bf16.msra.mxu1 %v13227_v29 }
0x313c   :  { %12536 = vmatprep.subr.bf16.mxu1 %v13040_v6 }
0x3209   :  { %v4430_v50 = vpop.f32.mrb[52].mxu1 }
0x320a   :  { %v4431_v51 = vadd.f32 %v13576_v62, %v4430_v50  ;;  %v11575_v52 = vpop.f32.mrb[53].mxu1  ;;  %v5131_v50 = vld [vmem:[%s14300_s14 + $0x10] sm:$0xff] }
0x320b   :  { %v5132_v52 = vld [vmem:[%s14300_s14 + $0x18] sm:$0xff] }
0x320c   :  { %12932 = vtanh.f32 %v4431_v51 }
0x3216   :  { %v12933_v53 = vpop.eup %12932 }
0x3217   :  { %v4435_v54 = vmul.f32 %v12933_v53, %v12933_v53  ;;  %v12570_v53 = vpack.c.bf16 %v5132_v52, %v5131_v50 }
0x3219   :  { %v4436_v55 = vsub.f32 1.0, %v4435_v54  ;;  %v10460_v54 = vld [vmem:[%s14299_s13] ss:$0 sm:$0xff] }
0x321b   :  { %11585 = vmatmul.mubr.msk.f32.vlgmr.msra.gmra.mrb[54].mxu1 %vm161_vm2, %v4436_v55 }
0x321c   :  { %12538 = vmatpush3.bf16.msra.mxu1 %v13195_v17  ;;  %11609 = vmatprep.mubr.msk.f32.mxu1 %vm13039_vm1, %v13038_v2 }
0x321d   :  { %12539 = vmatprep.subr.bf16.mxu1 %v13040_v6 }
0x32ee   :  { %v4506_v56 = vpop.f32.mrb[54].mxu1 }
0x32ef   :  { %v4514_v57 = vadd.f32 %v4513_v49, %v4506_v56  ;;  %v11586_v58 = vpop.f32.mrb[55].mxu1  ;;  %v5130_v49 = vld [vmem:[%s14300_s14 + $0x8] sm:$0xff] }
0x32f0   :  { %v12567_v51 = vpack.c.bf16 %v5130_v49, %v5129_v48 }
0x32f1   :  { %v4515_v59 = vmul.f32 0.020833334, %v4514_v57 }
0x32f3   :  { %v13644_v30 = vadd.f32 %v4515_v59, %v13585_v10  ;;  %v10462_v59 = vld [vmem:[%s14301_s15] ss:$0 sm:$0xff]  ;;  %s14320_s15 = sld [smem:[#allocation10_spill]] }
0x32f5   :  { %11592 = vmatmul.mubr.msk.f32.vlgmr.msra.gmra.mrb[60].mxu0 %vm253_vm3, %v13644_v30 }
0x32f6   :  { %12532 = vmatpush3.bf16.msra.mxu0 %v13215_v26  ;;  %11602 = vmatprep.mubr.msk.f32.mxu0 %vm13039_vm1, %v13038_v2 }
0x32f7   :  { %12533 = vmatprep.subr.bf16.mxu0 %v13040_v6 }
0x32fa   :  { %12535 = vmatpush3.bf16.msra.mxu0 %v13227_v29 }
0x32fb   :  { %12545 = vmatprep.subr.bf16.mxu0 %v13040_v6 }
0x33c8   :  { %v4586_v60 = vpop.f32.mrb[60].mxu0 }
0x33c9   :  { %v4587_v61 = vadd.f32 %v13576_v62, %v4586_v60  ;;  %v11593_v63 = vpop.f32.mrb[61].mxu0 }
0x33cb   :  { %12934 = vtanh.f32 %v4587_v61 }
0x33d5   :  { %v12935_v0 = vpop.eup %12934 }
0x33d6   :  { %v4591_v1 = vmul.f32 %v12935_v0, %v12935_v0 }
0x33d8   :  { %v4592_v3 = vsub.f32 1.0, %v4591_v1  ;;  %v5303_v1 = vld [vmem:[%s14302_s16] sm:$0xff]  ;;  %s13045_s16 = smov 16  }
0x33da   :  { %11603 = vmatmul.mubr.msk.f32.vlgmr.msra.gmra.mrb[62].mxu0 %vm161_vm2, %v4592_v3 }
0x33db   :  { %12547 = vmatpush3.bf16.msra.mxu0 %v13195_v17  ;;  %11627 = vmatprep.mubr.msk.f32.mxu0 %vm13039_vm1, %v13038_v2 }
0x33dc   :  { %12548 = vmatprep.subr.bf16.mxu0 %v13040_v6 }
0x34ad   :  { %v4662_v4 = vpop.f32.mrb[62].mxu0 }
0x34ae   :  { %v4666_v5 = vmul.f32 0.0625, %v4662_v4  ;;  %v11604_v7 = vpop.f32.mrb[63].mxu0 }
0x34b0   :  { %v4667_v8 = vadd.f32 %v4666_v5, %v13644_v30 }
0x34b2   :  { %11610 = vmatmul.mubr.msk.f32.vlgmr.msra.gmra.mrb[56].mxu1 %vm253_vm3, %v4667_v8 }
0x34b3   :  { %12541 = vmatpush3.bf16.msra.mxu1 %v13215_v26  ;;  %11620 = vmatprep.mubr.msk.f32.mxu1 %vm13039_vm1, %v13038_v2 }
0x34b4   :  { %12542 = vmatprep.subr.bf16.mxu1 %v13040_v6 }
0x34b7   :  { %12544 = vmatpush3.bf16.msra.mxu1 %v13227_v29 }
0x34b8   :  { %12554 = vmatprep.subr.bf16.mxu1 %v13040_v6 }
0x3585   :  { %v4737_v9 = vpop.f32.mrb[56].mxu1 }
0x3586   :  { %v4738_v10 = vadd.f32 %v13576_v62, %v4737_v9  ;;  %v11611_v11 = vpop.f32.mrb[57].mxu1  ;;  %v5305_v9 = vld [vmem:[%s14304_s18] sm:$0xff] }
0x3587   :  { %v5307_v11 = vld [vmem:[%s14304_s18 + $0x10] sm:$0xff] }
0x3588   :  { %12936 = vtanh.f32 %v4738_v10  ;;  %v5306_v10 = vld [vmem:[%s14304_s18 + $0x8] sm:$0xff] }
0x3592   :  { %v12937_v12 = vpop.eup %12936 }
0x3593   :  { %v4742_v13 = vmul.f32 %v12937_v12, %v12937_v12  ;;  %v12573_v12 = vpack.c.bf16 %v5306_v10, %v5305_v9 }
0x3595   :  { %v4743_v14 = vsub.f32 1.0, %v4742_v13  ;;  %v5308_v13 = vld [vmem:[%s14304_s18 + $0x18] sm:$0xff] }
0x3597   :  { %11621 = vmatmul.mubr.msk.f32.vlgmr.msra.gmra.mrb[58].mxu1 %vm161_vm2, %v4743_v14  ;;  %v12576_v14 = vpack.c.bf16 %v5308_v13, %v5307_v11 }
0x3598   :  { %12556 = vmatpush3.bf16.msra.mxu1 %v13195_v17  ;;  %11645 = vmatprep.mubr.msk.f32.mxu1 %vm13039_vm1, %v13038_v2 }
0x3599   :  { %12557 = vmatprep.subr.bf16.mxu1 %v13040_v6 }
0x366a   :  { %v4813_v15 = vpop.f32.mrb[58].mxu1 }
0x366b   :  { %v4817_v16 = vmul.f32 0.0625, %v4813_v15  ;;  %v5119_v18 = vmul.f32 2.0, %v4813_v15  ;;  %v11622_v19 = vpop.f32.mrb[59].mxu1  ;;  %v5469_v15 = vld [vmem:[%s14295_s9] sm:$0xff] }
0x366c   :  { %v10464_v19 = vld [vmem:[%s14303_s17] ss:$0 sm:$0xff]  ;;  %s13044_s17 = smov 48  }
0x366d   :  { %v4818_v20 = vadd.f32 %v4817_v16, %v13644_v30  ;;  %v5120_v21 = vadd.f32 %v5119_v18, %v4662_v4  ;;  %v5293_v4 = vld [vmem:[%s14319_s8] sm:$0xff]  ;;  %v5470_v16 = vld [vmem:[%s14295_s9 + $0x8] sm:$0xff] }
0x366e   :  { %v13766_v18 = vpack.c.bf16 %v5470_v16, %v5469_v15 }
0x366f   :  { %11628 = vmatmul.mubr.msk.f32.vlgmr.msra.gmra.mrb[64].mxu0 %vm253_vm3, %v4818_v20 }
0x3670   :  { %12550 = vmatpush3.bf16.msra.mxu0 %v13215_v26  ;;  %11638 = vmatprep.mubr.msk.f32.mxu0 %vm13039_vm1, %v13038_v2 }
0x3671   :  { %12551 = vmatprep.subr.bf16.mxu0 %v13040_v6 }
0x3674   :  { %12553 = vmatpush3.bf16.msra.mxu0 %v13227_v29 }
0x3675   :  { %12563 = vmatprep.subr.bf16.mxu0 %v13040_v6 }
0x3742   :  { %v4888_v17 = vpop.f32.mrb[64].mxu0 }
0x3743   :  { %v4889_v22 = vadd.f32 %v13576_v62, %v4888_v17  ;;  %v11629_v24 = vpop.f32.mrb[65].mxu0 }
0x3744   :  { %v10466_v24 = vld [vmem:[%s14305_s19] ss:$0 sm:$0xff] }
0x3745   :  { %12938 = vtanh.f32 %v4889_v22 }
0x374f   :  { %v12939_v25 = vpop.eup %12938 }
0x3750   :  { %v4893_v27 = vmul.f32 %v12939_v25, %v12939_v25 }
0x3752   :  { %v4894_v28 = vsub.f32 1.0, %v4893_v27 }
0x3754   :  { %11639 = vmatmul.mubr.msk.f32.vlgmr.msra.gmra.mrb[66].mxu0 %vm161_vm2, %v4894_v28 }
0x3755   :  { %11663 = vmatprep.mubr.msk.f32.mxu0 %vm13039_vm1, %v13038_v2 }
0x3827   :  { %v4964_v31 = vpop.f32.mrb[66].mxu0 }
0x3828   :  { %v4968_v32 = vmul.f32 0.125, %v4964_v31  ;;  %v5121_v33 = vmul.f32 2.0, %v4964_v31  ;;  %v11640_v34 = vpop.f32.mrb[67].mxu0  ;;  %v5472_v31 = vld [vmem:[%s14297_s11] sm:$0xff] }
0x3829   :  { %v5474_v34 = vld [vmem:[%s14297_s11 + $0x10] sm:$0xff] }
0x382a   :  { %v4969_v35 = vadd.f32 %v4968_v32, %v13644_v30  ;;  %v5122_v36 = vadd.f32 %v5121_v33, %v5120_v21  ;;  %v5473_v32 = vld [vmem:[%s14297_s11 + $0x8] sm:$0xff] }
0x382b   :  { %v13794_v33 = vpack.c.bf16 %v5473_v32, %v5472_v31 }
0x382c   :  { %11646 = vmatmul.mubr.msk.f32.vlgmr.msra.gmra.mrb[60].mxu1 %vm253_vm3, %v4969_v35  ;;  %v5475_v35 = vld [vmem:[%s14297_s11 + $0x18] sm:$0xff] }
0x382d   :  { %12559 = vmatpush3.bf16.msra.mxu1 %v13215_v26  ;;  %11656 = vmatprep.mubr.msk.f32.mxu1 %vm13039_vm1, %v13038_v2  ;;  %v5126_v26 = vld [vmem:[%s14298_s12] sm:$0xff] }
0x382e   :  { %12560 = vmatprep.subr.bf16.mxu1 %v13040_v6 }
0x3831   :  { %12562 = vmatpush3.bf16.msra.mxu1 %v13227_v29  ;;  %v5127_v29 = vld [vmem:[%s14298_s12 + $0x8] sm:$0xff] }
0x3832   :  { %11677 = vmatprep.subr.mxu1 %v13038_v2  ;;  %v12564_v43 = vpack.c.bf16 %v5127_v29, %v5126_v26 }
0x3834   :  { %12565 = vmatpush3.bf16.msra.mxu0 %v12564_v43 }
0x3835   :  { %12566 = vmatprep.subr.bf16.mxu0 %v13040_v6 }
0x38ff   :  { %v5039_v37 = vpop.f32.mrb[60].mxu1 }
0x3900   :  { %v5040_v38 = vadd.f32 %v13576_v62, %v5039_v37  ;;  %v11647_v39 = vpop.f32.mrb[61].mxu1  ;;  %v13811_v37 = vld [vmem:[%s14320_s15] ss:$0 sm:$0xff] }
0x3902   :  { %12940 = vtanh.f32 %v5040_v38 }
0x390c   :  { %v12941_v40 = vpop.eup %12940 }
0x390d   :  { %v5044_v41 = vmul.f32 %v12941_v40, %v12941_v40 }
0x390f   :  { %v5045_v42 = vsub.f32 1.0, %v5044_v41 }
0x3911   :  { %11657 = vmatmul.mubr.msk.f32.vlgmr.msra.gmra.mrb[62].mxu1 %vm161_vm2, %v5045_v42 }
0x3912   :  { %11679 = vmatprep.mubr.msk.f32.mxu1 %vm13039_vm1, %v13038_v2  ;;  %11678 = vmatpush3.msra.mxu1 %v5303_v1 }
0x3913   :  { %12572 = vmatprep.subr.bf16.mxu1 %v13040_v6 }
0x39e4   :  { %v5115_v62 = vpop.f32.mrb[62].mxu1 }
0x39e5   :  { %v5123_v44 = vadd.f32 %v5122_v36, %v5115_v62  ;;  %v11658_v45 = vpop.f32.mrb[63].mxu1  ;;  %v13804_v36 = vpack.c.bf16 %v5475_v35, %v5474_v34 }
0x39e7   :  { %v5124_v46 = vmul.f32 0.020833334, %v5123_v44 }
0x39e9   :  { %v5125_v47 = vadd.f32 %v5124_v46, %v13644_v30 }
0x39eb   :  { %10358 = vrot.lane.b32.xlu1 %v5125_v47, %s13042_s2  ;;  %11664 = vmatmul.mubr.msk.f32.vlgmr.msra.gmra.mrb[68].mxu0 %vm253_vm3, %v5125_v47 }
0x39ec   :  { %11674 = vmatprep.mubr.msk.f32.mxu0 %vm13039_vm1, %v13038_v2  ;;  %12568 = vmatpush3.bf16.msra.mxu0 %v12567_v51 }
0x39ed   :  { %12569 = vmatprep.subr.bf16.mxu0 %v13040_v6 }
0x39f0   :  { %12571 = vmatpush3.bf16.msra.mxu0 %v12570_v53 }
0x39f1   :  { %12578 = vmatprep.subr.bf16.mxu0 %v13040_v6 }
0x3abe   :  { %v5209_v55 = vpop.f32.mrb[68].mxu0 }
0x3abf   :  { %v5210_v56 = vadd.f32 %v10460_v54, %v5209_v55  ;;  %v11665_v57 = vpop.f32.mrb[69].mxu0 }
0x3ac1   :  { %12942 = vtanh.f32 %v5210_v56 }
0x3acb   :  { %v12943_v58 = vpop.eup %12942 }
0x3acc   :  { %11675 = vmatmul.mubr.msk.f32.vlgmr.msra.gmra.mrb[70].mxu0 %vm161_vm2, %v12943_v58 }
0x3acd   :  { %11697 = vmatprep.mubr.msk.f32.mxu0 %vm13039_vm1, %v13038_v2  ;;  %12580 = vmatpush3.bf16.msra.mxu0 %v13766_v18 }
0x3ace   :  { %12581 = vmatprep.subr.bf16.mxu0 %v13040_v6 }
0x3b9f   :  { %v5289_v30 = vpop.f32.mrb[70].mxu0 }
0x3ba0   :  { %v13732_v60 = vadd.f32 %v10462_v59, %v5289_v30  ;;  %v11676_v61 = vpop.f32.mrb[71].mxu0 }
0x3ba2   :  { %v5294_v63 = vmul.f32 0.5, %v13732_v60 }
0x3ba4   :  { %v5295_v0 = vmul.f32 1.442695, %v5294_v63 }
0x3ba6   :  { %12944 = vpow2.f32 %v5295_v0 }
0x3bb0   :  { %v12945_v3 = vpop.eup %12944 }
0x3bb1   :  { %5298 = vrot.lane.b32.xlu0 %v12945_v3, %s13043_s0 }
0x3c23   :  { %v5299_v5 = vpop.permute.xlu0 %5298 }
0x3c24   :  { %v5301_v7 = vmul.f32 %v5299_v5, %v5293_v4 }
0x3c26   :  { %v5302_v8 = vadd.f32 %v5301_v7, %v13732_v60 }
0x3c28   :  { %11680 = vmatmul.mubr.msk.f32.vlgmr.msra.gmra.mrb[64].mxu1 %vm80_vm0, %v5302_v8 }
0x3c29   :  { %11690 = vmatprep.mubr.msk.f32.mxu1 %vm13039_vm1, %v13038_v2  ;;  %12574 = vmatpush3.bf16.msra.mxu1 %v12573_v12 }
0x3c2a   :  { %12575 = vmatprep.subr.bf16.mxu1 %v13040_v6 }
0x3c2d   :  { %12577 = vmatpush3.bf16.msra.mxu1 %v12576_v14 }
0x3c2e   :  { %12587 = vmatprep.subr.bf16.mxu1 %v13040_v6 }
0x3cfb   :  { %v5385_v20 = vpop.f32.mrb[64].mxu1 }
0x3cfc   :  { %v5386_v21 = vadd.f32 %v10464_v19, %v5385_v20  ;;  %v11681_v17 = vpop.f32.mrb[65].mxu1 }
0x3cfe   :  { %12946 = vtanh.f32 %v5386_v21 }
0x3d08   :  { %v12947_v22 = vpop.eup %12946 }
0x3d09   :  { %11691 = vmatmul.mubr.msk.f32.vlgmr.msra.gmra.mrb[66].mxu1 %vm161_vm2, %v12947_v22 }
0x3d0a   :  { %12589 = vmatpush3.bf16.msra.mxu1 %v13766_v18  ;;  %11715 = vmatprep.mubr.msk.f32.mxu1 %vm13039_vm1, %v13038_v2 }
0x3d0b   :  { %12590 = vmatprep.subr.bf16.mxu1 %v13040_v6 }
0x3ddc   :  { %v5465_v25 = vpop.f32.mrb[66].mxu1 }
0x3ddd   :  { %v13781_v27 = vadd.f32 %v10466_v24, %v5465_v25  ;;  %v11692_v28 = vpop.f32.mrb[67].mxu1 }
0x3ddf   :  { %10361 = vrot.lane.b32.xlu0 %v13781_v27, %s13044_s17  ;;  %11698 = vmatmul.mubr.msk.f32.vlgmr.msra.gmra.mrb[72].mxu0 %vm253_vm3, %v13781_v27 }
0x3de0   :  { %11708 = vmatprep.mubr.msk.f32.mxu0 %vm13039_vm1, %v13038_v2  ;;  %12583 = vmatpush3.bf16.msra.mxu0 %v13794_v33 }
0x3de1   :  { %12584 = vmatprep.subr.bf16.mxu0 %v13040_v6 }
0x3de4   :  { %12586 = vmatpush3.bf16.msra.mxu0 %v13804_v36 }
0x3de5   :  { %12596 = vmatprep.subr.bf16.mxu0 %v13040_v6 }
0x3eb2   :  { %v5551_v38 = vpop.f32.mrb[72].mxu0 }
0x3eb3   :  { %v5552_v39 = vadd.f32 %v13811_v37, %v5551_v38  ;;  %v11699_v40 = vpop.f32.mrb[73].mxu0 }
0x3eb5   :  { %12948 = vtanh.f32 %v5552_v39 }
0x3ebf   :  { %v12949_v41 = vpop.eup %12948 }
0x3ec0   :  { %v5556_v42 = vmul.f32 %v12949_v41, %v12949_v41 }
0x3ec2   :  { %v5557_v26 = vsub.f32 1.0, %v5556_v42 }
0x3ec4   :  { %11709 = vmatmul.mubr.msk.f32.vlgmr.msra.gmra.mrb[74].mxu0 %vm161_vm2, %v5557_v26 }
0x3ec5   :  { %12598 = vmatpush3.bf16.msra.mxu0 %v13766_v18  ;;  %11733 = vmatprep.mubr.msk.f32.mxu0 %vm13039_vm1, %v13038_v2 }
0x3ec6   :  { %12599 = vmatprep.subr.bf16.mxu0 %v13040_v6 }
0x3f97   :  { %v5627_v29 = vpop.f32.mrb[74].mxu0 }
0x3f98   :  { %v5631_v43 = vmul.f32 -0.0625, %v5627_v29  ;;  %v11710_v62 = vpop.f32.mrb[75].mxu0 }
0x3f9a   :  { %v5632_v44 = vadd.f32 %v5631_v43, %v13781_v27 }
0x3f9c   :  { %11716 = vmatmul.mubr.msk.f32.vlgmr.msra.gmra.mrb[68].mxu1 %vm253_vm3, %v5632_v44 }
0x3f9d   :  { %12592 = vmatpush3.bf16.msra.mxu1 %v13794_v33  ;;  %11726 = vmatprep.mubr.msk.f32.mxu1 %vm13039_vm1, %v13038_v2 }
0x3f9e   :  { %12593 = vmatprep.subr.bf16.mxu1 %v13040_v6 }
0x3fa1   :  { %12595 = vmatpush3.bf16.msra.mxu1 %v13804_v36 }
0x3fa2   :  { %12605 = vmatprep.subr.bf16.mxu1 %v13040_v6 }
0x406f   :  { %v5702_v45 = vpop.f32.mrb[68].mxu1 }
0x4070   :  { %v5703_v46 = vadd.f32 %v13811_v37, %v5702_v45  ;;  %v11717_v47 = vpop.f32.mrb[69].mxu1 }
0x4072   :  { %12950 = vtanh.f32 %v5703_v46 }
0x407c   :  { %v12951_v48 = vpop.eup %12950 }
0x407d   :  { %v5707_v49 = vmul.f32 %v12951_v48, %v12951_v48 }
0x407f   :  { %v5708_v50 = vsub.f32 1.0, %v5707_v49 }
0x4081   :  { %11727 = vmatmul.mubr.msk.f32.vlgmr.msra.gmra.mrb[70].mxu1 %vm161_vm2, %v5708_v50 }
0x4082   :  { %12607 = vmatpush3.bf16.msra.mxu1 %v13766_v18  ;;  %11751 = vmatprep.mubr.msk.f32.mxu1 %vm13039_vm1, %v13038_v2 }
0x4083   :  { %12608 = vmatprep.subr.bf16.mxu1 %v13040_v6 }
0x4154   :  { %v5778_v51 = vpop.f32.mrb[70].mxu1 }
0x4155   :  { %v5782_v52 = vmul.f32 -0.0625, %v5778_v51  ;;  %v6084_v53 = vmul.f32 2.0, %v5778_v51  ;;  %v11728_v54 = vpop.f32.mrb[71].mxu1 }
0x4157   :  { %v5783_v55 = vadd.f32 %v5782_v52, %v13781_v27  ;;  %v6085_v56 = vadd.f32 %v6084_v53, %v5627_v29 }
0x4159   :  { %11734 = vmatmul.mubr.msk.f32.vlgmr.msra.gmra.mrb[76].mxu0 %vm253_vm3, %v5783_v55 }
0x415a   :  { %12601 = vmatpush3.bf16.msra.mxu0 %v13794_v33  ;;  %11744 = vmatprep.mubr.msk.f32.mxu0 %vm13039_vm1, %v13038_v2 }
0x415b   :  { %12602 = vmatprep.subr.bf16.mxu0 %v13040_v6 }
0x415e   :  { %12604 = vmatpush3.bf16.msra.mxu0 %v13804_v36 }
0x415f   :  { %12614 = vmatprep.subr.bf16.mxu0 %v13040_v6 }
0x422c   :  { %v5853_v57 = vpop.f32.mrb[76].mxu0 }
0x422d   :  { %v5854_v58 = vadd.f32 %v13811_v37, %v5853_v57  ;;  %v11735_v59 = vpop.f32.mrb[77].mxu0 }
0x422f   :  { %12952 = vtanh.f32 %v5854_v58 }
0x4239   :  { %v12953_v30 = vpop.eup %12952 }
0x423a   :  { %v5858_v61 = vmul.f32 %v12953_v30, %v12953_v30 }
0x423c   :  { %v5859_v63 = vsub.f32 1.0, %v5858_v61 }
0x423e   :  { %11745 = vmatmul.mubr.msk.f32.vlgmr.msra.gmra.mrb[78].mxu0 %vm161_vm2, %v5859_v63 }
0x423f   :  { %12616 = vmatpush3.bf16.msra.mxu0 %v13766_v18  ;;  %11769 = vmatprep.mubr.msk.f32.mxu0 %vm13039_vm1, %v13038_v2 }
0x4240   :  { %12617 = vmatprep.subr.bf16.mxu0 %v13040_v6 }
0x4311   :  { %v5929_v0 = vpop.f32.mrb[78].mxu0 }
0x4312   :  { %v5933_v1 = vmul.f32 -0.125, %v5929_v0  ;;  %v6086_v3 = vmul.f32 2.0, %v5929_v0  ;;  %v11746_v4 = vpop.f32.mrb[79].mxu0 }
0x4314   :  { %v5934_v5 = vadd.f32 %v5933_v1, %v13781_v27  ;;  %v6087_v7 = vadd.f32 %v6086_v3, %v6085_v56 }
0x4316   :  { %11752 = vmatmul.mubr.msk.f32.vlgmr.msra.gmra.mrb[72].mxu1 %vm253_vm3, %v5934_v5 }
0x4317   :  { %12610 = vmatpush3.bf16.msra.mxu1 %v13794_v33  ;;  %11762 = vmatprep.mubr.msk.f32.mxu1 %vm13039_vm1, %v13038_v2 }
0x4318   :  { %12611 = vmatprep.subr.bf16.mxu1 %v13040_v6 }
0x431b   :  { %12613 = vmatpush3.bf16.msra.mxu1 %v13804_v36 }
0x431c   :  { %12623 = vmatprep.subr.bf16.mxu1 %v13040_v6 }
0x43e9   :  { %v6004_v8 = vpop.f32.mrb[72].mxu1 }
0x43ea   :  { %v6005_v9 = vadd.f32 %v13811_v37, %v6004_v8  ;;  %v11753_v10 = vpop.f32.mrb[73].mxu1 }
0x43ec   :  { %12954 = vtanh.f32 %v6005_v9 }
0x43f6   :  { %v12955_v11 = vpop.eup %12954 }
0x43f7   :  { %v6009_v12 = vmul.f32 %v12955_v11, %v12955_v11 }
0x43f9   :  { %v6010_v13 = vsub.f32 1.0, %v6009_v12 }
0x43fb   :  { %11763 = vmatmul.mubr.msk.f32.vlgmr.msra.gmra.mrb[74].mxu1 %vm161_vm2, %v6010_v13 }
0x43fc   :  { %12625 = vmatpush3.bf16.msra.mxu1 %v13766_v18  ;;  %11787 = vmatprep.mubr.msk.f32.mxu1 %vm13039_vm1, %v13038_v2 }
0x43fd   :  { %12626 = vmatprep.subr.bf16.mxu1 %v13040_v6 }
0x44ce   :  { %v6080_v14 = vpop.f32.mrb[74].mxu1 }
0x44cf   :  { %v6088_v15 = vadd.f32 %v6087_v7, %v6080_v14  ;;  %v11764_v16 = vpop.f32.mrb[75].mxu1 }
0x44d1   :  { %v6089_v19 = vmul.f32 -0.020833334, %v6088_v15 }
0x44d3   :  { %v13862_v20 = vadd.f32 %v6089_v19, %v13781_v27 }
0x44d5   :  { %11770 = vmatmul.mubr.msk.f32.vlgmr.msra.gmra.mrb[80].mxu0 %vm253_vm3, %v13862_v20 }
0x44d6   :  { %12619 = vmatpush3.bf16.msra.mxu0 %v13794_v33  ;;  %11780 = vmatprep.mubr.msk.f32.mxu0 %vm13039_vm1, %v13038_v2 }
0x44d7   :  { %12620 = vmatprep.subr.bf16.mxu0 %v13040_v6 }
0x44da   :  { %12622 = vmatpush3.bf16.msra.mxu0 %v13804_v36 }
0x44db   :  { %12632 = vmatprep.subr.bf16.mxu0 %v13040_v6 }
0x45a8   :  { %v6160_v21 = vpop.f32.mrb[80].mxu0 }
0x45a9   :  { %v6161_v17 = vadd.f32 %v13811_v37, %v6160_v21  ;;  %v11771_v22 = vpop.f32.mrb[81].mxu0 }
0x45ab   :  { %12956 = vtanh.f32 %v6161_v17 }
0x45b5   :  { %v12957_v24 = vpop.eup %12956 }
0x45b6   :  { %v6165_v25 = vmul.f32 %v12957_v24, %v12957_v24 }
0x45b8   :  { %v6166_v27 = vsub.f32 1.0, %v6165_v25 }
0x45ba   :  { %11781 = vmatmul.mubr.msk.f32.vlgmr.msra.gmra.mrb[82].mxu0 %vm161_vm2, %v6166_v27 }
0x45bb   :  { %12634 = vmatpush3.bf16.msra.mxu0 %v13766_v18  ;;  %11805 = vmatprep.mubr.msk.f32.mxu0 %vm13039_vm1, %v13038_v2 }
0x45bc   :  { %12635 = vmatprep.subr.bf16.mxu0 %v13040_v6 }
0x468d   :  { %v6236_v28 = vpop.f32.mrb[82].mxu0 }
0x468e   :  { %v6240_v31 = vmul.f32 -0.0625, %v6236_v28  ;;  %v11782_v32 = vpop.f32.mrb[83].mxu0 }
0x4690   :  { %v6241_v34 = vadd.f32 %v6240_v31, %v13862_v20 }
0x4692   :  { %11788 = vmatmul.mubr.msk.f32.vlgmr.msra.gmra.mrb[76].mxu1 %vm253_vm3, %v6241_v34 }
0x4693   :  { %12628 = vmatpush3.bf16.msra.mxu1 %v13794_v33  ;;  %11798 = vmatprep.mubr.msk.f32.mxu1 %vm13039_vm1, %v13038_v2 }
0x4694   :  { %12629 = vmatprep.subr.bf16.mxu1 %v13040_v6 }
0x4697   :  { %12631 = vmatpush3.bf16.msra.mxu1 %v13804_v36 }
0x4698   :  { %12641 = vmatprep.subr.bf16.mxu1 %v13040_v6 }
0x4765   :  { %v6311_v35 = vpop.f32.mrb[76].mxu1 }
0x4766   :  { %v6312_v38 = vadd.f32 %v13811_v37, %v6311_v35  ;;  %v11789_v39 = vpop.f32.mrb[77].mxu1 }
0x4768   :  { %12958 = vtanh.f32 %v6312_v38 }
0x4772   :  { %v12959_v40 = vpop.eup %12958 }
0x4773   :  { %v6316_v41 = vmul.f32 %v12959_v40, %v12959_v40 }
0x4775   :  { %v6317_v42 = vsub.f32 1.0, %v6316_v41 }
0x4777   :  { %11799 = vmatmul.mubr.msk.f32.vlgmr.msra.gmra.mrb[78].mxu1 %vm161_vm2, %v6317_v42 }
0x4778   :  { %12643 = vmatpush3.bf16.msra.mxu1 %v13766_v18  ;;  %11823 = vmatprep.mubr.msk.f32.mxu1 %vm13039_vm1, %v13038_v2 }
0x4779   :  { %12644 = vmatprep.subr.bf16.mxu1 %v13040_v6 }
0x484a   :  { %v6387_v26 = vpop.f32.mrb[78].mxu1 }
0x484b   :  { %v6391_v29 = vmul.f32 -0.0625, %v6387_v26  ;;  %v6693_v43 = vmul.f32 2.0, %v6387_v26  ;;  %v11800_v62 = vpop.f32.mrb[79].mxu1 }
0x484d   :  { %v6392_v44 = vadd.f32 %v6391_v29, %v13862_v20  ;;  %v6694_v45 = vadd.f32 %v6693_v43, %v6236_v28 }
0x484f   :  { %11806 = vmatmul.mubr.msk.f32.vlgmr.msra.gmra.mrb[84].mxu0 %vm253_vm3, %v6392_v44 }
0x4850   :  { %12637 = vmatpush3.bf16.msra.mxu0 %v13794_v33  ;;  %11816 = vmatprep.mubr.msk.f32.mxu0 %vm13039_vm1, %v13038_v2 }
0x4851   :  { %12638 = vmatprep.subr.bf16.mxu0 %v13040_v6 }
0x4854   :  { %12640 = vmatpush3.bf16.msra.mxu0 %v13804_v36 }
0x4855   :  { %12650 = vmatprep.subr.bf16.mxu0 %v13040_v6 }
0x4922   :  { %v6462_v46 = vpop.f32.mrb[84].mxu0 }
0x4923   :  { %v6463_v47 = vadd.f32 %v13811_v37, %v6462_v46  ;;  %v11807_v48 = vpop.f32.mrb[85].mxu0 }
0x4925   :  { %12960 = vtanh.f32 %v6463_v47 }
0x492f   :  { %v12961_v49 = vpop.eup %12960 }
0x4930   :  { %v6467_v50 = vmul.f32 %v12961_v49, %v12961_v49 }
0x4932   :  { %v6468_v51 = vsub.f32 1.0, %v6467_v50 }
0x4934   :  { %11817 = vmatmul.mubr.msk.f32.vlgmr.msra.gmra.mrb[86].mxu0 %vm161_vm2, %v6468_v51 }
0x4935   :  { %12652 = vmatpush3.bf16.msra.mxu0 %v13766_v18  ;;  %11841 = vmatprep.mubr.msk.f32.mxu0 %vm13039_vm1, %v13038_v2 }
0x4936   :  { %12653 = vmatprep.subr.bf16.mxu0 %v13040_v6 }
0x4a07   :  { %v6538_v52 = vpop.f32.mrb[86].mxu0 }
0x4a08   :  { %v6542_v53 = vmul.f32 -0.125, %v6538_v52  ;;  %v6695_v54 = vmul.f32 2.0, %v6538_v52  ;;  %v11818_v55 = vpop.f32.mrb[87].mxu0 }
0x4a0a   :  { %v6543_v56 = vadd.f32 %v6542_v53, %v13862_v20  ;;  %v6696_v57 = vadd.f32 %v6695_v54, %v6694_v45 }
0x4a0c   :  { %11824 = vmatmul.mubr.msk.f32.vlgmr.msra.gmra.mrb[80].mxu1 %vm253_vm3, %v6543_v56 }
0x4a0d   :  { %12646 = vmatpush3.bf16.msra.mxu1 %v13794_v33  ;;  %11834 = vmatprep.mubr.msk.f32.mxu1 %vm13039_vm1, %v13038_v2 }
0x4a0e   :  { %12647 = vmatprep.subr.bf16.mxu1 %v13040_v6 }
0x4a11   :  { %12649 = vmatpush3.bf16.msra.mxu1 %v13804_v36 }
0x4a12   :  { %12659 = vmatprep.subr.bf16.mxu1 %v13040_v6 }
0x4adf   :  { %v6613_v58 = vpop.f32.mrb[80].mxu1 }
0x4ae0   :  { %v6614_v59 = vadd.f32 %v13811_v37, %v6613_v58  ;;  %v11825_v30 = vpop.f32.mrb[81].mxu1 }
0x4ae2   :  { %12962 = vtanh.f32 %v6614_v59 }
0x4aec   :  { %v12963_v61 = vpop.eup %12962 }
0x4aed   :  { %v6618_v63 = vmul.f32 %v12963_v61, %v12963_v61 }
0x4aef   :  { %v6619_v0 = vsub.f32 1.0, %v6618_v63 }
0x4af1   :  { %11835 = vmatmul.mubr.msk.f32.vlgmr.msra.gmra.mrb[82].mxu1 %vm161_vm2, %v6619_v0 }
0x4af2   :  { %12661 = vmatpush3.bf16.msra.mxu1 %v13766_v18  ;;  %11859 = vmatprep.mubr.msk.f32.mxu1 %vm13039_vm1, %v13038_v2 }
0x4af3   :  { %12662 = vmatprep.subr.bf16.mxu1 %v13040_v6 }
0x4bc4   :  { %v6689_v1 = vpop.f32.mrb[82].mxu1 }
0x4bc5   :  { %v6697_v3 = vadd.f32 %v6696_v57, %v6689_v1  ;;  %v11836_v4 = vpop.f32.mrb[83].mxu1 }
0x4bc7   :  { %v6698_v5 = vmul.f32 -0.020833334, %v6697_v3 }
0x4bc9   :  { %v13921_v7 = vadd.f32 %v6698_v5, %v13862_v20 }
0x4bcb   :  { %11842 = vmatmul.mubr.msk.f32.vlgmr.msra.gmra.mrb[88].mxu0 %vm253_vm3, %v13921_v7 }
0x4bcc   :  { %12655 = vmatpush3.bf16.msra.mxu0 %v13794_v33  ;;  %11852 = vmatprep.mubr.msk.f32.mxu0 %vm13039_vm1, %v13038_v2 }
0x4bcd   :  { %12656 = vmatprep.subr.bf16.mxu0 %v13040_v6 }
0x4bd0   :  { %12658 = vmatpush3.bf16.msra.mxu0 %v13804_v36 }
0x4bd1   :  { %12668 = vmatprep.subr.bf16.mxu0 %v13040_v6 }
0x4c9e   :  { %v6769_v8 = vpop.f32.mrb[88].mxu0 }
0x4c9f   :  { %v6770_v9 = vadd.f32 %v13811_v37, %v6769_v8  ;;  %v11843_v10 = vpop.f32.mrb[89].mxu0 }
0x4ca1   :  { %12964 = vtanh.f32 %v6770_v9 }
0x4cab   :  { %v12965_v11 = vpop.eup %12964 }
0x4cac   :  { %v6774_v12 = vmul.f32 %v12965_v11, %v12965_v11 }
0x4cae   :  { %v6775_v13 = vsub.f32 1.0, %v6774_v12 }
0x4cb0   :  { %11853 = vmatmul.mubr.msk.f32.vlgmr.msra.gmra.mrb[90].mxu0 %vm161_vm2, %v6775_v13 }
0x4cb1   :  { %12670 = vmatpush3.bf16.msra.mxu0 %v13766_v18  ;;  %11877 = vmatprep.mubr.msk.f32.mxu0 %vm13039_vm1, %v13038_v2 }
0x4cb2   :  { %12671 = vmatprep.subr.bf16.mxu0 %v13040_v6 }
0x4d83   :  { %v6845_v14 = vpop.f32.mrb[90].mxu0 }
0x4d84   :  { %v6849_v15 = vmul.f32 -0.0625, %v6845_v14  ;;  %v11854_v16 = vpop.f32.mrb[91].mxu0 }
0x4d86   :  { %v6850_v19 = vadd.f32 %v6849_v15, %v13921_v7 }
0x4d88   :  { %11860 = vmatmul.mubr.msk.f32.vlgmr.msra.gmra.mrb[84].mxu1 %vm253_vm3, %v6850_v19 }
0x4d89   :  { %12664 = vmatpush3.bf16.msra.mxu1 %v13794_v33  ;;  %11870 = vmatprep.mubr.msk.f32.mxu1 %vm13039_vm1, %v13038_v2 }
0x4d8a   :  { %12665 = vmatprep.subr.bf16.mxu1 %v13040_v6 }
0x4d8d   :  { %12667 = vmatpush3.bf16.msra.mxu1 %v13804_v36 }
0x4d8e   :  { %12677 = vmatprep.subr.bf16.mxu1 %v13040_v6 }
0x4e5b   :  { %v6920_v20 = vpop.f32.mrb[84].mxu1 }
0x4e5c   :  { %v6921_v21 = vadd.f32 %v13811_v37, %v6920_v20  ;;  %v11861_v17 = vpop.f32.mrb[85].mxu1 }
0x4e5e   :  { %12966 = vtanh.f32 %v6921_v21 }
0x4e68   :  { %v12967_v22 = vpop.eup %12966 }
0x4e69   :  { %v6925_v24 = vmul.f32 %v12967_v22, %v12967_v22 }
0x4e6b   :  { %v6926_v25 = vsub.f32 1.0, %v6925_v24 }
0x4e6d   :  { %11871 = vmatmul.mubr.msk.f32.vlgmr.msra.gmra.mrb[86].mxu1 %vm161_vm2, %v6926_v25 }
0x4e6e   :  { %12679 = vmatpush3.bf16.msra.mxu1 %v13766_v18  ;;  %11895 = vmatprep.mubr.msk.f32.mxu1 %vm13039_vm1, %v13038_v2 }
0x4e6f   :  { %12680 = vmatprep.subr.bf16.mxu1 %v13040_v6 }
0x4f40   :  { %v6996_v27 = vpop.f32.mrb[86].mxu1 }
0x4f41   :  { %v7000_v28 = vmul.f32 -0.0625, %v6996_v27  ;;  %v7302_v31 = vmul.f32 2.0, %v6996_v27  ;;  %v11872_v32 = vpop.f32.mrb[87].mxu1 }
0x4f43   :  { %v7001_v34 = vadd.f32 %v7000_v28, %v13921_v7  ;;  %v7303_v35 = vadd.f32 %v7302_v31, %v6845_v14 }
0x4f45   :  { %11878 = vmatmul.mubr.msk.f32.vlgmr.msra.gmra.mrb[92].mxu0 %vm253_vm3, %v7001_v34 }
0x4f46   :  { %12673 = vmatpush3.bf16.msra.mxu0 %v13794_v33  ;;  %11888 = vmatprep.mubr.msk.f32.mxu0 %vm13039_vm1, %v13038_v2 }
0x4f47   :  { %12674 = vmatprep.subr.bf16.mxu0 %v13040_v6 }
0x4f4a   :  { %12676 = vmatpush3.bf16.msra.mxu0 %v13804_v36 }
0x4f4b   :  { %12686 = vmatprep.subr.bf16.mxu0 %v13040_v6 }
0x5018   :  { %v7071_v38 = vpop.f32.mrb[92].mxu0 }
0x5019   :  { %v7072_v39 = vadd.f32 %v13811_v37, %v7071_v38  ;;  %v11879_v40 = vpop.f32.mrb[93].mxu0 }
0x501b   :  { %12968 = vtanh.f32 %v7072_v39 }
0x5025   :  { %v12969_v41 = vpop.eup %12968 }
0x5026   :  { %v7076_v42 = vmul.f32 %v12969_v41, %v12969_v41 }
0x5028   :  { %v7077_v26 = vsub.f32 1.0, %v7076_v42 }
0x502a   :  { %11889 = vmatmul.mubr.msk.f32.vlgmr.msra.gmra.mrb[94].mxu0 %vm161_vm2, %v7077_v26 }
0x502b   :  { %12688 = vmatpush3.bf16.msra.mxu0 %v13766_v18  ;;  %11913 = vmatprep.mubr.msk.f32.mxu0 %vm13039_vm1, %v13038_v2 }
0x502c   :  { %12689 = vmatprep.subr.bf16.mxu0 %v13040_v6 }
0x50fd   :  { %v7147_v29 = vpop.f32.mrb[94].mxu0 }
0x50fe   :  { %v7151_v43 = vmul.f32 -0.125, %v7147_v29  ;;  %v7304_v62 = vmul.f32 2.0, %v7147_v29  ;;  %v11890_v44 = vpop.f32.mrb[95].mxu0 }
0x5100   :  { %v7152_v45 = vadd.f32 %v7151_v43, %v13921_v7  ;;  %v7305_v46 = vadd.f32 %v7304_v62, %v7303_v35 }
0x5102   :  { %11896 = vmatmul.mubr.msk.f32.vlgmr.msra.gmra.mrb[88].mxu1 %vm253_vm3, %v7152_v45 }
0x5103   :  { %12682 = vmatpush3.bf16.msra.mxu1 %v13794_v33  ;;  %11906 = vmatprep.mubr.msk.f32.mxu1 %vm13039_vm1, %v13038_v2 }
0x5104   :  { %12683 = vmatprep.subr.bf16.mxu1 %v13040_v6 }
0x5107   :  { %12685 = vmatpush3.bf16.msra.mxu1 %v13804_v36 }
0x5108   :  { %12695 = vmatprep.subr.bf16.mxu1 %v13040_v6 }
0x51d5   :  { %v7222_v47 = vpop.f32.mrb[88].mxu1 }
0x51d6   :  { %v7223_v48 = vadd.f32 %v13811_v37, %v7222_v47  ;;  %v11897_v49 = vpop.f32.mrb[89].mxu1 }
0x51d8   :  { %12970 = vtanh.f32 %v7223_v48 }
0x51e2   :  { %v12971_v50 = vpop.eup %12970 }
0x51e3   :  { %v7227_v51 = vmul.f32 %v12971_v50, %v12971_v50 }
0x51e5   :  { %v7228_v52 = vsub.f32 1.0, %v7227_v51 }
0x51e7   :  { %11907 = vmatmul.mubr.msk.f32.vlgmr.msra.gmra.mrb[90].mxu1 %vm161_vm2, %v7228_v52 }
0x51e8   :  { %12697 = vmatpush3.bf16.msra.mxu1 %v13766_v18  ;;  %11931 = vmatprep.mubr.msk.f32.mxu1 %vm13039_vm1, %v13038_v2 }
0x51e9   :  { %12698 = vmatprep.subr.bf16.mxu1 %v13040_v6 }
0x52ba   :  { %v7298_v53 = vpop.f32.mrb[90].mxu1 }
0x52bb   :  { %v7306_v54 = vadd.f32 %v7305_v46, %v7298_v53  ;;  %v11908_v55 = vpop.f32.mrb[91].mxu1 }
0x52bd   :  { %v7307_v56 = vmul.f32 -0.020833334, %v7306_v54 }
0x52bf   :  { %v13980_v57 = vadd.f32 %v7307_v56, %v13921_v7 }
0x52c1   :  { %11914 = vmatmul.mubr.msk.f32.vlgmr.msra.gmra.mrb[96].mxu0 %vm253_vm3, %v13980_v57 }
0x52c2   :  { %12691 = vmatpush3.bf16.msra.mxu0 %v13794_v33  ;;  %11924 = vmatprep.mubr.msk.f32.mxu0 %vm13039_vm1, %v13038_v2 }
0x52c3   :  { %12692 = vmatprep.subr.bf16.mxu0 %v13040_v6 }
0x52c6   :  { %12694 = vmatpush3.bf16.msra.mxu0 %v13804_v36 }
0x52c7   :  { %12704 = vmatprep.subr.bf16.mxu0 %v13040_v6 }
0x5394   :  { %v7378_v58 = vpop.f32.mrb[96].mxu0 }
0x5395   :  { %v7379_v59 = vadd.f32 %v13811_v37, %v7378_v58  ;;  %v11915_v30 = vpop.f32.mrb[97].mxu0 }
0x5397   :  { %12972 = vtanh.f32 %v7379_v59 }
0x53a1   :  { %v12973_v61 = vpop.eup %12972 }
0x53a2   :  { %v7383_v63 = vmul.f32 %v12973_v61, %v12973_v61 }
0x53a4   :  { %v7384_v0 = vsub.f32 1.0, %v7383_v63 }
0x53a6   :  { %11925 = vmatmul.mubr.msk.f32.vlgmr.msra.gmra.mrb[98].mxu0 %vm161_vm2, %v7384_v0 }
0x53a7   :  { %12706 = vmatpush3.bf16.msra.mxu0 %v13766_v18  ;;  %11949 = vmatprep.mubr.msk.f32.mxu0 %vm13039_vm1, %v13038_v2 }
0x53a8   :  { %12707 = vmatprep.subr.bf16.mxu0 %v13040_v6 }
0x5479   :  { %v7454_v1 = vpop.f32.mrb[98].mxu0 }
0x547a   :  { %v7458_v3 = vmul.f32 -0.0625, %v7454_v1  ;;  %v11926_v4 = vpop.f32.mrb[99].mxu0 }
0x547c   :  { %v7459_v5 = vadd.f32 %v7458_v3, %v13980_v57 }
0x547e   :  { %11932 = vmatmul.mubr.msk.f32.vlgmr.msra.gmra.mrb[92].mxu1 %vm253_vm3, %v7459_v5 }
0x547f   :  { %12700 = vmatpush3.bf16.msra.mxu1 %v13794_v33  ;;  %11942 = vmatprep.mubr.msk.f32.mxu1 %vm13039_vm1, %v13038_v2 }
0x5480   :  { %12701 = vmatprep.subr.bf16.mxu1 %v13040_v6 }
0x5483   :  { %12703 = vmatpush3.bf16.msra.mxu1 %v13804_v36 }
0x5484   :  { %12713 = vmatprep.subr.bf16.mxu1 %v13040_v6 }
0x5551   :  { %v7529_v7 = vpop.f32.mrb[92].mxu1 }
0x5552   :  { %v7530_v8 = vadd.f32 %v13811_v37, %v7529_v7  ;;  %v11933_v9 = vpop.f32.mrb[93].mxu1 }
0x5554   :  { %12974 = vtanh.f32 %v7530_v8 }
0x555e   :  { %v12975_v10 = vpop.eup %12974 }
0x555f   :  { %v7534_v11 = vmul.f32 %v12975_v10, %v12975_v10 }
0x5561   :  { %v7535_v12 = vsub.f32 1.0, %v7534_v11 }
0x5563   :  { %11943 = vmatmul.mubr.msk.f32.vlgmr.msra.gmra.mrb[94].mxu1 %vm161_vm2, %v7535_v12 }
0x5564   :  { %12715 = vmatpush3.bf16.msra.mxu1 %v13766_v18  ;;  %11967 = vmatprep.mubr.msk.f32.mxu1 %vm13039_vm1, %v13038_v2 }
0x5565   :  { %12716 = vmatprep.subr.bf16.mxu1 %v13040_v6 }
0x5636   :  { %v7605_v13 = vpop.f32.mrb[94].mxu1 }
0x5637   :  { %v7609_v14 = vmul.f32 -0.0625, %v7605_v13  ;;  %v7911_v15 = vmul.f32 2.0, %v7605_v13  ;;  %v11944_v16 = vpop.f32.mrb[95].mxu1 }
0x5639   :  { %v7610_v19 = vadd.f32 %v7609_v14, %v13980_v57  ;;  %v7912_v20 = vadd.f32 %v7911_v15, %v7454_v1 }
0x563b   :  { %11950 = vmatmul.mubr.msk.f32.vlgmr.msra.gmra.mrb[100].mxu0 %vm253_vm3, %v7610_v19 }
0x563c   :  { %12709 = vmatpush3.bf16.msra.mxu0 %v13794_v33  ;;  %11960 = vmatprep.mubr.msk.f32.mxu0 %vm13039_vm1, %v13038_v2 }
0x563d   :  { %12710 = vmatprep.subr.bf16.mxu0 %v13040_v6 }
0x5640   :  { %12712 = vmatpush3.bf16.msra.mxu0 %v13804_v36 }
0x5641   :  { %12722 = vmatprep.subr.bf16.mxu0 %v13040_v6 }
0x570e   :  { %v7680_v21 = vpop.f32.mrb[100].mxu0 }
0x570f   :  { %v7681_v17 = vadd.f32 %v13811_v37, %v7680_v21  ;;  %v11951_v22 = vpop.f32.mrb[101].mxu0 }
0x5711   :  { %12976 = vtanh.f32 %v7681_v17 }
0x571b   :  { %v12977_v24 = vpop.eup %12976 }
0x571c   :  { %v7685_v25 = vmul.f32 %v12977_v24, %v12977_v24 }
0x571e   :  { %v7686_v27 = vsub.f32 1.0, %v7685_v25 }
0x5720   :  { %11961 = vmatmul.mubr.msk.f32.vlgmr.msra.gmra.mrb[102].mxu0 %vm161_vm2, %v7686_v27 }
0x5721   :  { %12724 = vmatpush3.bf16.msra.mxu0 %v13766_v18  ;;  %11985 = vmatprep.mubr.msk.f32.mxu0 %vm13039_vm1, %v13038_v2 }
0x5722   :  { %12725 = vmatprep.subr.bf16.mxu0 %v13040_v6 }
0x57f3   :  { %v7756_v28 = vpop.f32.mrb[102].mxu0 }
0x57f4   :  { %v7760_v31 = vmul.f32 -0.125, %v7756_v28  ;;  %v7913_v32 = vmul.f32 2.0, %v7756_v28  ;;  %v11962_v34 = vpop.f32.mrb[103].mxu0 }
0x57f6   :  { %v7761_v35 = vadd.f32 %v7760_v31, %v13980_v57  ;;  %v7914_v38 = vadd.f32 %v7913_v32, %v7912_v20 }
0x57f8   :  { %11968 = vmatmul.mubr.msk.f32.vlgmr.msra.gmra.mrb[96].mxu1 %vm253_vm3, %v7761_v35 }
0x57f9   :  { %12718 = vmatpush3.bf16.msra.mxu1 %v13794_v33  ;;  %11978 = vmatprep.mubr.msk.f32.mxu1 %vm13039_vm1, %v13038_v2 }
0x57fa   :  { %12719 = vmatprep.subr.bf16.mxu1 %v13040_v6 }
0x57fd   :  { %12721 = vmatpush3.bf16.msra.mxu1 %v13804_v36 }
0x57fe   :  { %12731 = vmatprep.subr.bf16.mxu1 %v13040_v6 }
0x58cb   :  { %v7831_v39 = vpop.f32.mrb[96].mxu1 }
0x58cc   :  { %v7832_v40 = vadd.f32 %v13811_v37, %v7831_v39  ;;  %v11969_v41 = vpop.f32.mrb[97].mxu1 }
0x58ce   :  { %12978 = vtanh.f32 %v7832_v40 }
0x58d8   :  { %v12979_v42 = vpop.eup %12978 }
0x58d9   :  { %v7836_v26 = vmul.f32 %v12979_v42, %v12979_v42 }
0x58db   :  { %v7837_v29 = vsub.f32 1.0, %v7836_v26 }
0x58dd   :  { %11979 = vmatmul.mubr.msk.f32.vlgmr.msra.gmra.mrb[98].mxu1 %vm161_vm2, %v7837_v29 }
0x58de   :  { %12733 = vmatpush3.bf16.msra.mxu1 %v13766_v18  ;;  %12003 = vmatprep.mubr.msk.f32.mxu1 %vm13039_vm1, %v13038_v2 }
0x58df   :  { %12734 = vmatprep.subr.bf16.mxu1 %v13040_v6 }
0x59b0   :  { %v7907_v43 = vpop.f32.mrb[98].mxu1 }
0x59b1   :  { %v7915_v62 = vadd.f32 %v7914_v38, %v7907_v43  ;;  %v11980_v44 = vpop.f32.mrb[99].mxu1 }
0x59b3   :  { %v7916_v45 = vmul.f32 -0.020833334, %v7915_v62 }
0x59b5   :  { %v14039_v46 = vadd.f32 %v7916_v45, %v13980_v57 }
0x59b7   :  { %11986 = vmatmul.mubr.msk.f32.vlgmr.msra.gmra.mrb[104].mxu0 %vm253_vm3, %v14039_v46 }
0x59b8   :  { %12727 = vmatpush3.bf16.msra.mxu0 %v13794_v33  ;;  %11996 = vmatprep.mubr.msk.f32.mxu0 %vm13039_vm1, %v13038_v2 }
0x59b9   :  { %12728 = vmatprep.subr.bf16.mxu0 %v13040_v6 }
0x59bc   :  { %12730 = vmatpush3.bf16.msra.mxu0 %v13804_v36 }
0x59bd   :  { %12740 = vmatprep.subr.bf16.mxu0 %v13040_v6 }
0x5a8a   :  { %v7987_v47 = vpop.f32.mrb[104].mxu0 }
0x5a8b   :  { %v7988_v48 = vadd.f32 %v13811_v37, %v7987_v47  ;;  %v11987_v49 = vpop.f32.mrb[105].mxu0 }
0x5a8d   :  { %12980 = vtanh.f32 %v7988_v48 }
0x5a97   :  { %v12981_v50 = vpop.eup %12980 }
0x5a98   :  { %v7992_v51 = vmul.f32 %v12981_v50, %v12981_v50 }
0x5a9a   :  { %v7993_v52 = vsub.f32 1.0, %v7992_v51 }
0x5a9c   :  { %11997 = vmatmul.mubr.msk.f32.vlgmr.msra.gmra.mrb[106].mxu0 %vm161_vm2, %v7993_v52 }
0x5a9d   :  { %12742 = vmatpush3.bf16.msra.mxu0 %v13766_v18  ;;  %12021 = vmatprep.mubr.msk.f32.mxu0 %vm13039_vm1, %v13038_v2 }
0x5a9e   :  { %12743 = vmatprep.subr.bf16.mxu0 %v13040_v6 }
0x5b6f   :  { %v8063_v53 = vpop.f32.mrb[106].mxu0 }
0x5b70   :  { %v8067_v54 = vmul.f32 -0.0625, %v8063_v53  ;;  %v11998_v55 = vpop.f32.mrb[107].mxu0 }
0x5b72   :  { %v8068_v56 = vadd.f32 %v8067_v54, %v14039_v46 }
0x5b74   :  { %12004 = vmatmul.mubr.msk.f32.vlgmr.msra.gmra.mrb[100].mxu1 %vm253_vm3, %v8068_v56 }
0x5b75   :  { %12736 = vmatpush3.bf16.msra.mxu1 %v13794_v33  ;;  %12014 = vmatprep.mubr.msk.f32.mxu1 %vm13039_vm1, %v13038_v2 }
0x5b76   :  { %12737 = vmatprep.subr.bf16.mxu1 %v13040_v6 }
0x5b79   :  { %12739 = vmatpush3.bf16.msra.mxu1 %v13804_v36 }
0x5b7a   :  { %12749 = vmatprep.subr.bf16.mxu1 %v13040_v6 }
0x5c47   :  { %v8138_v57 = vpop.f32.mrb[100].mxu1 }
0x5c48   :  { %v8139_v58 = vadd.f32 %v13811_v37, %v8138_v57  ;;  %v12005_v59 = vpop.f32.mrb[101].mxu1 }
0x5c4a   :  { %12982 = vtanh.f32 %v8139_v58 }
0x5c54   :  { %v12983_v30 = vpop.eup %12982 }
0x5c55   :  { %v8143_v61 = vmul.f32 %v12983_v30, %v12983_v30 }
0x5c57   :  { %v8144_v63 = vsub.f32 1.0, %v8143_v61 }
0x5c59   :  { %12015 = vmatmul.mubr.msk.f32.vlgmr.msra.gmra.mrb[102].mxu1 %vm161_vm2, %v8144_v63 }
0x5c5a   :  { %12751 = vmatpush3.bf16.msra.mxu1 %v13766_v18  ;;  %12039 = vmatprep.mubr.msk.f32.mxu1 %vm13039_vm1, %v13038_v2 }
0x5c5b   :  { %12752 = vmatprep.subr.bf16.mxu1 %v13040_v6 }
0x5d2c   :  { %v8214_v0 = vpop.f32.mrb[102].mxu1 }
0x5d2d   :  { %v8218_v1 = vmul.f32 -0.0625, %v8214_v0  ;;  %v8520_v3 = vmul.f32 2.0, %v8214_v0  ;;  %v12016_v4 = vpop.f32.mrb[103].mxu1 }
0x5d2f   :  { %v8219_v5 = vadd.f32 %v8218_v1, %v14039_v46  ;;  %v8521_v7 = vadd.f32 %v8520_v3, %v8063_v53 }
0x5d31   :  { %12022 = vmatmul.mubr.msk.f32.vlgmr.msra.gmra.mrb[108].mxu0 %vm253_vm3, %v8219_v5 }
0x5d32   :  { %12745 = vmatpush3.bf16.msra.mxu0 %v13794_v33  ;;  %12032 = vmatprep.mubr.msk.f32.mxu0 %vm13039_vm1, %v13038_v2 }
0x5d33   :  { %12746 = vmatprep.subr.bf16.mxu0 %v13040_v6 }
0x5d36   :  { %12748 = vmatpush3.bf16.msra.mxu0 %v13804_v36 }
0x5d37   :  { %12758 = vmatprep.subr.bf16.mxu0 %v13040_v6 }
0x5e04   :  { %v8289_v8 = vpop.f32.mrb[108].mxu0 }
0x5e05   :  { %v8290_v9 = vadd.f32 %v13811_v37, %v8289_v8  ;;  %v12023_v10 = vpop.f32.mrb[109].mxu0 }
0x5e07   :  { %12984 = vtanh.f32 %v8290_v9  ;;  %v14153_v9 = vld [vmem:[%s14320_s15] ss:$0 sm:$0xff] }
0x5e11   :  { %v12985_v11 = vpop.eup %12984 }
0x5e12   :  { %v8294_v12 = vmul.f32 %v12985_v11, %v12985_v11 }
0x5e14   :  { %v8295_v13 = vsub.f32 1.0, %v8294_v12 }
0x5e16   :  { %12033 = vmatmul.mubr.msk.f32.vlgmr.msra.gmra.mrb[110].mxu0 %vm161_vm2, %v8295_v13 }
0x5e17   :  { %12760 = vmatpush3.bf16.msra.mxu0 %v13766_v18  ;;  %12057 = vmatprep.mubr.msk.f32.mxu0 %vm13039_vm1, %v13038_v2 }
0x5e18   :  { %12761 = vmatprep.subr.bf16.mxu0 %v13040_v6 }
0x5ee9   :  { %v8365_v14 = vpop.f32.mrb[110].mxu0 }
0x5eea   :  { %v8369_v15 = vmul.f32 -0.125, %v8365_v14  ;;  %v8522_v16 = vmul.f32 2.0, %v8365_v14  ;;  %v12034_v19 = vpop.f32.mrb[111].mxu0 }
0x5eec   :  { %v8370_v20 = vadd.f32 %v8369_v15, %v14039_v46  ;;  %v8523_v21 = vadd.f32 %v8522_v16, %v8521_v7 }
0x5eee   :  { %12040 = vmatmul.mubr.msk.f32.vlgmr.msra.gmra.mrb[104].mxu1 %vm253_vm3, %v8370_v20 }
0x5eef   :  { %12754 = vmatpush3.bf16.msra.mxu1 %v13794_v33  ;;  %12050 = vmatprep.mubr.msk.f32.mxu1 %vm13039_vm1, %v13038_v2 }
0x5ef0   :  { %12755 = vmatprep.subr.bf16.mxu1 %v13040_v6 }
0x5ef3   :  { %12757 = vmatpush3.bf16.msra.mxu1 %v13804_v36 }
0x5ef4   :  { %12767 = vmatprep.subr.bf16.mxu1 %v13040_v6 }
0x5fc1   :  { %v8440_v17 = vpop.f32.mrb[104].mxu1 }
0x5fc2   :  { %v8441_v22 = vadd.f32 %v13811_v37, %v8440_v17  ;;  %v12041_v24 = vpop.f32.mrb[105].mxu1 }
0x5fc4   :  { %12986 = vtanh.f32 %v8441_v22 }
0x5fce   :  { %v12987_v25 = vpop.eup %12986 }
0x5fcf   :  { %v8445_v27 = vmul.f32 %v12987_v25, %v12987_v25 }
0x5fd1   :  { %v8446_v28 = vsub.f32 1.0, %v8445_v27 }
0x5fd3   :  { %12051 = vmatmul.mubr.msk.f32.vlgmr.msra.gmra.mrb[106].mxu1 %vm161_vm2, %v8446_v28 }
0x5fd4   :  { %12769 = vmatpush3.bf16.msra.mxu1 %v13766_v18  ;;  %12075 = vmatprep.mubr.msk.f32.mxu1 %vm13039_vm1, %v13038_v2 }
0x5fd5   :  { %12770 = vmatprep.subr.bf16.mxu1 %v13040_v6 }
0x60a6   :  { %v8516_v31 = vpop.f32.mrb[106].mxu1 }
0x60a7   :  { %v8524_v32 = vadd.f32 %v8523_v21, %v8516_v31  ;;  %v12052_v34 = vpop.f32.mrb[107].mxu1 }
0x60a9   :  { %v8525_v35 = vmul.f32 -0.020833334, %v8524_v32 }
0x60ab   :  { %v14098_v38 = vadd.f32 %v8525_v35, %v14039_v46 }
0x60ad   :  { %12058 = vmatmul.mubr.msk.f32.vlgmr.msra.gmra.mrb[112].mxu0 %vm253_vm3, %v14098_v38 }
0x60ae   :  { %12763 = vmatpush3.bf16.msra.mxu0 %v13794_v33  ;;  %12068 = vmatprep.mubr.msk.f32.mxu0 %vm13039_vm1, %v13038_v2 }
0x60af   :  { %12764 = vmatprep.subr.bf16.mxu0 %v13040_v6 }
0x60b2   :  { %12766 = vmatpush3.bf16.msra.mxu0 %v13804_v36 }
0x60b3   :  { %12776 = vmatprep.subr.bf16.mxu0 %v13040_v6 }
0x6180   :  { %v8596_v39 = vpop.f32.mrb[112].mxu0 }
0x6181   :  { %v8597_v40 = vadd.f32 %v13811_v37, %v8596_v39  ;;  %v12059_v41 = vpop.f32.mrb[113].mxu0 }
0x6183   :  { %12988 = vtanh.f32 %v8597_v40 }
0x618d   :  { %v12989_v42 = vpop.eup %12988 }
0x618e   :  { %v8601_v26 = vmul.f32 %v12989_v42, %v12989_v42 }
0x6190   :  { %v8602_v29 = vsub.f32 1.0, %v8601_v26 }
0x6192   :  { %12069 = vmatmul.mubr.msk.f32.vlgmr.msra.gmra.mrb[114].mxu0 %vm161_vm2, %v8602_v29 }
0x6193   :  { %12778 = vmatpush3.bf16.msra.mxu0 %v13766_v18  ;;  %12093 = vmatprep.mubr.msk.f32.mxu0 %vm13039_vm1, %v13038_v2 }
0x6194   :  { %12779 = vmatprep.subr.bf16.mxu0 %v13040_v6 }
0x6265   :  { %v8672_v43 = vpop.f32.mrb[114].mxu0 }
0x6266   :  { %v8676_v62 = vmul.f32 -0.0625, %v8672_v43  ;;  %v12070_v44 = vpop.f32.mrb[115].mxu0 }
0x6268   :  { %v8677_v45 = vadd.f32 %v8676_v62, %v14098_v38 }
0x626a   :  { %12076 = vmatmul.mubr.msk.f32.vlgmr.msra.gmra.mrb[108].mxu1 %vm253_vm3, %v8677_v45 }
0x626b   :  { %12772 = vmatpush3.bf16.msra.mxu1 %v13794_v33  ;;  %12086 = vmatprep.mubr.msk.f32.mxu1 %vm13039_vm1, %v13038_v2 }
0x626c   :  { %12773 = vmatprep.subr.bf16.mxu1 %v13040_v6 }
0x626f   :  { %12775 = vmatpush3.bf16.msra.mxu1 %v13804_v36 }
0x6270   :  { %12785 = vmatprep.subr.bf16.mxu1 %v13040_v6 }
0x633d   :  { %v8747_v46 = vpop.f32.mrb[108].mxu1 }
0x633e   :  { %v8748_v47 = vadd.f32 %v13811_v37, %v8747_v46  ;;  %v12077_v48 = vpop.f32.mrb[109].mxu1 }
0x6340   :  { %12990 = vtanh.f32 %v8748_v47 }
0x634a   :  { %v12991_v49 = vpop.eup %12990 }
0x634b   :  { %v8752_v50 = vmul.f32 %v12991_v49, %v12991_v49 }
0x634d   :  { %v8753_v51 = vsub.f32 1.0, %v8752_v50 }
0x634f   :  { %12087 = vmatmul.mubr.msk.f32.vlgmr.msra.gmra.mrb[110].mxu1 %vm161_vm2, %v8753_v51 }
0x6350   :  { %12787 = vmatpush3.bf16.msra.mxu1 %v13766_v18  ;;  %12111 = vmatprep.mubr.msk.f32.mxu1 %vm13039_vm1, %v13038_v2 }
0x6351   :  { %12788 = vmatprep.subr.bf16.mxu1 %v13040_v6 }
0x6422   :  { %v8823_v52 = vpop.f32.mrb[110].mxu1 }
0x6423   :  { %v8827_v53 = vmul.f32 -0.0625, %v8823_v52  ;;  %v9129_v54 = vmul.f32 2.0, %v8823_v52  ;;  %v12088_v55 = vpop.f32.mrb[111].mxu1 }
0x6425   :  { %v8828_v56 = vadd.f32 %v8827_v53, %v14098_v38  ;;  %v9130_v57 = vadd.f32 %v9129_v54, %v8672_v43 }
0x6427   :  { %12094 = vmatmul.mubr.msk.f32.vlgmr.msra.gmra.mrb[116].mxu0 %vm253_vm3, %v8828_v56 }
0x6428   :  { %12781 = vmatpush3.bf16.msra.mxu0 %v13794_v33  ;;  %12104 = vmatprep.mubr.msk.f32.mxu0 %vm13039_vm1, %v13038_v2 }
0x6429   :  { %12782 = vmatprep.subr.bf16.mxu0 %v13040_v6 }
0x642c   :  { %12784 = vmatpush3.bf16.msra.mxu0 %v13804_v36 }
0x642d   :  { %12794 = vmatprep.subr.bf16.mxu0 %v13040_v6 }
0x64fa   :  { %v8898_v58 = vpop.f32.mrb[116].mxu0 }
0x64fb   :  { %v8899_v59 = vadd.f32 %v13811_v37, %v8898_v58  ;;  %v12095_v30 = vpop.f32.mrb[117].mxu0 }
0x64fd   :  { %12992 = vtanh.f32 %v8899_v59 }
0x6507   :  { %v12993_v61 = vpop.eup %12992 }
0x6508   :  { %v8903_v63 = vmul.f32 %v12993_v61, %v12993_v61 }
0x650a   :  { %v8904_v0 = vsub.f32 1.0, %v8903_v63 }
0x650c   :  { %12105 = vmatmul.mubr.msk.f32.vlgmr.msra.gmra.mrb[118].mxu0 %vm161_vm2, %v8904_v0 }
0x650d   :  { %12796 = vmatpush3.bf16.msra.mxu0 %v13766_v18  ;;  %12129 = vmatprep.mubr.msk.f32.mxu0 %vm13039_vm1, %v13038_v2 }
0x650e   :  { %12797 = vmatprep.subr.bf16.mxu0 %v13040_v6 }
0x65df   :  { %v8974_v1 = vpop.f32.mrb[118].mxu0 }
0x65e0   :  { %v8978_v3 = vmul.f32 -0.125, %v8974_v1  ;;  %v9131_v4 = vmul.f32 2.0, %v8974_v1  ;;  %v12106_v5 = vpop.f32.mrb[119].mxu0 }
0x65e2   :  { %v8979_v37 = vadd.f32 %v8978_v3, %v14098_v38  ;;  %v9132_v7 = vadd.f32 %v9131_v4, %v9130_v57 }
0x65e4   :  { %12112 = vmatmul.mubr.msk.f32.vlgmr.msra.gmra.mrb[112].mxu1 %vm253_vm3, %v8979_v37 }
0x65e5   :  { %12790 = vmatpush3.bf16.msra.mxu1 %v13794_v33  ;;  %12122 = vmatprep.mubr.msk.f32.mxu1 %vm13039_vm1, %v13038_v2 }
0x65e6   :  { %12791 = vmatprep.subr.bf16.mxu1 %v13040_v6 }
0x65e9   :  { %12793 = vmatpush3.bf16.msra.mxu1 %v13804_v36 }
0x65ea   :  { %12803 = vmatprep.subr.bf16.mxu1 %v13040_v6 }
0x66b7   :  { %v9049_v8 = vpop.f32.mrb[112].mxu1 }
0x66b8   :  { %v9050_v10 = vadd.f32 %v14153_v9, %v9049_v8  ;;  %v12113_v11 = vpop.f32.mrb[113].mxu1 }
0x66ba   :  { %12994 = vtanh.f32 %v9050_v10 }
0x66c4   :  { %v12995_v12 = vpop.eup %12994 }
0x66c5   :  { %v9054_v13 = vmul.f32 %v12995_v12, %v12995_v12 }
0x66c7   :  { %v9055_v14 = vsub.f32 1.0, %v9054_v13 }
0x66c9   :  { %12123 = vmatmul.mubr.msk.f32.vlgmr.msra.gmra.mrb[114].mxu1 %vm161_vm2, %v9055_v14 }
0x66ca   :  { %12805 = vmatpush3.bf16.msra.mxu1 %v13766_v18  ;;  %12147 = vmatprep.mubr.msk.f32.mxu1 %vm13039_vm1, %v13038_v2 }
0x66cb   :  { %12806 = vmatprep.subr.bf16.mxu1 %v13040_v6 }
0x679c   :  { %v9125_v15 = vpop.f32.mrb[114].mxu1 }
0x679d   :  { %v9133_v16 = vadd.f32 %v9132_v7, %v9125_v15  ;;  %v12124_v19 = vpop.f32.mrb[115].mxu1 }
0x679f   :  { %v9134_v20 = vmul.f32 -0.020833334, %v9133_v16 }
0x67a1   :  { %v14162_v21 = vadd.f32 %v9134_v20, %v14098_v38 }
0x67a3   :  { %12130 = vmatmul.mubr.msk.f32.vlgmr.msra.gmra.mrb[120].mxu0 %vm253_vm3, %v14162_v21 }
0x67a4   :  { %12799 = vmatpush3.bf16.msra.mxu0 %v13794_v33  ;;  %12140 = vmatprep.mubr.msk.f32.mxu0 %vm13039_vm1, %v13038_v2 }
0x67a5   :  { %12800 = vmatprep.subr.bf16.mxu0 %v13040_v6 }
0x67a8   :  { %12802 = vmatpush3.bf16.msra.mxu0 %v13804_v36 }
0x67a9   :  { %12812 = vmatprep.subr.bf16.mxu0 %v13040_v6 }
0x6876   :  { %v9205_v17 = vpop.f32.mrb[120].mxu0 }
0x6877   :  { %v9206_v22 = vadd.f32 %v14153_v9, %v9205_v17  ;;  %v12131_v24 = vpop.f32.mrb[121].mxu0 }
0x6879   :  { %12996 = vtanh.f32 %v9206_v22 }
0x6883   :  { %v12997_v25 = vpop.eup %12996 }
0x6884   :  { %v9210_v27 = vmul.f32 %v12997_v25, %v12997_v25 }
0x6886   :  { %v9211_v28 = vsub.f32 1.0, %v9210_v27 }
0x6888   :  { %12141 = vmatmul.mubr.msk.f32.vlgmr.msra.gmra.mrb[122].mxu0 %vm161_vm2, %v9211_v28 }
0x6889   :  { %12814 = vmatpush3.bf16.msra.mxu0 %v13766_v18  ;;  %12165 = vmatprep.mubr.msk.f32.mxu0 %vm13039_vm1, %v13038_v2 }
0x688a   :  { %12815 = vmatprep.subr.bf16.mxu0 %v13040_v6 }
0x695b   :  { %v9281_v31 = vpop.f32.mrb[122].mxu0 }
0x695c   :  { %v9285_v32 = vmul.f32 -0.0625, %v9281_v31  ;;  %v12142_v34 = vpop.f32.mrb[123].mxu0 }
0x695e   :  { %v9286_v35 = vadd.f32 %v9285_v32, %v14162_v21 }
0x6960   :  { %12148 = vmatmul.mubr.msk.f32.vlgmr.msra.gmra.mrb[116].mxu1 %vm253_vm3, %v9286_v35 }
0x6961   :  { %12808 = vmatpush3.bf16.msra.mxu1 %v13794_v33  ;;  %12158 = vmatprep.mubr.msk.f32.mxu1 %vm13039_vm1, %v13038_v2 }
0x6962   :  { %12809 = vmatprep.subr.bf16.mxu1 %v13040_v6 }
0x6965   :  { %12811 = vmatpush3.bf16.msra.mxu1 %v13804_v36 }
0x6966   :  { %12821 = vmatprep.subr.bf16.mxu1 %v13040_v6 }
0x6a33   :  { %v9356_v38 = vpop.f32.mrb[116].mxu1 }
0x6a34   :  { %v9357_v39 = vadd.f32 %v14153_v9, %v9356_v38  ;;  %v12149_v40 = vpop.f32.mrb[117].mxu1 }
0x6a36   :  { %12998 = vtanh.f32 %v9357_v39 }
0x6a40   :  { %v12999_v41 = vpop.eup %12998 }
0x6a41   :  { %v9361_v42 = vmul.f32 %v12999_v41, %v12999_v41 }
0x6a43   :  { %v9362_v26 = vsub.f32 1.0, %v9361_v42 }
0x6a45   :  { %12159 = vmatmul.mubr.msk.f32.vlgmr.msra.gmra.mrb[118].mxu1 %vm161_vm2, %v9362_v26 }
0x6a46   :  { %12823 = vmatpush3.bf16.msra.mxu1 %v13766_v18  ;;  %12183 = vmatprep.mubr.msk.f32.mxu1 %vm13039_vm1, %v13038_v2 }
0x6a47   :  { %12824 = vmatprep.subr.bf16.mxu1 %v13040_v6 }
0x6b18   :  { %v9432_v29 = vpop.f32.mrb[118].mxu1 }
0x6b19   :  { %v9436_v43 = vmul.f32 -0.0625, %v9432_v29  ;;  %v9738_v62 = vmul.f32 2.0, %v9432_v29  ;;  %v12160_v44 = vpop.f32.mrb[119].mxu1 }
0x6b1b   :  { %v9437_v45 = vadd.f32 %v9436_v43, %v14162_v21  ;;  %v9739_v46 = vadd.f32 %v9738_v62, %v9281_v31 }
0x6b1d   :  { %12166 = vmatmul.mubr.msk.f32.vlgmr.msra.gmra.mrb[124].mxu0 %vm253_vm3, %v9437_v45 }
0x6b1e   :  { %12817 = vmatpush3.bf16.msra.mxu0 %v13794_v33  ;;  %12176 = vmatprep.mubr.msk.f32.mxu0 %vm13039_vm1, %v13038_v2 }
0x6b1f   :  { %12818 = vmatprep.subr.bf16.mxu0 %v13040_v6 }
0x6b22   :  { %12820 = vmatpush3.bf16.msra.mxu0 %v13804_v36 }
0x6b23   :  { %12830 = vmatprep.subr.bf16.mxu0 %v13040_v6 }
0x6bf0   :  { %v9507_v47 = vpop.f32.mrb[124].mxu0 }
0x6bf1   :  { %v9508_v48 = vadd.f32 %v14153_v9, %v9507_v47  ;;  %v12167_v49 = vpop.f32.mrb[125].mxu0 }
0x6bf3   :  { %13000 = vtanh.f32 %v9508_v48 }
0x6bfd   :  { %v13001_v50 = vpop.eup %13000 }
0x6bfe   :  { %v9512_v51 = vmul.f32 %v13001_v50, %v13001_v50 }
0x6c00   :  { %v9513_v52 = vsub.f32 1.0, %v9512_v51 }
0x6c02   :  { %12177 = vmatmul.mubr.msk.f32.vlgmr.msra.gmra.mrb[126].mxu0 %vm161_vm2, %v9513_v52 }
0x6c03   :  { %12832 = vmatpush3.bf16.msra.mxu0 %v13766_v18  ;;  %12201 = vmatprep.mubr.msk.f32.mxu0 %vm13039_vm1, %v13038_v2 }
0x6c04   :  { %12833 = vmatprep.subr.bf16.mxu0 %v13040_v6 }
0x6cd5   :  { %v9583_v53 = vpop.f32.mrb[126].mxu0 }
0x6cd6   :  { %v9587_v54 = vmul.f32 -0.125, %v9583_v53  ;;  %v9740_v55 = vmul.f32 2.0, %v9583_v53  ;;  %v12178_v56 = vpop.f32.mrb[127].mxu0 }
0x6cd7   :  { %v10362_v56 = vpop.permute.xlu0 %10361 }
0x6cd8   :  { %v9588_v57 = vadd.f32 %v9587_v54, %v14162_v21  ;;  %v9741_v58 = vadd.f32 %v9740_v55, %v9739_v46 }
0x6cda   :  { %12184 = vmatmul.mubr.msk.f32.vlgmr.msra.gmra.mrb[120].mxu1 %vm253_vm3, %v9588_v57 }
0x6cdb   :  { %12826 = vmatpush3.bf16.msra.mxu1 %v13794_v33  ;;  %12194 = vmatprep.mubr.msk.f32.mxu1 %vm13039_vm1, %v13038_v2 }
0x6cdc   :  { %12827 = vmatprep.subr.bf16.mxu1 %v13040_v6 }
0x6cdf   :  { %12829 = vmatpush3.bf16.msra.mxu1 %v13804_v36 }
0x6ce0   :  { %12839 = vmatprep.subr.bf16.mxu1 %v13040_v6 }
0x6dad   :  { %v9658_v59 = vpop.f32.mrb[120].mxu1 }
0x6dae   :  { %v9659_v30 = vadd.f32 %v14153_v9, %v9658_v59  ;;  %v12185_v61 = vpop.f32.mrb[121].mxu1 }
0x6db0   :  { %13002 = vtanh.f32 %v9659_v30 }
0x6dba   :  { %v13003_v63 = vpop.eup %13002 }
0x6dbb   :  { %v9663_v0 = vmul.f32 %v13003_v63, %v13003_v63 }
0x6dbd   :  { %v9664_v1 = vsub.f32 1.0, %v9663_v0 }
0x6dbf   :  { %12195 = vmatmul.mubr.msk.f32.vlgmr.msra.gmra.mrb[122].mxu1 %vm161_vm2, %v9664_v1 }
0x6dc0   :  { %12841 = vmatpush3.bf16.msra.mxu1 %v13766_v18  ;;  %12219 = vmatprep.mubr.msk.f32.mxu1 %vm13039_vm1, %v13038_v2 }
0x6dc1   :  { %12842 = vmatprep.subr.bf16.mxu1 %v13040_v6 }
0x6e92   :  { %v9734_v3 = vpop.f32.mrb[122].mxu1 }
0x6e93   :  { %v9742_v4 = vadd.f32 %v9741_v58, %v9734_v3  ;;  %v12196_v5 = vpop.f32.mrb[123].mxu1 }
0x6e95   :  { %v9743_v37 = vmul.f32 -0.020833334, %v9742_v4 }
0x6e97   :  { %v14221_v7 = vadd.f32 %v9743_v37, %v14162_v21 }
0x6e99   :  { %12202 = vmatmul.mubr.msk.f32.vlgmr.msra.gmra.mrb[128].mxu0 %vm253_vm3, %v14221_v7 }
0x6e9a   :  { %12835 = vmatpush3.bf16.msra.mxu0 %v13794_v33  ;;  %12212 = vmatprep.mubr.msk.f32.mxu0 %vm13039_vm1, %v13038_v2 }
0x6e9b   :  { %12836 = vmatprep.subr.bf16.mxu0 %v13040_v6 }
0x6e9e   :  { %12838 = vmatpush3.bf16.msra.mxu0 %v13804_v36 }
0x6e9f   :  { %12848 = vmatprep.subr.bf16.mxu0 %v13040_v6 }
0x6f6c   :  { %v9814_v8 = vpop.f32.mrb[128].mxu0 }
0x6f6d   :  { %v9815_v10 = vadd.f32 %v14153_v9, %v9814_v8  ;;  %v12203_v11 = vpop.f32.mrb[129].mxu0 }
0x6f6f   :  { %13004 = vtanh.f32 %v9815_v10 }
0x6f79   :  { %v13005_v12 = vpop.eup %13004 }
0x6f7a   :  { %v9819_v13 = vmul.f32 %v13005_v12, %v13005_v12 }
0x6f7c   :  { %v9820_v14 = vsub.f32 1.0, %v9819_v13 }
0x6f7e   :  { %12213 = vmatmul.mubr.msk.f32.vlgmr.msra.gmra.mrb[130].mxu0 %vm161_vm2, %v9820_v14 }
0x6f7f   :  { %12850 = vmatpush3.bf16.msra.mxu0 %v13766_v18  ;;  %12237 = vmatprep.mubr.msk.f32.mxu0 %vm13039_vm1, %v13038_v2 }
0x6f80   :  { %12851 = vmatprep.subr.bf16.mxu0 %v13040_v6 }
0x7051   :  { %v9890_v15 = vpop.f32.mrb[130].mxu0 }
0x7052   :  { %v9894_v16 = vmul.f32 -0.0625, %v9890_v15  ;;  %v12214_v19 = vpop.f32.mrb[131].mxu0 }
0x7054   :  { %v9895_v20 = vadd.f32 %v9894_v16, %v14221_v7 }
0x7056   :  { %12220 = vmatmul.mubr.msk.f32.vlgmr.msra.gmra.mrb[124].mxu1 %vm253_vm3, %v9895_v20 }
0x7057   :  { %12844 = vmatpush3.bf16.msra.mxu1 %v13794_v33  ;;  %12230 = vmatprep.mubr.msk.f32.mxu1 %vm13039_vm1, %v13038_v2 }
0x7058   :  { %12845 = vmatprep.subr.bf16.mxu1 %v13040_v6 }
0x705b   :  { %12847 = vmatpush3.bf16.msra.mxu1 %v13804_v36 }
0x705c   :  { %12857 = vmatprep.subr.bf16.mxu1 %v13040_v6 }
0x7129   :  { %v9965_v21 = vpop.f32.mrb[124].mxu1 }
0x712a   :  { %v9966_v17 = vadd.f32 %v14153_v9, %v9965_v21  ;;  %v12221_v22 = vpop.f32.mrb[125].mxu1 }
0x712c   :  { %13006 = vtanh.f32 %v9966_v17 }
0x7136   :  { %v13007_v24 = vpop.eup %13006 }
0x7137   :  { %v9970_v25 = vmul.f32 %v13007_v24, %v13007_v24 }
0x7139   :  { %v9971_v27 = vsub.f32 1.0, %v9970_v25 }
0x713b   :  { %12231 = vmatmul.mubr.msk.f32.vlgmr.msra.gmra.mrb[126].mxu1 %vm161_vm2, %v9971_v27 }
0x713c   :  { %12859 = vmatpush3.bf16.msra.mxu1 %v13766_v18  ;;  %12255 = vmatprep.mubr.msk.f32.mxu1 %vm13039_vm1, %v13038_v2 }
0x713d   :  { %12860 = vmatprep.subr.bf16.mxu1 %v13040_v6 }
0x720e   :  { %v10041_v28 = vpop.f32.mrb[126].mxu1 }
0x720f   :  { %v10045_v31 = vmul.f32 -0.0625, %v10041_v28  ;;  %v10347_v32 = vmul.f32 2.0, %v10041_v28  ;;  %v12232_v34 = vpop.f32.mrb[127].mxu1 }
0x7211   :  { %v10046_v35 = vadd.f32 %v10045_v31, %v14221_v7  ;;  %v10348_v38 = vadd.f32 %v10347_v32, %v9890_v15 }
0x7213   :  { %12238 = vmatmul.mubr.msk.f32.vlgmr.msra.gmra.mrb[132].mxu0 %vm253_vm3, %v10046_v35 }
0x7214   :  { %12853 = vmatpush3.bf16.msra.mxu0 %v13794_v33  ;;  %12248 = vmatprep.mubr.msk.f32.mxu0 %vm13039_vm1, %v13038_v2 }
0x7215   :  { %12854 = vmatprep.subr.bf16.mxu0 %v13040_v6 }
0x7218   :  { %12856 = vmatpush3.bf16.msra.mxu0 %v13804_v36 }
0x72e6   :  { %v10116_v18 = vpop.f32.mrb[132].mxu0 }
0x72e7   :  { %v10117_v39 = vadd.f32 %v14153_v9, %v10116_v18  ;;  %v12239_v40 = vpop.f32.mrb[133].mxu0 }
0x72e9   :  { %13008 = vtanh.f32 %v10117_v39 }
0x72f3   :  { %v13009_v41 = vpop.eup %13008 }
0x72f4   :  { %v10121_v42 = vmul.f32 %v13009_v41, %v13009_v41 }
0x72f6   :  { %v10122_v26 = vsub.f32 1.0, %v10121_v42 }
0x72f8   :  { %12249 = vmatmul.mubr.msk.f32.vlgmr.msra.gmra.mrb[134].mxu0 %vm161_vm2, %v10122_v26 }
0x73cb   :  { %v10192_v29 = vpop.f32.mrb[134].mxu0 }
0x73cc   :  { %v10196_v43 = vmul.f32 -0.125, %v10192_v29  ;;  %v10349_v62 = vmul.f32 2.0, %v10192_v29  ;;  %v12250_v44 = vpop.f32.mrb[135].mxu0 }
0x73ce   :  { %v10197_v45 = vadd.f32 %v10196_v43, %v14221_v7  ;;  %v10350_v46 = vadd.f32 %v10349_v62, %v10348_v38 }
0x73d0   :  { %12256 = vmatmul.mubr.msk.f32.vlgmr.msra.gmra.mrb[128].mxu1 %vm253_vm3, %v10197_v45 }
0x73d1   :  { %12862 = vmatpush3.bf16.msra.mxu1 %v13794_v33  ;;  %12266 = vmatprep.mubr.msk.f32.mxu1 %vm13039_vm1, %v13038_v2 }
0x73d2   :  { %12863 = vmatprep.subr.bf16.mxu1 %v13040_v6  ;;  %v10359_v6 = vpop.permute.xlu1 %10358 }
0x73d5   :  { %12865 = vmatpush3.bf16.msra.mxu1 %v13804_v36 }
0x74a3   :  { %v10267_v47 = vpop.f32.mrb[128].mxu1 }
0x74a4   :  { %v10268_v48 = vadd.f32 %v14153_v9, %v10267_v47  ;;  %v12257_v49 = vpop.f32.mrb[129].mxu1 }
0x74a6   :  { %13010 = vtanh.f32 %v10268_v48 }
0x74b0   :  { %v13011_v50 = vpop.eup %13010 }
0x74b1   :  { %v10272_v51 = vmul.f32 %v13011_v50, %v13011_v50 }
0x74b3   :  { %v10273_v52 = vsub.f32 1.0, %v10272_v51 }
0x74b5   :  { %12267 = vmatmul.mubr.msk.f32.vlgmr.msra.gmra.mrb[130].mxu1 %vm161_vm2, %v10273_v52 }
0x7588   :  { %v10343_v53 = vpop.f32.mrb[130].mxu1 }
0x7589   :  { %v10351_v54 = vadd.f32 %v10350_v46, %v10343_v53  ;;  %v12268_v33 = vpop.f32.mrb[131].mxu1 }
0x758b   :  { %v10352_v55 = vmul.f32 -0.020833334, %v10351_v54 }
0x758d   :  { %v10353_v2 = vadd.f32 %v10352_v55, %v14221_v7 }
0x758f   :  { %10355 = vrot.lane.b32.xlu1 %v10353_v2, %s13045_s16 }
0x7593   :  { %10365 = vrot.lane.b32.xlu1 %v13732_v60, %s13046_s1 }
0x7601   :  { %v10356_v36 = vpop.permute.xlu1 %10355 }
0x7602   :  { %v10368_v9 = vsel %vm253_vm3, %v13203_v23, %v10356_v36 }
0x7603   :  { %v10369_v57 = vsel %vm161_vm2, %v10368_v9, %v10359_v6 }
0x7604   :  { %v10371_v58 = vsel %vm10370_vm4, %v10369_v57, %v10362_v56 }
0x7605   :  { %v10366_v59 = vpop.permute.xlu1 %10365 }
0x7606   :  { %v10373_v30 = vsel %vm10372_vm5, %v10371_v58, %v10366_v59 }
0x7607   :  { %v10375_v61 = vsel %vm10374_vm6, %v10373_v30, 0.0 }
0x7608   :  { %10376 = vst [vmem:[#allocation2] sm:$0xff] %v10375_v61 }
0x7609   :  { %13025 = shalt.err (!%p13022_p4)
}
0x760a   :  { %s13026_s25 = scalar_lea.hbm %s14306_s20, 128 }
0x760b   :  { %p13027_p5 = scmp.ne.s32.totalorder %s14306_s20, %s13026_s25  ;;  %p13030_p6 = scmp.lt.u32.totalorder %s13026_s25, %s14306_s20 }
0x760d   :  { %p13032_p7 = pnand %p13030_p6, %p13027_p5 }
0x760f   :  { %13035 = shalt.err (!%p13032_p7)
}
0x7610   :  { %10386 = dma.vmem_to_hbm [thread:$0]  %s10384_s22, 128, %s14306_s20, [#allocation3]  }
0x7611   :  { %13036 = dma.done.wait [#allocation3], 128  }
0x7612   :  { %13037 = vsyncadd [#allocation3], 4294967168 }
0x7613   :  { %10390 = vsyncpa [#allocation3], 1 }

</bundles_post_ra>
